<compile_context>
chip_gen: v5e
topology: v5e:2x2
jax: 0.10.0
libtpu: 0.0.40
codegen_flags: <defaults>
</compile_context>

<pallas_src>
import math

import numpy as np
import jax
import jax.numpy as jnp
from jax.experimental import pallas as pl
from jax.experimental.pallas import tpu as pltpu


# ---------------------------------------------------------------------------
# prepare-time (numpy) builders for selection / Toeplitz matrices
# ---------------------------------------------------------------------------
def _interior_mask(B, H):
    m = np.zeros(B * (H + 2), np.bool_)
    for b in range(B):
        m[b * (H + 2) + 1: b * (H + 2) + 1 + H] = True
    return m


def _shift_mats(B, H):
    """D[j, j-1] = 1 / U[j, j+1] = 1 only when the source row is an interior
    row -> the matmul both shifts rows by +-1 AND supplies the conv zero
    padding at every sample's top/bottom edge."""
    R = B * (H + 2)
    inter = _interior_mask(B, H)
    D = np.zeros((R, R), np.float32)
    U = np.zeros((R, R), np.float32)
    for j in range(R):
        if j >= 1 and inter[j - 1]:
            D[j, j - 1] = 1.0
        if j + 1 < R and inter[j + 1]:
            U[j, j + 1] = 1.0
    return D, U


def _pack_rows(B, H):
    """(B*(H+2), B*H): scatter dense rows into the packed padded layout."""
    S = np.zeros((B * (H + 2), B * H), np.float32)
    for b in range(B):
        for r in range(H):
            S[b * (H + 2) + 1 + r, b * H + r] = 1.0
    return S


def _unpack_rows(B, H):
    """(B*H, B*(H+2)): gather interior rows back out of the packed layout."""
    return _pack_rows(B, H).T.copy()


def _pool_row_select(B, Hin):
    Hout = Hin // 2
    Se = np.zeros((B * (Hout + 2), B * (Hin + 2)), np.float32)
    So = np.zeros_like(Se)
    for b in range(B):
        for i in range(Hout):
            Se[b * (Hout + 2) + 1 + i, b * (Hin + 2) + 1 + 2 * i] = 1.0
            So[b * (Hout + 2) + 1 + i, b * (Hin + 2) + 2 + 2 * i] = 1.0
    return Se, So


def _pool_lane_select(Win, C):
    Wout = Win // 2
    Le = np.zeros((Win * C, Wout * C), np.float32)
    Lo = np.zeros_like(Le)
    for wo in range(Wout):
        for c in range(C):
            Le[(2 * wo) * C + c, wo * C + c] = 1.0
            Lo[(2 * wo + 1) * C + c, wo * C + c] = 1.0
    return Le, Lo


def _interleave_rows(B, Hin):
    """Scatter upconv even/odd output rows into the 2x-height packed layout."""
    Hout = 2 * Hin
    Ie = np.zeros((B * (Hout + 2), B * (Hin + 2)), np.float32)
    Io = np.zeros_like(Ie)
    for b in range(B):
        for i in range(Hin):
            Ie[b * (Hout + 2) + 1 + 2 * i, b * (Hin + 2) + 1 + i] = 1.0
            Io[b * (Hout + 2) + 2 + 2 * i, b * (Hin + 2) + 1 + i] = 1.0
    return Ie, Io


def _toeplitz_conv3x3(w, W):
    """(3,3,Cin,Cout) -> (3, W*Cin, W*Cout) width-Toeplitz (same padding)."""
    w = np.asarray(w, np.float32)
    KH, KW, Cin, Cout = w.shape
    big = np.zeros((KH, W * Cin, W * Cout), np.float32)
    for kw in range(KW):
        for wo in range(W):
            wi = wo + kw - 1
            if 0 <= wi < W:
                big[:, wi * Cin:(wi + 1) * Cin, wo * Cout:(wo + 1) * Cout] = w[:, kw]
    return big


def _toeplitz_upconv2x2(w, Win):
    """(2,2,Cin,Cout) stride-2 upconv -> (2, Win*Cin, 2*Win*Cout), row-parity major."""
    w = np.asarray(w, np.float32)
    _, _, Cin, Cout = w.shape
    big = np.zeros((2, Win * Cin, 2 * Win * Cout), np.float32)
    for a in range(2):
        for b in range(2):
            for wi in range(Win):
                wo = 2 * wi + b
                big[a, wi * Cin:(wi + 1) * Cin, wo * Cout:(wo + 1) * Cout] = w[a, b]
    return big


def _blockdiag_1x1(w2d, W):
    w2d = np.asarray(w2d, np.float32)
    Cin, Cout = w2d.shape
    big = np.zeros((W * Cin, W * Cout), np.float32)
    for wi in range(W):
        big[wi * Cin:(wi + 1) * Cin, wi * Cout:(wi + 1) * Cout] = w2d
    return big


def _bias_tile(b, W):
    return np.tile(np.asarray(b, np.float32), W).reshape(1, -1)


# ---------------------------------------------------------------------------
# in-kernel helpers (values only; bf16 MXU operands, f32 accumulate)
# ---------------------------------------------------------------------------
def _conv3x3(v, d_ref, u_ref, w_ref, b_ref):
    """Same-padded 3x3 conv + ReLU on packed padded rows. Halo rows of the
    result are don't-care (every consumer ignores them via its selection /
    shift matrices)."""
    dn = jnp.dot(d_ref[...], v, preferred_element_type=jnp.float32).astype(jnp.bfloat16)
    up = jnp.dot(u_ref[...], v, preferred_element_type=jnp.float32).astype(jnp.bfloat16)
    acc = jnp.dot(dn, w_ref[0], preferred_element_type=jnp.float32)
    acc = acc + jnp.dot(v, w_ref[1], preferred_element_type=jnp.float32)
    acc = acc + jnp.dot(up, w_ref[2], preferred_element_type=jnp.float32)
    return jnp.maximum(acc + b_ref[...], 0.0).astype(jnp.bfloat16)


def _pool2x2(v, pe_ref, po_ref, le_ref, lo_ref):
    """2x2 max pool: row-pair max + lane-pair max via 0/1 selection matmuls."""
    rows = jnp.maximum(
        jnp.dot(pe_ref[...], v, preferred_element_type=jnp.float32),
        jnp.dot(po_ref[...], v, preferred_element_type=jnp.float32)).astype(jnp.bfloat16)
    pooled = jnp.maximum(
        jnp.dot(rows, le_ref[...], preferred_element_type=jnp.float32),
        jnp.dot(rows, lo_ref[...], preferred_element_type=jnp.float32))
    return pooled.astype(jnp.bfloat16)


def _upconv2x2(v, uw_ref, ub_ref, ie_ref, io_ref):
    """2x2 stride-2 ConvTranspose: per-parity matmuls + row-interleave matmuls."""
    even = jnp.dot(v, uw_ref[0], preferred_element_type=jnp.float32).astype(jnp.bfloat16)
    odd = jnp.dot(v, uw_ref[1], preferred_element_type=jnp.float32).astype(jnp.bfloat16)
    up = (jnp.dot(ie_ref[...], even, preferred_element_type=jnp.float32)
          + jnp.dot(io_ref[...], odd, preferred_element_type=jnp.float32)
          + ub_ref[...])
    return up.astype(jnp.bfloat16)


# ---------------------------------------------------------------------------
# fused whole-network pallas_call
# ---------------------------------------------------------------------------
def _const_index_map(ndim):
    return lambda n, _nd=ndim: (0,) * _nd


def _build_unet_call(prep, N):
    order = prep["order"]
    names = [nm for nm, _ in order]
    arrays = [a for _, a in order]
    depth, B = prep["depth"], prep["B"]
    H, W = prep["H"], prep["W"]
    cin, ncls = prep["in_channels"], prep["n_classes"]

    def kernel(x_ref, *rest):
        assert len(rest) == len(names) + 1
        o_ref = rest[-1]
        t = dict(zip(names, rest[:-1]))

        # pack the B_tile samples into the padded row layout (one matmul)
        xb = x_ref[...].astype(jnp.bfloat16)                       # (B*H, W*Cin)
        v = jnp.dot(t["S_in"][...], xb,
                    preferred_element_type=jnp.float32).astype(jnp.bfloat16)

        bridges = []
        for i in range(depth):                                     # contracting path
            h1 = _conv3x3(v, t[f"D{i}"], t[f"U{i}"], t[f"dw1_{i}"], t[f"db1_{i}"])
            v = _conv3x3(h1, t[f"D{i}"], t[f"U{i}"], t[f"dw2_{i}"], t[f"db2_{i}"])
            if i != depth - 1:
                bridges.append(v)                                  # stays in VMEM/vregs
                v = _pool2x2(v, t[f"Pe{i}"], t[f"Po{i}"], t[f"Le{i}"], t[f"Lo{i}"])

        for k in range(depth - 1):                                 # expanding path
            lvl = depth - 2 - k
            up = _upconv2x2(v, t[f"uw_{k}"], t[f"ub_{k}"], t[f"Ie{k}"], t[f"Io{k}"])
            # channel concat (lane concat at a 128 boundary -> free) + K=256 conv1
            cat = jnp.concatenate([up, bridges[lvl]], axis=-1)
            h1 = _conv3x3(cat, t[f"D{lvl}"], t[f"U{lvl}"], t[f"uw1_{k}"], t[f"ub1_{k}"])
            v = _conv3x3(h1, t[f"D{lvl}"], t[f"U{lvl}"], t[f"uw2_{k}"], t[f"ub2_{k}"])

        # final 1x1 conv on the interior rows only (block-diagonal matmul)
        rows = jnp.dot(t["S_out"][...], v,
                       preferred_element_type=jnp.float32).astype(jnp.bfloat16)
        o_ref[...] = (jnp.dot(rows, t["w_last"][...],
                              preferred_element_type=jnp.float32) + t["b_last"][...])

    in_specs = [pl.BlockSpec((B * H, W * cin), lambda n: (n, 0))]
    in_specs += [pl.BlockSpec(a.shape, _const_index_map(a.ndim)) for a in arrays]
    out_spec = pl.BlockSpec((B * H, W * ncls), lambda n: (n, 0))

    call = pl.pallas_call(
        kernel,
        out_shape=jax.ShapeDtypeStruct((N * H, W * ncls), jnp.float32),
        grid=(N // B,),
        in_specs=in_specs,
        out_specs=out_spec,
        compiler_params=pltpu.CompilerParams(
            dimension_semantics=("parallel",),
            vmem_limit_bytes=32 * 1024 * 1024),
    )
    return call, arrays


def unet_forward(x_nchw, prep):
    N, Cin, H, W = x_nchw.shape
    assert Cin == prep["in_channels"] and H == prep["H"] and W == prep["W"]
    assert N % prep["B"] == 0
    call, arrays = _build_unet_call(prep, N)
    x2d = jnp.transpose(x_nchw, (0, 2, 3, 1)).reshape(N * H, W * Cin)
    out2d = call(x2d, *arrays)
    ncls = prep["n_classes"]
    return jnp.transpose(out2d.reshape(N, H, W, ncls), (0, 3, 1, 2))  # NCHW


# ---------------------------------------------------------------------------
# parameter init (PyTorch-equivalent, HWIO) + prepare
# ---------------------------------------------------------------------------
def init_unet_params(key, in_channels=1, n_classes=2, depth=3, factor=3):
    keys = iter(jax.random.split(key, 12 * depth + 4))

    def conv_init(kh, kw, cin, cout):
        bound = 1.0 / math.sqrt(cin * kh * kw)
        w = jax.random.uniform(next(keys), (kh, kw, cin, cout), jnp.float32, -bound, bound)
        b = jax.random.uniform(next(keys), (cout,), jnp.float32, -bound, bound)
        return w, b

    params = {"down": [], "up": []}
    prev = in_channels
    for i in range(depth):
        cout = 2 ** (factor + i)
        w1, b1 = conv_init(3, 3, prev, cout)
        w2, b2 = conv_init(3, 3, cout, cout)
        params["down"].append(dict(w1=w1, b1=b1, w2=w2, b2=b2))
        prev = cout
    for i in reversed(range(depth - 1)):
        cout = 2 ** (factor + i)
        bound = 1.0 / math.sqrt(prev * 2 * 2)
        up_w = jax.random.uniform(next(keys), (2, 2, prev, cout), jnp.float32, -bound, bound)
        up_b = jax.random.uniform(next(keys), (cout,), jnp.float32, -bound, bound)
        w1, b1 = conv_init(3, 3, prev, cout)   # conv block input = cat(up, bridge)
        w2, b2 = conv_init(3, 3, cout, cout)
        params["up"].append(dict(up_w=up_w, up_b=up_b, w1=w1, b1=b1, w2=w2, b2=b2))
        prev = cout
    lw, lb = conv_init(1, 1, prev, n_classes)
    params["last_w"], params["last_b"] = lw, lb
    return params


def prepare_params(params, in_channels, n_classes, H, W, batch_tile):
    depth = len(params["down"])
    assert H % (2 ** (depth - 1)) == 0 and W % (2 ** (depth - 1)) == 0, \
        "H/W must be divisible by 2**(depth-1)"
    B = batch_tile
    chans = [int(p["b1"].shape[0]) for p in params["down"]]
    Hs = [H >> i for i in range(depth)]
    Ws = [W >> i for i in range(depth)]

    order = []

    def add(name, arr, dtype):
        order.append((name, jnp.asarray(np.asarray(arr), dtype)))

    add("S_in", _pack_rows(B, Hs[0]), jnp.bfloat16)
    for i in range(depth):
        D, U = _shift_mats(B, Hs[i])
        add(f"D{i}", D, jnp.bfloat16)
        add(f"U{i}", U, jnp.bfloat16)

    for i, p in enumerate(params["down"]):
        c = chans[i]
        add(f"dw1_{i}", _toeplitz_conv3x3(p["w1"], Ws[i]), jnp.bfloat16)
        add(f"db1_{i}", _bias_tile(p["b1"], Ws[i]), jnp.float32)
        add(f"dw2_{i}", _toeplitz_conv3x3(p["w2"], Ws[i]), jnp.bfloat16)
        add(f"db2_{i}", _bias_tile(p["b2"], Ws[i]), jnp.float32)
        if i != depth - 1:
            Se, So = _pool_row_select(B, Hs[i])
            Le, Lo = _pool_lane_select(Ws[i], c)
            add(f"Pe{i}", Se, jnp.bfloat16)
            add(f"Po{i}", So, jnp.bfloat16)
            add(f"Le{i}", Le, jnp.bfloat16)
            add(f"Lo{i}", Lo, jnp.bfloat16)

    for k, p in enumerate(params["up"]):
        lvl = depth - 2 - k
        cb = int(p["up_b"].shape[0])              # == chans[lvl]
        Win, Wout = Ws[lvl + 1], Ws[lvl]
        add(f"uw_{k}", _toeplitz_upconv2x2(p["up_w"], Win), jnp.bfloat16)
        add(f"ub_{k}", _bias_tile(p["up_b"], Wout), jnp.float32)
        Ie, Io = _interleave_rows(B, Hs[lvl + 1])
        add(f"Ie{k}", Ie, jnp.bfloat16)
        add(f"Io{k}", Io, jnp.bfloat16)
        w1 = np.asarray(p["w1"], np.float32)      # input channels: [up | bridge]
        w1_packed = np.concatenate(
            [_toeplitz_conv3x3(w1[:, :, :cb, :], Wout),
             _toeplitz_conv3x3(w1[:, :, cb:, :], Wout)], axis=1)
        add(f"uw1_{k}", w1_packed, jnp.bfloat16)
        add(f"ub1_{k}", _bias_tile(p["b1"], Wout), jnp.float32)
        add(f"uw2_{k}", _toeplitz_conv3x3(p["w2"], Wout), jnp.bfloat16)
        add(f"ub2_{k}", _bias_tile(p["b2"], Wout), jnp.float32)

    add("S_out", _unpack_rows(B, Hs[0]), jnp.bfloat16)
    lw = np.asarray(params["last_w"], np.float32)
    add("w_last", _blockdiag_1x1(lw.reshape(lw.shape[2], lw.shape[3]), Ws[0]), jnp.bfloat16)
    add("b_last", _bias_tile(params["last_b"], Ws[0]), jnp.float32)

    return dict(order=order, depth=depth, B=B, H=H, W=W,
                in_channels=in_channels, n_classes=n_classes)


# ---------------------------------------------------------------------------
# pure-JAX reference (f32) for a tolerance check
# ---------------------------------------------------------------------------
def unet_reference(x_nchw, params):
    hi = jax.lax.Precision.HIGHEST

    def conv(h, w, b):
        y = jax.lax.conv_general_dilated(
            h, w, (1, 1), "SAME",
            dimension_numbers=("NHWC", "HWIO", "NHWC"), precision=hi)
        return y + b

    x = jnp.transpose(x_nchw, (0, 2, 3, 1))
    nd = len(params["down"])
    bridges = []
    for i, p in enumerate(params["down"]):
        x = jax.nn.relu(conv(x, p["w1"], p["b1"]))
        x = jax.nn.relu(conv(x, p["w2"], p["b2"]))
        if i != nd - 1:
            bridges.append(x)
            x = jax.lax.reduce_window(x, -jnp.inf, jax.lax.max,
                                      (1, 2, 2, 1), (1, 2, 2, 1), "VALID")
    for k, p in enumerate(params["up"]):
        n, h, w_, _ = x.shape
        cout = p["up_w"].shape[-1]
        up = jnp.einsum("nijc,abcd->niajbd", x, p["up_w"], precision=hi)
        up = up.reshape(n, 2 * h, 2 * w_, cout) + p["up_b"]
        x = jnp.concatenate([up, bridges[-1 - k]], axis=-1)
        x = jax.nn.relu(conv(x, p["w1"], p["b1"]))
        x = jax.nn.relu(conv(x, p["w2"], p["b2"]))
    x = conv(x, params["last_w"], params["last_b"])
    return jnp.transpose(x, (0, 3, 1, 2))


if __name__ == "__main__":
    key = jax.random.PRNGKey(0)
    pkey, xkey = jax.random.split(key)

    # Small config consistent with the module: in_channels=1, n_classes=2,
    # depth=3, factor=3 (filters 8/16/32), padding=True, batch_norm=False.
    N, Cin, H, W = 2, 1, 16, 16
    n_classes, depth, factor = 2, 3, 3
    params = init_unet_params(pkey, Cin, n_classes, depth, factor)
    x = jax.random.normal(xkey, (N, Cin, H, W), jnp.float32)  # NCHW like PyTorch

    # batch_tile = N packs the whole (tiny) batch into one fat grid step; for
    # larger N pick batch_tile ~ 128 // (H + 2) and keep the grid a multiple
    # of the core count so megacore sharding gets full-size steps.
    prep = prepare_params(params, Cin, n_classes, H, W, batch_tile=N)

    fwd = jax.jit(lambda inp: unet_forward(inp, prep))
    out = fwd(x)
    jax.block_until_ready(out)

    assert out.shape == (N, n_classes, H, W), out.shape
    assert bool(jnp.all(jnp.isfinite(out)))

    # bf16-MXU / f32-accumulate vs f32 reference: expect ~1e-2 relative error.
    ref = unet_reference(x, params)
    err = float(jnp.max(jnp.abs(out - ref)) / (jnp.max(jnp.abs(ref)) + 1e-6))
    assert err < 0.1, f"max-normalized error too large: {err}"

    print("KERNEL_OK")
</pallas_src>

<mosaic_0001>
module attributes {stable_mosaic.version = 11 : i64} {
  func.func @kernel(%arg0: i32, %arg1: memref<32x16xf32, #tpu.memory_space<vmem>>, %arg2: memref<36x32xbf16, #tpu.memory_space<vmem>>, %arg3: memref<36x36xbf16, #tpu.memory_space<vmem>>, %arg4: memref<36x36xbf16, #tpu.memory_space<vmem>>, %arg5: memref<20x20xbf16, #tpu.memory_space<vmem>>, %arg6: memref<20x20xbf16, #tpu.memory_space<vmem>>, %arg7: memref<12x12xbf16, #tpu.memory_space<vmem>>, %arg8: memref<12x12xbf16, #tpu.memory_space<vmem>>, %arg9: memref<3x16x128xbf16, #tpu.memory_space<vmem>>, %arg10: memref<1x128xf32, #tpu.memory_space<vmem>>, %arg11: memref<3x128x128xbf16, #tpu.memory_space<vmem>>, %arg12: memref<1x128xf32, #tpu.memory_space<vmem>>, %arg13: memref<20x36xbf16, #tpu.memory_space<vmem>>, %arg14: memref<20x36xbf16, #tpu.memory_space<vmem>>, %arg15: memref<128x64xbf16, #tpu.memory_space<vmem>>, %arg16: memref<128x64xbf16, #tpu.memory_space<vmem>>, %arg17: memref<3x64x128xbf16, #tpu.memory_space<vmem>>, %arg18: memref<1x128xf32, #tpu.memory_space<vmem>>, %arg19: memref<3x128x128xbf16, #tpu.memory_space<vmem>>, %arg20: memref<1x128xf32, #tpu.memory_space<vmem>>, %arg21: memref<12x20xbf16, #tpu.memory_space<vmem>>, %arg22: memref<12x20xbf16, #tpu.memory_space<vmem>>, %arg23: memref<128x64xbf16, #tpu.memory_space<vmem>>, %arg24: memref<128x64xbf16, #tpu.memory_space<vmem>>, %arg25: memref<3x64x128xbf16, #tpu.memory_space<vmem>>, %arg26: memref<1x128xf32, #tpu.memory_space<vmem>>, %arg27: memref<3x128x128xbf16, #tpu.memory_space<vmem>>, %arg28: memref<1x128xf32, #tpu.memory_space<vmem>>, %arg29: memref<2x128x128xbf16, #tpu.memory_space<vmem>>, %arg30: memref<1x128xf32, #tpu.memory_space<vmem>>, %arg31: memref<20x12xbf16, #tpu.memory_space<vmem>>, %arg32: memref<20x12xbf16, #tpu.memory_space<vmem>>, %arg33: memref<3x256x128xbf16, #tpu.memory_space<vmem>>, %arg34: memref<1x128xf32, #tpu.memory_space<vmem>>, %arg35: memref<3x128x128xbf16, #tpu.memory_space<vmem>>, %arg36: memref<1x128xf32, #tpu.memory_space<vmem>>, %arg37: memref<2x128x128xbf16, #tpu.memory_space<vmem>>, %arg38: memref<1x128xf32, #tpu.memory_space<vmem>>, %arg39: memref<36x20xbf16, #tpu.memory_space<vmem>>, %arg40: memref<36x20xbf16, #tpu.memory_space<vmem>>, %arg41: memref<3x256x128xbf16, #tpu.memory_space<vmem>>, %arg42: memref<1x128xf32, #tpu.memory_space<vmem>>, %arg43: memref<3x128x128xbf16, #tpu.memory_space<vmem>>, %arg44: memref<1x128xf32, #tpu.memory_space<vmem>>, %arg45: memref<32x36xbf16, #tpu.memory_space<vmem>>, %arg46: memref<128x32xbf16, #tpu.memory_space<vmem>>, %arg47: memref<1x32xf32, #tpu.memory_space<vmem>>, %arg48: memref<32x32xf32, #tpu.memory_space<vmem>>) attributes {dimension_semantics = [#tpu.dimension_semantics<parallel>], iteration_bounds = array<i64: 1>, scalar_prefetch = 0 : i64, scratch_operands = 0 : i64, tpu.core_type = #tpu.core_type<tc>, window_params = [{transform_indices = @transform_0, window_bounds = array<i64: 32, 16>}, {pipeline_mode = #tpu.pipeline_mode<synchronous>, transform_indices = @transform_1, window_bounds = array<i64: 36, 32>}, {pipeline_mode = #tpu.pipeline_mode<synchronous>, transform_indices = @transform_2, window_bounds = array<i64: 36, 36>}, {pipeline_mode = #tpu.pipeline_mode<synchronous>, transform_indices = @transform_3, window_bounds = array<i64: 36, 36>}, {pipeline_mode = #tpu.pipeline_mode<synchronous>, transform_indices = @transform_4, window_bounds = array<i64: 20, 20>}, {pipeline_mode = #tpu.pipeline_mode<synchronous>, transform_indices = @transform_5, window_bounds = array<i64: 20, 20>}, {pipeline_mode = #tpu.pipeline_mode<synchronous>, transform_indices = @transform_6, window_bounds = array<i64: 12, 12>}, {pipeline_mode = #tpu.pipeline_mode<synchronous>, transform_indices = @transform_7, window_bounds = array<i64: 12, 12>}, {pipeline_mode = #tpu.pipeline_mode<synchronous>, transform_indices = @transform_8, window_bounds = array<i64: 3, 16, 128>}, {pipeline_mode = #tpu.pipeline_mode<synchronous>, transform_indices = @transform_9, window_bounds = array<i64: 1, 128>}, {pipeline_mode = #tpu.pipeline_mode<synchronous>, transform_indices = @transform_10, window_bounds = array<i64: 3, 128, 128>}, {pipeline_mode = #tpu.pipeline_mode<synchronous>, transform_indices = @transform_11, window_bounds = array<i64: 1, 128>}, {pipeline_mode = #tpu.pipeline_mode<synchronous>, transform_indices = @transform_12, window_bounds = array<i64: 20, 36>}, {pipeline_mode = #tpu.pipeline_mode<synchronous>, transform_indices = @transform_13, window_bounds = array<i64: 20, 36>}, {pipeline_mode = #tpu.pipeline_mode<synchronous>, transform_indices = @transform_14, window_bounds = array<i64: 128, 64>}, {pipeline_mode = #tpu.pipeline_mode<synchronous>, transform_indices = @transform_15, window_bounds = array<i64: 128, 64>}, {pipeline_mode = #tpu.pipeline_mode<synchronous>, transform_indices = @transform_16, window_bounds = array<i64: 3, 64, 128>}, {pipeline_mode = #tpu.pipeline_mode<synchronous>, transform_indices = @transform_17, window_bounds = array<i64: 1, 128>}, {pipeline_mode = #tpu.pipeline_mode<synchronous>, transform_indices = @transform_18, window_bounds = array<i64: 3, 128, 128>}, {pipeline_mode = #tpu.pipeline_mode<synchronous>, transform_indices = @transform_19, window_bounds = array<i64: 1, 128>}, {pipeline_mode = #tpu.pipeline_mode<synchronous>, transform_indices = @transform_20, window_bounds = array<i64: 12, 20>}, {pipeline_mode = #tpu.pipeline_mode<synchronous>, transform_indices = @transform_21, window_bounds = array<i64: 12, 20>}, {pipeline_mode = #tpu.pipeline_mode<synchronous>, transform_indices = @transform_22, window_bounds = array<i64: 128, 64>}, {pipeline_mode = #tpu.pipeline_mode<synchronous>, transform_indices = @transform_23, window_bounds = array<i64: 128, 64>}, {pipeline_mode = #tpu.pipeline_mode<synchronous>, transform_indices = @transform_24, window_bounds = array<i64: 3, 64, 128>}, {pipeline_mode = #tpu.pipeline_mode<synchronous>, transform_indices = @transform_25, window_bounds = array<i64: 1, 128>}, {pipeline_mode = #tpu.pipeline_mode<synchronous>, transform_indices = @transform_26, window_bounds = array<i64: 3, 128, 128>}, {pipeline_mode = #tpu.pipeline_mode<synchronous>, transform_indices = @transform_27, window_bounds = array<i64: 1, 128>}, {pipeline_mode = #tpu.pipeline_mode<synchronous>, transform_indices = @transform_28, window_bounds = array<i64: 2, 128, 128>}, {pipeline_mode = #tpu.pipeline_mode<synchronous>, transform_indices = @transform_29, window_bounds = array<i64: 1, 128>}, {pipeline_mode = #tpu.pipeline_mode<synchronous>, transform_indices = @transform_30, window_bounds = array<i64: 20, 12>}, {pipeline_mode = #tpu.pipeline_mode<synchronous>, transform_indices = @transform_31, window_bounds = array<i64: 20, 12>}, {pipeline_mode = #tpu.pipeline_mode<synchronous>, transform_indices = @transform_32, window_bounds = array<i64: 3, 256, 128>}, {pipeline_mode = #tpu.pipeline_mode<synchronous>, transform_indices = @transform_33, window_bounds = array<i64: 1, 128>}, {pipeline_mode = #tpu.pipeline_mode<synchronous>, transform_indices = @transform_34, window_bounds = array<i64: 3, 128, 128>}, {pipeline_mode = #tpu.pipeline_mode<synchronous>, transform_indices = @transform_35, window_bounds = array<i64: 1, 128>}, {pipeline_mode = #tpu.pipeline_mode<synchronous>, transform_indices = @transform_36, window_bounds = array<i64: 2, 128, 128>}, {pipeline_mode = #tpu.pipeline_mode<synchronous>, transform_indices = @transform_37, window_bounds = array<i64: 1, 128>}, {pipeline_mode = #tpu.pipeline_mode<synchronous>, transform_indices = @transform_38, window_bounds = array<i64: 36, 20>}, {pipeline_mode = #tpu.pipeline_mode<synchronous>, transform_indices = @transform_39, window_bounds = array<i64: 36, 20>}, {pipeline_mode = #tpu.pipeline_mode<synchronous>, transform_indices = @transform_40, window_bounds = array<i64: 3, 256, 128>}, {pipeline_mode = #tpu.pipeline_mode<synchronous>, transform_indices = @transform_41, window_bounds = array<i64: 1, 128>}, {pipeline_mode = #tpu.pipeline_mode<synchronous>, transform_indices = @transform_42, window_bounds = array<i64: 3, 128, 128>}, {pipeline_mode = #tpu.pipeline_mode<synchronous>, transform_indices = @transform_43, window_bounds = array<i64: 1, 128>}, {pipeline_mode = #tpu.pipeline_mode<synchronous>, transform_indices = @transform_44, window_bounds = array<i64: 32, 36>}, {pipeline_mode = #tpu.pipeline_mode<synchronous>, transform_indices = @transform_45, window_bounds = array<i64: 128, 32>}, {pipeline_mode = #tpu.pipeline_mode<synchronous>, transform_indices = @transform_46, window_bounds = array<i64: 1, 32>}, {transform_indices = @transform_47, window_bounds = array<i64: 32, 32>}]} {
    %c0 = arith.constant 0 : index
    %c0_0 = arith.constant 0 : index
    %0 = vector.load %arg1[%c0, %c0_0] : memref<32x16xf32, #tpu.memory_space<vmem>>, vector<32x16xf32>
    %1 = arith.truncf %0 : vector<32x16xf32> to vector<32x16xbf16>
    %c0_1 = arith.constant 0 : index
    %c0_2 = arith.constant 0 : index
    %2 = vector.load %arg2[%c0_1, %c0_2] : memref<36x32xbf16, #tpu.memory_space<vmem>>, vector<36x32xbf16>
    %cst = arith.constant dense<0.000000e+00> : vector<36x16xf32>
    %3 = tpu.matmul %2, %1, %cst {dimension_numbers = #tpu.dot_dimension_numbers<[1], [0], [0], [1], [0, 0, 1, 1], [], []>} : vector<36x32xbf16>, vector<32x16xbf16>, vector<36x16xf32> -> vector<36x16xf32>
    %4 = arith.truncf %3 : vector<36x16xf32> to vector<36x16xbf16>
    %c0_3 = arith.constant 0 : index
    %c0_4 = arith.constant 0 : index
    %5 = vector.load %arg3[%c0_3, %c0_4] : memref<36x36xbf16, #tpu.memory_space<vmem>>, vector<36x36xbf16>
    %cst_5 = arith.constant dense<0.000000e+00> : vector<36x16xf32>
    %6 = tpu.matmul %5, %4, %cst_5 {dimension_numbers = #tpu.dot_dimension_numbers<[1], [0], [0], [1], [0, 0, 1, 1], [], []>} : vector<36x36xbf16>, vector<36x16xbf16>, vector<36x16xf32> -> vector<36x16xf32>
    %7 = arith.truncf %6 : vector<36x16xf32> to vector<36x16xbf16>
    %c0_6 = arith.constant 0 : index
    %c0_7 = arith.constant 0 : index
    %8 = vector.load %arg4[%c0_6, %c0_7] : memref<36x36xbf16, #tpu.memory_space<vmem>>, vector<36x36xbf16>
    %cst_8 = arith.constant dense<0.000000e+00> : vector<36x16xf32>
    %9 = tpu.matmul %8, %4, %cst_8 {dimension_numbers = #tpu.dot_dimension_numbers<[1], [0], [0], [1], [0, 0, 1, 1], [], []>} : vector<36x36xbf16>, vector<36x16xbf16>, vector<36x16xf32> -> vector<36x16xf32>
    %10 = arith.truncf %9 : vector<36x16xf32> to vector<36x16xbf16>
    %c0_9 = arith.constant 0 : index
    %c0_10 = arith.constant 0 : index
    %c0_11 = arith.constant 0 : index
    %11 = vector.load %arg9[%c0_9, %c0_10, %c0_11] : memref<3x16x128xbf16, #tpu.memory_space<vmem>>, vector<1x16x128xbf16>
    %12 = vector.shape_cast %11 : vector<1x16x128xbf16> to vector<16x128xbf16>
    %cst_12 = arith.constant dense<0.000000e+00> : vector<36x128xf32>
    %13 = tpu.matmul %7, %12, %cst_12 {dimension_numbers = #tpu.dot_dimension_numbers<[1], [0], [0], [1], [0, 0, 1, 1], [], []>} : vector<36x16xbf16>, vector<16x128xbf16>, vector<36x128xf32> -> vector<36x128xf32>
    %c1 = arith.constant 1 : index
    %c0_13 = arith.constant 0 : index
    %c0_14 = arith.constant 0 : index
    %14 = vector.load %arg9[%c1, %c0_13, %c0_14] : memref<3x16x128xbf16, #tpu.memory_space<vmem>>, vector<1x16x128xbf16>
    %15 = vector.shape_cast %14 : vector<1x16x128xbf16> to vector<16x128xbf16>
    %cst_15 = arith.constant dense<0.000000e+00> : vector<36x128xf32>
    %16 = tpu.matmul %4, %15, %cst_15 {dimension_numbers = #tpu.dot_dimension_numbers<[1], [0], [0], [1], [0, 0, 1, 1], [], []>} : vector<36x16xbf16>, vector<16x128xbf16>, vector<36x128xf32> -> vector<36x128xf32>
    %17 = arith.addf %13, %16 : vector<36x128xf32>
    %c2 = arith.constant 2 : index
    %c0_16 = arith.constant 0 : index
    %c0_17 = arith.constant 0 : index
    %18 = vector.load %arg9[%c2, %c0_16, %c0_17] : memref<3x16x128xbf16, #tpu.memory_space<vmem>>, vector<1x16x128xbf16>
    %19 = vector.shape_cast %18 : vector<1x16x128xbf16> to vector<16x128xbf16>
    %cst_18 = arith.constant dense<0.000000e+00> : vector<36x128xf32>
    %20 = tpu.matmul %10, %19, %cst_18 {dimension_numbers = #tpu.dot_dimension_numbers<[1], [0], [0], [1], [0, 0, 1, 1], [], []>} : vector<36x16xbf16>, vector<16x128xbf16>, vector<36x128xf32> -> vector<36x128xf32>
    %21 = arith.addf %17, %20 : vector<36x128xf32>
    %c0_19 = arith.constant 0 : index
    %c0_20 = arith.constant 0 : index
    %22 = vector.load %arg10[%c0_19, %c0_20] : memref<1x128xf32, #tpu.memory_space<vmem>>, vector<1x128xf32>
    %23 = vector.broadcast %22 : vector<1x128xf32> to vector<36x128xf32>
    %24 = arith.addf %21, %23 : vector<36x128xf32>
    %cst_21 = arith.constant 0.000000e+00 : f32
    %25 = vector.broadcast %cst_21 : f32 to vector<36x128xf32>
    %26 = arith.maximumf %24, %25 : vector<36x128xf32>
    %27 = arith.truncf %26 : vector<36x128xf32> to vector<36x128xbf16>
    %c0_22 = arith.constant 0 : index
    %c0_23 = arith.constant 0 : index
    %28 = vector.load %arg3[%c0_22, %c0_23] : memref<36x36xbf16, #tpu.memory_space<vmem>>, vector<36x36xbf16>
    %cst_24 = arith.constant dense<0.000000e+00> : vector<36x128xf32>
    %29 = tpu.matmul %28, %27, %cst_24 {dimension_numbers = #tpu.dot_dimension_numbers<[1], [0], [0], [1], [0, 0, 1, 1], [], []>} : vector<36x36xbf16>, vector<36x128xbf16>, vector<36x128xf32> -> vector<36x128xf32>
    %30 = arith.truncf %29 : vector<36x128xf32> to vector<36x128xbf16>
    %c0_25 = arith.constant 0 : index
    %c0_26 = arith.constant 0 : index
    %31 = vector.load %arg4[%c0_25, %c0_26] : memref<36x36xbf16, #tpu.memory_space<vmem>>, vector<36x36xbf16>
    %cst_27 = arith.constant dense<0.000000e+00> : vector<36x128xf32>
    %32 = tpu.matmul %31, %27, %cst_27 {dimension_numbers = #tpu.dot_dimension_numbers<[1], [0], [0], [1], [0, 0, 1, 1], [], []>} : vector<36x36xbf16>, vector<36x128xbf16>, vector<36x128xf32> -> vector<36x128xf32>
    %33 = arith.truncf %32 : vector<36x128xf32> to vector<36x128xbf16>
    %c0_28 = arith.constant 0 : index
    %c0_29 = arith.constant 0 : index
    %c0_30 = arith.constant 0 : index
    %34 = vector.load %arg11[%c0_28, %c0_29, %c0_30] : memref<3x128x128xbf16, #tpu.memory_space<vmem>>, vector<1x128x128xbf16>
    %35 = vector.shape_cast %34 : vector<1x128x128xbf16> to vector<128x128xbf16>
    %cst_31 = arith.constant dense<0.000000e+00> : vector<36x128xf32>
    %36 = tpu.matmul %30, %35, %cst_31 {dimension_numbers = #tpu.dot_dimension_numbers<[1], [0], [0], [1], [0, 0, 1, 1], [], []>} : vector<36x128xbf16>, vector<128x128xbf16>, vector<36x128xf32> -> vector<36x128xf32>
    %c1_32 = arith.constant 1 : index
    %c0_33 = arith.constant 0 : index
    %c0_34 = arith.constant 0 : index
    %37 = vector.load %arg11[%c1_32, %c0_33, %c0_34] : memref<3x128x128xbf16, #tpu.memory_space<vmem>>, vector<1x128x128xbf16>
    %38 = vector.shape_cast %37 : vector<1x128x128xbf16> to vector<128x128xbf16>
    %cst_35 = arith.constant dense<0.000000e+00> : vector<36x128xf32>
    %39 = tpu.matmul %27, %38, %cst_35 {dimension_numbers = #tpu.dot_dimension_numbers<[1], [0], [0], [1], [0, 0, 1, 1], [], []>} : vector<36x128xbf16>, vector<128x128xbf16>, vector<36x128xf32> -> vector<36x128xf32>
    %40 = arith.addf %36, %39 : vector<36x128xf32>
    %c2_36 = arith.constant 2 : index
    %c0_37 = arith.constant 0 : index
    %c0_38 = arith.constant 0 : index
    %41 = vector.load %arg11[%c2_36, %c0_37, %c0_38] : memref<3x128x128xbf16, #tpu.memory_space<vmem>>, vector<1x128x128xbf16>
    %42 = vector.shape_cast %41 : vector<1x128x128xbf16> to vector<128x128xbf16>
    %cst_39 = arith.constant dense<0.000000e+00> : vector<36x128xf32>
    %43 = tpu.matmul %33, %42, %cst_39 {dimension_numbers = #tpu.dot_dimension_numbers<[1], [0], [0], [1], [0, 0, 1, 1], [], []>} : vector<36x128xbf16>, vector<128x128xbf16>, vector<36x128xf32> -> vector<36x128xf32>
    %44 = arith.addf %40, %43 : vector<36x128xf32>
    %c0_40 = arith.constant 0 : index
    %c0_41 = arith.constant 0 : index
    %45 = vector.load %arg12[%c0_40, %c0_41] : memref<1x128xf32, #tpu.memory_space<vmem>>, vector<1x128xf32>
    %46 = vector.broadcast %45 : vector<1x128xf32> to vector<36x128xf32>
    %47 = arith.addf %44, %46 : vector<36x128xf32>
    %cst_42 = arith.constant 0.000000e+00 : f32
    %48 = vector.broadcast %cst_42 : f32 to vector<36x128xf32>
    %49 = arith.maximumf %47, %48 : vector<36x128xf32>
    %50 = arith.truncf %49 : vector<36x128xf32> to vector<36x128xbf16>
    %c0_43 = arith.constant 0 : index
    %c0_44 = arith.constant 0 : index
    %51 = vector.load %arg13[%c0_43, %c0_44] : memref<20x36xbf16, #tpu.memory_space<vmem>>, vector<20x36xbf16>
    %cst_45 = arith.constant dense<0.000000e+00> : vector<20x128xf32>
    %52 = tpu.matmul %51, %50, %cst_45 {dimension_numbers = #tpu.dot_dimension_numbers<[1], [0], [0], [1], [0, 0, 1, 1], [], []>} : vector<20x36xbf16>, vector<36x128xbf16>, vector<20x128xf32> -> vector<20x128xf32>
    %c0_46 = arith.constant 0 : index
    %c0_47 = arith.constant 0 : index
    %53 = vector.load %arg14[%c0_46, %c0_47] : memref<20x36xbf16, #tpu.memory_space<vmem>>, vector<20x36xbf16>
    %cst_48 = arith.constant dense<0.000000e+00> : vector<20x128xf32>
    %54 = tpu.matmul %53, %50, %cst_48 {dimension_numbers = #tpu.dot_dimension_numbers<[1], [0], [0], [1], [0, 0, 1, 1], [], []>} : vector<20x36xbf16>, vector<36x128xbf16>, vector<20x128xf32> -> vector<20x128xf32>
    %55 = arith.maximumf %52, %54 : vector<20x128xf32>
    %56 = arith.truncf %55 : vector<20x128xf32> to vector<20x128xbf16>
    %c0_49 = arith.constant 0 : index
    %c0_50 = arith.constant 0 : index
    %57 = vector.load %arg15[%c0_49, %c0_50] : memref<128x64xbf16, #tpu.memory_space<vmem>>, vector<128x64xbf16>
    %cst_51 = arith.constant dense<0.000000e+00> : vector<20x64xf32>
    %58 = tpu.matmul %56, %57, %cst_51 {dimension_numbers = #tpu.dot_dimension_numbers<[1], [0], [0], [1], [0, 0, 1, 1], [], []>} : vector<20x128xbf16>, vector<128x64xbf16>, vector<20x64xf32> -> vector<20x64xf32>
    %c0_52 = arith.constant 0 : index
    %c0_53 = arith.constant 0 : index
    %59 = vector.load %arg16[%c0_52, %c0_53] : memref<128x64xbf16, #tpu.memory_space<vmem>>, vector<128x64xbf16>
    %cst_54 = arith.constant dense<0.000000e+00> : vector<20x64xf32>
    %60 = tpu.matmul %56, %59, %cst_54 {dimension_numbers = #tpu.dot_dimension_numbers<[1], [0], [0], [1], [0, 0, 1, 1], [], []>} : vector<20x128xbf16>, vector<128x64xbf16>, vector<20x64xf32> -> vector<20x64xf32>
    %61 = arith.maximumf %58, %60 : vector<20x64xf32>
    %62 = arith.truncf %61 : vector<20x64xf32> to vector<20x64xbf16>
    %c0_55 = arith.constant 0 : index
    %c0_56 = arith.constant 0 : index
    %63 = vector.load %arg5[%c0_55, %c0_56] : memref<20x20xbf16, #tpu.memory_space<vmem>>, vector<20x20xbf16>
    %cst_57 = arith.constant dense<0.000000e+00> : vector<20x64xf32>
    %64 = tpu.matmul %63, %62, %cst_57 {dimension_numbers = #tpu.dot_dimension_numbers<[1], [0], [0], [1], [0, 0, 1, 1], [], []>} : vector<20x20xbf16>, vector<20x64xbf16>, vector<20x64xf32> -> vector<20x64xf32>
    %65 = arith.truncf %64 : vector<20x64xf32> to vector<20x64xbf16>
    %c0_58 = arith.constant 0 : index
    %c0_59 = arith.constant 0 : index
    %66 = vector.load %arg6[%c0_58, %c0_59] : memref<20x20xbf16, #tpu.memory_space<vmem>>, vector<20x20xbf16>
    %cst_60 = arith.constant dense<0.000000e+00> : vector<20x64xf32>
    %67 = tpu.matmul %66, %62, %cst_60 {dimension_numbers = #tpu.dot_dimension_numbers<[1], [0], [0], [1], [0, 0, 1, 1], [], []>} : vector<20x20xbf16>, vector<20x64xbf16>, vector<20x64xf32> -> vector<20x64xf32>
    %68 = arith.truncf %67 : vector<20x64xf32> to vector<20x64xbf16>
    %c0_61 = arith.constant 0 : index
    %c0_62 = arith.constant 0 : index
    %c0_63 = arith.constant 0 : index
    %69 = vector.load %arg17[%c0_61, %c0_62, %c0_63] : memref<3x64x128xbf16, #tpu.memory_space<vmem>>, vector<1x64x128xbf16>
    %70 = vector.shape_cast %69 : vector<1x64x128xbf16> to vector<64x128xbf16>
    %cst_64 = arith.constant dense<0.000000e+00> : vector<20x128xf32>
    %71 = tpu.matmul %65, %70, %cst_64 {dimension_numbers = #tpu.dot_dimension_numbers<[1], [0], [0], [1], [0, 0, 1, 1], [], []>} : vector<20x64xbf16>, vector<64x128xbf16>, vector<20x128xf32> -> vector<20x128xf32>
    %c1_65 = arith.constant 1 : index
    %c0_66 = arith.constant 0 : index
    %c0_67 = arith.constant 0 : index
    %72 = vector.load %arg17[%c1_65, %c0_66, %c0_67] : memref<3x64x128xbf16, #tpu.memory_space<vmem>>, vector<1x64x128xbf16>
    %73 = vector.shape_cast %72 : vector<1x64x128xbf16> to vector<64x128xbf16>
    %cst_68 = arith.constant dense<0.000000e+00> : vector<20x128xf32>
    %74 = tpu.matmul %62, %73, %cst_68 {dimension_numbers = #tpu.dot_dimension_numbers<[1], [0], [0], [1], [0, 0, 1, 1], [], []>} : vector<20x64xbf16>, vector<64x128xbf16>, vector<20x128xf32> -> vector<20x128xf32>
    %75 = arith.addf %71, %74 : vector<20x128xf32>
    %c2_69 = arith.constant 2 : index
    %c0_70 = arith.constant 0 : index
    %c0_71 = arith.constant 0 : index
    %76 = vector.load %arg17[%c2_69, %c0_70, %c0_71] : memref<3x64x128xbf16, #tpu.memory_space<vmem>>, vector<1x64x128xbf16>
    %77 = vector.shape_cast %76 : vector<1x64x128xbf16> to vector<64x128xbf16>
    %cst_72 = arith.constant dense<0.000000e+00> : vector<20x128xf32>
    %78 = tpu.matmul %68, %77, %cst_72 {dimension_numbers = #tpu.dot_dimension_numbers<[1], [0], [0], [1], [0, 0, 1, 1], [], []>} : vector<20x64xbf16>, vector<64x128xbf16>, vector<20x128xf32> -> vector<20x128xf32>
    %79 = arith.addf %75, %78 : vector<20x128xf32>
    %c0_73 = arith.constant 0 : index
    %c0_74 = arith.constant 0 : index
    %80 = vector.load %arg18[%c0_73, %c0_74] : memref<1x128xf32, #tpu.memory_space<vmem>>, vector<1x128xf32>
    %81 = vector.broadcast %80 : vector<1x128xf32> to vector<20x128xf32>
    %82 = arith.addf %79, %81 : vector<20x128xf32>
    %cst_75 = arith.constant 0.000000e+00 : f32
    %83 = vector.broadcast %cst_75 : f32 to vector<20x128xf32>
    %84 = arith.maximumf %82, %83 : vector<20x128xf32>
    %85 = arith.truncf %84 : vector<20x128xf32> to vector<20x128xbf16>
    %c0_76 = arith.constant 0 : index
    %c0_77 = arith.constant 0 : index
    %86 = vector.load %arg5[%c0_76, %c0_77] : memref<20x20xbf16, #tpu.memory_space<vmem>>, vector<20x20xbf16>
    %cst_78 = arith.constant dense<0.000000e+00> : vector<20x128xf32>
    %87 = tpu.matmul %86, %85, %cst_78 {dimension_numbers = #tpu.dot_dimension_numbers<[1], [0], [0], [1], [0, 0, 1, 1], [], []>} : vector<20x20xbf16>, vector<20x128xbf16>, vector<20x128xf32> -> vector<20x128xf32>
    %88 = arith.truncf %87 : vector<20x128xf32> to vector<20x128xbf16>
    %c0_79 = arith.constant 0 : index
    %c0_80 = arith.constant 0 : index
    %89 = vector.load %arg6[%c0_79, %c0_80] : memref<20x20xbf16, #tpu.memory_space<vmem>>, vector<20x20xbf16>
    %cst_81 = arith.constant dense<0.000000e+00> : vector<20x128xf32>
    %90 = tpu.matmul %89, %85, %cst_81 {dimension_numbers = #tpu.dot_dimension_numbers<[1], [0], [0], [1], [0, 0, 1, 1], [], []>} : vector<20x20xbf16>, vector<20x128xbf16>, vector<20x128xf32> -> vector<20x128xf32>
    %91 = arith.truncf %90 : vector<20x128xf32> to vector<20x128xbf16>
    %c0_82 = arith.constant 0 : index
    %c0_83 = arith.constant 0 : index
    %c0_84 = arith.constant 0 : index
    %92 = vector.load %arg19[%c0_82, %c0_83, %c0_84] : memref<3x128x128xbf16, #tpu.memory_space<vmem>>, vector<1x128x128xbf16>
    %93 = vector.shape_cast %92 : vector<1x128x128xbf16> to vector<128x128xbf16>
    %cst_85 = arith.constant dense<0.000000e+00> : vector<20x128xf32>
    %94 = tpu.matmul %88, %93, %cst_85 {dimension_numbers = #tpu.dot_dimension_numbers<[1], [0], [0], [1], [0, 0, 1, 1], [], []>} : vector<20x128xbf16>, vector<128x128xbf16>, vector<20x128xf32> -> vector<20x128xf32>
    %c1_86 = arith.constant 1 : index
    %c0_87 = arith.constant 0 : index
    %c0_88 = arith.constant 0 : index
    %95 = vector.load %arg19[%c1_86, %c0_87, %c0_88] : memref<3x128x128xbf16, #tpu.memory_space<vmem>>, vector<1x128x128xbf16>
    %96 = vector.shape_cast %95 : vector<1x128x128xbf16> to vector<128x128xbf16>
    %cst_89 = arith.constant dense<0.000000e+00> : vector<20x128xf32>
    %97 = tpu.matmul %85, %96, %cst_89 {dimension_numbers = #tpu.dot_dimension_numbers<[1], [0], [0], [1], [0, 0, 1, 1], [], []>} : vector<20x128xbf16>, vector<128x128xbf16>, vector<20x128xf32> -> vector<20x128xf32>
    %98 = arith.addf %94, %97 : vector<20x128xf32>
    %c2_90 = arith.constant 2 : index
    %c0_91 = arith.constant 0 : index
    %c0_92 = arith.constant 0 : index
    %99 = vector.load %arg19[%c2_90, %c0_91, %c0_92] : memref<3x128x128xbf16, #tpu.memory_space<vmem>>, vector<1x128x128xbf16>
    %100 = vector.shape_cast %99 : vector<1x128x128xbf16> to vector<128x128xbf16>
    %cst_93 = arith.constant dense<0.000000e+00> : vector<20x128xf32>
    %101 = tpu.matmul %91, %100, %cst_93 {dimension_numbers = #tpu.dot_dimension_numbers<[1], [0], [0], [1], [0, 0, 1, 1], [], []>} : vector<20x128xbf16>, vector<128x128xbf16>, vector<20x128xf32> -> vector<20x128xf32>
    %102 = arith.addf %98, %101 : vector<20x128xf32>
    %c0_94 = arith.constant 0 : index
    %c0_95 = arith.constant 0 : index
    %103 = vector.load %arg20[%c0_94, %c0_95] : memref<1x128xf32, #tpu.memory_space<vmem>>, vector<1x128xf32>
    %104 = vector.broadcast %103 : vector<1x128xf32> to vector<20x128xf32>
    %105 = arith.addf %102, %104 : vector<20x128xf32>
    %cst_96 = arith.constant 0.000000e+00 : f32
    %106 = vector.broadcast %cst_96 : f32 to vector<20x128xf32>
    %107 = arith.maximumf %105, %106 : vector<20x128xf32>
    %108 = arith.truncf %107 : vector<20x128xf32> to vector<20x128xbf16>
    %c0_97 = arith.constant 0 : index
    %c0_98 = arith.constant 0 : index
    %109 = vector.load %arg21[%c0_97, %c0_98] : memref<12x20xbf16, #tpu.memory_space<vmem>>, vector<12x20xbf16>
    %cst_99 = arith.constant dense<0.000000e+00> : vector<12x128xf32>
    %110 = tpu.matmul %109, %108, %cst_99 {dimension_numbers = #tpu.dot_dimension_numbers<[1], [0], [0], [1], [0, 0, 1, 1], [], []>} : vector<12x20xbf16>, vector<20x128xbf16>, vector<12x128xf32> -> vector<12x128xf32>
    %c0_100 = arith.constant 0 : index
    %c0_101 = arith.constant 0 : index
    %111 = vector.load %arg22[%c0_100, %c0_101] : memref<12x20xbf16, #tpu.memory_space<vmem>>, vector<12x20xbf16>
    %cst_102 = arith.constant dense<0.000000e+00> : vector<12x128xf32>
    %112 = tpu.matmul %111, %108, %cst_102 {dimension_numbers = #tpu.dot_dimension_numbers<[1], [0], [0], [1], [0, 0, 1, 1], [], []>} : vector<12x20xbf16>, vector<20x128xbf16>, vector<12x128xf32> -> vector<12x128xf32>
    %113 = arith.maximumf %110, %112 : vector<12x128xf32>
    %114 = arith.truncf %113 : vector<12x128xf32> to vector<12x128xbf16>
    %c0_103 = arith.constant 0 : index
    %c0_104 = arith.constant 0 : index
    %115 = vector.load %arg23[%c0_103, %c0_104] : memref<128x64xbf16, #tpu.memory_space<vmem>>, vector<128x64xbf16>
    %cst_105 = arith.constant dense<0.000000e+00> : vector<12x64xf32>
    %116 = tpu.matmul %114, %115, %cst_105 {dimension_numbers = #tpu.dot_dimension_numbers<[1], [0], [0], [1], [0, 0, 1, 1], [], []>} : vector<12x128xbf16>, vector<128x64xbf16>, vector<12x64xf32> -> vector<12x64xf32>
    %c0_106 = arith.constant 0 : index
    %c0_107 = arith.constant 0 : index
    %117 = vector.load %arg24[%c0_106, %c0_107] : memref<128x64xbf16, #tpu.memory_space<vmem>>, vector<128x64xbf16>
    %cst_108 = arith.constant dense<0.000000e+00> : vector<12x64xf32>
    %118 = tpu.matmul %114, %117, %cst_108 {dimension_numbers = #tpu.dot_dimension_numbers<[1], [0], [0], [1], [0, 0, 1, 1], [], []>} : vector<12x128xbf16>, vector<128x64xbf16>, vector<12x64xf32> -> vector<12x64xf32>
    %119 = arith.maximumf %116, %118 : vector<12x64xf32>
    %120 = arith.truncf %119 : vector<12x64xf32> to vector<12x64xbf16>
    %c0_109 = arith.constant 0 : index
    %c0_110 = arith.constant 0 : index
    %121 = vector.load %arg7[%c0_109, %c0_110] : memref<12x12xbf16, #tpu.memory_space<vmem>>, vector<12x12xbf16>
    %cst_111 = arith.constant dense<0.000000e+00> : vector<12x64xf32>
    %122 = tpu.matmul %121, %120, %cst_111 {dimension_numbers = #tpu.dot_dimension_numbers<[1], [0], [0], [1], [0, 0, 1, 1], [], []>} : vector<12x12xbf16>, vector<12x64xbf16>, vector<12x64xf32> -> vector<12x64xf32>
    %123 = arith.truncf %122 : vector<12x64xf32> to vector<12x64xbf16>
    %c0_112 = arith.constant 0 : index
    %c0_113 = arith.constant 0 : index
    %124 = vector.load %arg8[%c0_112, %c0_113] : memref<12x12xbf16, #tpu.memory_space<vmem>>, vector<12x12xbf16>
    %cst_114 = arith.constant dense<0.000000e+00> : vector<12x64xf32>
    %125 = tpu.matmul %124, %120, %cst_114 {dimension_numbers = #tpu.dot_dimension_numbers<[1], [0], [0], [1], [0, 0, 1, 1], [], []>} : vector<12x12xbf16>, vector<12x64xbf16>, vector<12x64xf32> -> vector<12x64xf32>
    %126 = arith.truncf %125 : vector<12x64xf32> to vector<12x64xbf16>
    %c0_115 = arith.constant 0 : index
    %c0_116 = arith.constant 0 : index
    %c0_117 = arith.constant 0 : index
    %127 = vector.load %arg25[%c0_115, %c0_116, %c0_117] : memref<3x64x128xbf16, #tpu.memory_space<vmem>>, vector<1x64x128xbf16>
    %128 = vector.shape_cast %127 : vector<1x64x128xbf16> to vector<64x128xbf16>
    %cst_118 = arith.constant dense<0.000000e+00> : vector<12x128xf32>
    %129 = tpu.matmul %123, %128, %cst_118 {dimension_numbers = #tpu.dot_dimension_numbers<[1], [0], [0], [1], [0, 0, 1, 1], [], []>} : vector<12x64xbf16>, vector<64x128xbf16>, vector<12x128xf32> -> vector<12x128xf32>
    %c1_119 = arith.constant 1 : index
    %c0_120 = arith.constant 0 : index
    %c0_121 = arith.constant 0 : index
    %130 = vector.load %arg25[%c1_119, %c0_120, %c0_121] : memref<3x64x128xbf16, #tpu.memory_space<vmem>>, vector<1x64x128xbf16>
    %131 = vector.shape_cast %130 : vector<1x64x128xbf16> to vector<64x128xbf16>
    %cst_122 = arith.constant dense<0.000000e+00> : vector<12x128xf32>
    %132 = tpu.matmul %120, %131, %cst_122 {dimension_numbers = #tpu.dot_dimension_numbers<[1], [0], [0], [1], [0, 0, 1, 1], [], []>} : vector<12x64xbf16>, vector<64x128xbf16>, vector<12x128xf32> -> vector<12x128xf32>
    %133 = arith.addf %129, %132 : vector<12x128xf32>
    %c2_123 = arith.constant 2 : index
    %c0_124 = arith.constant 0 : index
    %c0_125 = arith.constant 0 : index
    %134 = vector.load %arg25[%c2_123, %c0_124, %c0_125] : memref<3x64x128xbf16, #tpu.memory_space<vmem>>, vector<1x64x128xbf16>
    %135 = vector.shape_cast %134 : vector<1x64x128xbf16> to vector<64x128xbf16>
    %cst_126 = arith.constant dense<0.000000e+00> : vector<12x128xf32>
    %136 = tpu.matmul %126, %135, %cst_126 {dimension_numbers = #tpu.dot_dimension_numbers<[1], [0], [0], [1], [0, 0, 1, 1], [], []>} : vector<12x64xbf16>, vector<64x128xbf16>, vector<12x128xf32> -> vector<12x128xf32>
    %137 = arith.addf %133, %136 : vector<12x128xf32>
    %c0_127 = arith.constant 0 : index
    %c0_128 = arith.constant 0 : index
    %138 = vector.load %arg26[%c0_127, %c0_128] : memref<1x128xf32, #tpu.memory_space<vmem>>, vector<1x128xf32>
    %139 = vector.broadcast %138 : vector<1x128xf32> to vector<12x128xf32>
    %140 = arith.addf %137, %139 : vector<12x128xf32>
    %cst_129 = arith.constant 0.000000e+00 : f32
    %141 = vector.broadcast %cst_129 : f32 to vector<12x128xf32>
    %142 = arith.maximumf %140, %141 : vector<12x128xf32>
    %143 = arith.truncf %142 : vector<12x128xf32> to vector<12x128xbf16>
    %c0_130 = arith.constant 0 : index
    %c0_131 = arith.constant 0 : index
    %144 = vector.load %arg7[%c0_130, %c0_131] : memref<12x12xbf16, #tpu.memory_space<vmem>>, vector<12x12xbf16>
    %cst_132 = arith.constant dense<0.000000e+00> : vector<12x128xf32>
    %145 = tpu.matmul %144, %143, %cst_132 {dimension_numbers = #tpu.dot_dimension_numbers<[1], [0], [0], [1], [0, 0, 1, 1], [], []>} : vector<12x12xbf16>, vector<12x128xbf16>, vector<12x128xf32> -> vector<12x128xf32>
    %146 = arith.truncf %145 : vector<12x128xf32> to vector<12x128xbf16>
    %c0_133 = arith.constant 0 : index
    %c0_134 = arith.constant 0 : index
    %147 = vector.load %arg8[%c0_133, %c0_134] : memref<12x12xbf16, #tpu.memory_space<vmem>>, vector<12x12xbf16>
    %cst_135 = arith.constant dense<0.000000e+00> : vector<12x128xf32>
    %148 = tpu.matmul %147, %143, %cst_135 {dimension_numbers = #tpu.dot_dimension_numbers<[1], [0], [0], [1], [0, 0, 1, 1], [], []>} : vector<12x12xbf16>, vector<12x128xbf16>, vector<12x128xf32> -> vector<12x128xf32>
    %149 = arith.truncf %148 : vector<12x128xf32> to vector<12x128xbf16>
    %c0_136 = arith.constant 0 : index
    %c0_137 = arith.constant 0 : index
    %c0_138 = arith.constant 0 : index
    %150 = vector.load %arg27[%c0_136, %c0_137, %c0_138] : memref<3x128x128xbf16, #tpu.memory_space<vmem>>, vector<1x128x128xbf16>
    %151 = vector.shape_cast %150 : vector<1x128x128xbf16> to vector<128x128xbf16>
    %cst_139 = arith.constant dense<0.000000e+00> : vector<12x128xf32>
    %152 = tpu.matmul %146, %151, %cst_139 {dimension_numbers = #tpu.dot_dimension_numbers<[1], [0], [0], [1], [0, 0, 1, 1], [], []>} : vector<12x128xbf16>, vector<128x128xbf16>, vector<12x128xf32> -> vector<12x128xf32>
    %c1_140 = arith.constant 1 : index
    %c0_141 = arith.constant 0 : index
    %c0_142 = arith.constant 0 : index
    %153 = vector.load %arg27[%c1_140, %c0_141, %c0_142] : memref<3x128x128xbf16, #tpu.memory_space<vmem>>, vector<1x128x128xbf16>
    %154 = vector.shape_cast %153 : vector<1x128x128xbf16> to vector<128x128xbf16>
    %cst_143 = arith.constant dense<0.000000e+00> : vector<12x128xf32>
    %155 = tpu.matmul %143, %154, %cst_143 {dimension_numbers = #tpu.dot_dimension_numbers<[1], [0], [0], [1], [0, 0, 1, 1], [], []>} : vector<12x128xbf16>, vector<128x128xbf16>, vector<12x128xf32> -> vector<12x128xf32>
    %156 = arith.addf %152, %155 : vector<12x128xf32>
    %c2_144 = arith.constant 2 : index
    %c0_145 = arith.constant 0 : index
    %c0_146 = arith.constant 0 : index
    %157 = vector.load %arg27[%c2_144, %c0_145, %c0_146] : memref<3x128x128xbf16, #tpu.memory_space<vmem>>, vector<1x128x128xbf16>
    %158 = vector.shape_cast %157 : vector<1x128x128xbf16> to vector<128x128xbf16>
    %cst_147 = arith.constant dense<0.000000e+00> : vector<12x128xf32>
    %159 = tpu.matmul %149, %158, %cst_147 {dimension_numbers = #tpu.dot_dimension_numbers<[1], [0], [0], [1], [0, 0, 1, 1], [], []>} : vector<12x128xbf16>, vector<128x128xbf16>, vector<12x128xf32> -> vector<12x128xf32>
    %160 = arith.addf %156, %159 : vector<12x128xf32>
    %c0_148 = arith.constant 0 : index
    %c0_149 = arith.constant 0 : index
    %161 = vector.load %arg28[%c0_148, %c0_149] : memref<1x128xf32, #tpu.memory_space<vmem>>, vector<1x128xf32>
    %162 = vector.broadcast %161 : vector<1x128xf32> to vector<12x128xf32>
    %163 = arith.addf %160, %162 : vector<12x128xf32>
    %cst_150 = arith.constant 0.000000e+00 : f32
    %164 = vector.broadcast %cst_150 : f32 to vector<12x128xf32>
    %165 = arith.maximumf %163, %164 : vector<12x128xf32>
    %166 = arith.truncf %165 : vector<12x128xf32> to vector<12x128xbf16>
    %c0_151 = arith.constant 0 : index
    %c0_152 = arith.constant 0 : index
    %c0_153 = arith.constant 0 : index
    %167 = vector.load %arg29[%c0_151, %c0_152, %c0_153] : memref<2x128x128xbf16, #tpu.memory_space<vmem>>, vector<1x128x128xbf16>
    %168 = vector.shape_cast %167 : vector<1x128x128xbf16> to vector<128x128xbf16>
    %cst_154 = arith.constant dense<0.000000e+00> : vector<12x128xf32>
    %169 = tpu.matmul %166, %168, %cst_154 {dimension_numbers = #tpu.dot_dimension_numbers<[1], [0], [0], [1], [0, 0, 1, 1], [], []>} : vector<12x128xbf16>, vector<128x128xbf16>, vector<12x128xf32> -> vector<12x128xf32>
    %170 = arith.truncf %169 : vector<12x128xf32> to vector<12x128xbf16>
    %c1_155 = arith.constant 1 : index
    %c0_156 = arith.constant 0 : index
    %c0_157 = arith.constant 0 : index
    %171 = vector.load %arg29[%c1_155, %c0_156, %c0_157] : memref<2x128x128xbf16, #tpu.memory_space<vmem>>, vector<1x128x128xbf16>
    %172 = vector.shape_cast %171 : vector<1x128x128xbf16> to vector<128x128xbf16>
    %cst_158 = arith.constant dense<0.000000e+00> : vector<12x128xf32>
    %173 = tpu.matmul %166, %172, %cst_158 {dimension_numbers = #tpu.dot_dimension_numbers<[1], [0], [0], [1], [0, 0, 1, 1], [], []>} : vector<12x128xbf16>, vector<128x128xbf16>, vector<12x128xf32> -> vector<12x128xf32>
    %174 = arith.truncf %173 : vector<12x128xf32> to vector<12x128xbf16>
    %c0_159 = arith.constant 0 : index
    %c0_160 = arith.constant 0 : index
    %175 = vector.load %arg31[%c0_159, %c0_160] : memref<20x12xbf16, #tpu.memory_space<vmem>>, vector<20x12xbf16>
    %cst_161 = arith.constant dense<0.000000e+00> : vector<20x128xf32>
    %176 = tpu.matmul %175, %170, %cst_161 {dimension_numbers = #tpu.dot_dimension_numbers<[1], [0], [0], [1], [0, 0, 1, 1], [], []>} : vector<20x12xbf16>, vector<12x128xbf16>, vector<20x128xf32> -> vector<20x128xf32>
    %c0_162 = arith.constant 0 : index
    %c0_163 = arith.constant 0 : index
    %177 = vector.load %arg32[%c0_162, %c0_163] : memref<20x12xbf16, #tpu.memory_space<vmem>>, vector<20x12xbf16>
    %cst_164 = arith.constant dense<0.000000e+00> : vector<20x128xf32>
    %178 = tpu.matmul %177, %174, %cst_164 {dimension_numbers = #tpu.dot_dimension_numbers<[1], [0], [0], [1], [0, 0, 1, 1], [], []>} : vector<20x12xbf16>, vector<12x128xbf16>, vector<20x128xf32> -> vector<20x128xf32>
    %179 = arith.addf %176, %178 : vector<20x128xf32>
    %c0_165 = arith.constant 0 : index
    %c0_166 = arith.constant 0 : index
    %180 = vector.load %arg30[%c0_165, %c0_166] : memref<1x128xf32, #tpu.memory_space<vmem>>, vector<1x128xf32>
    %181 = vector.broadcast %180 : vector<1x128xf32> to vector<20x128xf32>
    %182 = arith.addf %179, %181 : vector<20x128xf32>
    %183 = arith.truncf %182 : vector<20x128xf32> to vector<20x128xbf16>
    %184 = tpu.concatenate %183, %108 in 1 : vector<20x128xbf16>, vector<20x128xbf16> -> vector<20x256xbf16>
    %c0_167 = arith.constant 0 : index
    %c0_168 = arith.constant 0 : index
    %185 = vector.load %arg5[%c0_167, %c0_168] : memref<20x20xbf16, #tpu.memory_space<vmem>>, vector<20x20xbf16>
    %cst_169 = arith.constant dense<0.000000e+00> : vector<20x256xf32>
    %186 = tpu.matmul %185, %184, %cst_169 {dimension_numbers = #tpu.dot_dimension_numbers<[1], [0], [0], [1], [0, 0, 1, 1], [], []>} : vector<20x20xbf16>, vector<20x256xbf16>, vector<20x256xf32> -> vector<20x256xf32>
    %187 = arith.truncf %186 : vector<20x256xf32> to vector<20x256xbf16>
    %c0_170 = arith.constant 0 : index
    %c0_171 = arith.constant 0 : index
    %188 = vector.load %arg6[%c0_170, %c0_171] : memref<20x20xbf16, #tpu.memory_space<vmem>>, vector<20x20xbf16>
    %cst_172 = arith.constant dense<0.000000e+00> : vector<20x256xf32>
    %189 = tpu.matmul %188, %184, %cst_172 {dimension_numbers = #tpu.dot_dimension_numbers<[1], [0], [0], [1], [0, 0, 1, 1], [], []>} : vector<20x20xbf16>, vector<20x256xbf16>, vector<20x256xf32> -> vector<20x256xf32>
    %190 = arith.truncf %189 : vector<20x256xf32> to vector<20x256xbf16>
    %c0_173 = arith.constant 0 : index
    %c0_174 = arith.constant 0 : index
    %c0_175 = arith.constant 0 : index
    %191 = vector.load %arg33[%c0_173, %c0_174, %c0_175] : memref<3x256x128xbf16, #tpu.memory_space<vmem>>, vector<1x256x128xbf16>
    %192 = vector.shape_cast %191 : vector<1x256x128xbf16> to vector<256x128xbf16>
    %cst_176 = arith.constant dense<0.000000e+00> : vector<20x128xf32>
    %193 = tpu.matmul %187, %192, %cst_176 {dimension_numbers = #tpu.dot_dimension_numbers<[1], [0], [0], [1], [0, 0, 1, 1], [], []>} : vector<20x256xbf16>, vector<256x128xbf16>, vector<20x128xf32> -> vector<20x128xf32>
    %c1_177 = arith.constant 1 : index
    %c0_178 = arith.constant 0 : index
    %c0_179 = arith.constant 0 : index
    %194 = vector.load %arg33[%c1_177, %c0_178, %c0_179] : memref<3x256x128xbf16, #tpu.memory_space<vmem>>, vector<1x256x128xbf16>
    %195 = vector.shape_cast %194 : vector<1x256x128xbf16> to vector<256x128xbf16>
    %cst_180 = arith.constant dense<0.000000e+00> : vector<20x128xf32>
    %196 = tpu.matmul %184, %195, %cst_180 {dimension_numbers = #tpu.dot_dimension_numbers<[1], [0], [0], [1], [0, 0, 1, 1], [], []>} : vector<20x256xbf16>, vector<256x128xbf16>, vector<20x128xf32> -> vector<20x128xf32>
    %197 = arith.addf %193, %196 : vector<20x128xf32>
    %c2_181 = arith.constant 2 : index
    %c0_182 = arith.constant 0 : index
    %c0_183 = arith.constant 0 : index
    %198 = vector.load %arg33[%c2_181, %c0_182, %c0_183] : memref<3x256x128xbf16, #tpu.memory_space<vmem>>, vector<1x256x128xbf16>
    %199 = vector.shape_cast %198 : vector<1x256x128xbf16> to vector<256x128xbf16>
    %cst_184 = arith.constant dense<0.000000e+00> : vector<20x128xf32>
    %200 = tpu.matmul %190, %199, %cst_184 {dimension_numbers = #tpu.dot_dimension_numbers<[1], [0], [0], [1], [0, 0, 1, 1], [], []>} : vector<20x256xbf16>, vector<256x128xbf16>, vector<20x128xf32> -> vector<20x128xf32>
    %201 = arith.addf %197, %200 : vector<20x128xf32>
    %c0_185 = arith.constant 0 : index
    %c0_186 = arith.constant 0 : index
    %202 = vector.load %arg34[%c0_185, %c0_186] : memref<1x128xf32, #tpu.memory_space<vmem>>, vector<1x128xf32>
    %203 = vector.broadcast %202 : vector<1x128xf32> to vector<20x128xf32>
    %204 = arith.addf %201, %203 : vector<20x128xf32>
    %cst_187 = arith.constant 0.000000e+00 : f32
    %205 = vector.broadcast %cst_187 : f32 to vector<20x128xf32>
    %206 = arith.maximumf %204, %205 : vector<20x128xf32>
    %207 = arith.truncf %206 : vector<20x128xf32> to vector<20x128xbf16>
    %c0_188 = arith.constant 0 : index
    %c0_189 = arith.constant 0 : index
    %208 = vector.load %arg5[%c0_188, %c0_189] : memref<20x20xbf16, #tpu.memory_space<vmem>>, vector<20x20xbf16>
    %cst_190 = arith.constant dense<0.000000e+00> : vector<20x128xf32>
    %209 = tpu.matmul %208, %207, %cst_190 {dimension_numbers = #tpu.dot_dimension_numbers<[1], [0], [0], [1], [0, 0, 1, 1], [], []>} : vector<20x20xbf16>, vector<20x128xbf16>, vector<20x128xf32> -> vector<20x128xf32>
    %210 = arith.truncf %209 : vector<20x128xf32> to vector<20x128xbf16>
    %c0_191 = arith.constant 0 : index
    %c0_192 = arith.constant 0 : index
    %211 = vector.load %arg6[%c0_191, %c0_192] : memref<20x20xbf16, #tpu.memory_space<vmem>>, vector<20x20xbf16>
    %cst_193 = arith.constant dense<0.000000e+00> : vector<20x128xf32>
    %212 = tpu.matmul %211, %207, %cst_193 {dimension_numbers = #tpu.dot_dimension_numbers<[1], [0], [0], [1], [0, 0, 1, 1], [], []>} : vector<20x20xbf16>, vector<20x128xbf16>, vector<20x128xf32> -> vector<20x128xf32>
    %213 = arith.truncf %212 : vector<20x128xf32> to vector<20x128xbf16>
    %c0_194 = arith.constant 0 : index
    %c0_195 = arith.constant 0 : index
    %c0_196 = arith.constant 0 : index
    %214 = vector.load %arg35[%c0_194, %c0_195, %c0_196] : memref<3x128x128xbf16, #tpu.memory_space<vmem>>, vector<1x128x128xbf16>
    %215 = vector.shape_cast %214 : vector<1x128x128xbf16> to vector<128x128xbf16>
    %cst_197 = arith.constant dense<0.000000e+00> : vector<20x128xf32>
    %216 = tpu.matmul %210, %215, %cst_197 {dimension_numbers = #tpu.dot_dimension_numbers<[1], [0], [0], [1], [0, 0, 1, 1], [], []>} : vector<20x128xbf16>, vector<128x128xbf16>, vector<20x128xf32> -> vector<20x128xf32>
    %c1_198 = arith.constant 1 : index
    %c0_199 = arith.constant 0 : index
    %c0_200 = arith.constant 0 : index
    %217 = vector.load %arg35[%c1_198, %c0_199, %c0_200] : memref<3x128x128xbf16, #tpu.memory_space<vmem>>, vector<1x128x128xbf16>
    %218 = vector.shape_cast %217 : vector<1x128x128xbf16> to vector<128x128xbf16>
    %cst_201 = arith.constant dense<0.000000e+00> : vector<20x128xf32>
    %219 = tpu.matmul %207, %218, %cst_201 {dimension_numbers = #tpu.dot_dimension_numbers<[1], [0], [0], [1], [0, 0, 1, 1], [], []>} : vector<20x128xbf16>, vector<128x128xbf16>, vector<20x128xf32> -> vector<20x128xf32>
    %220 = arith.addf %216, %219 : vector<20x128xf32>
    %c2_202 = arith.constant 2 : index
    %c0_203 = arith.constant 0 : index
    %c0_204 = arith.constant 0 : index
    %221 = vector.load %arg35[%c2_202, %c0_203, %c0_204] : memref<3x128x128xbf16, #tpu.memory_space<vmem>>, vector<1x128x128xbf16>
    %222 = vector.shape_cast %221 : vector<1x128x128xbf16> to vector<128x128xbf16>
    %cst_205 = arith.constant dense<0.000000e+00> : vector<20x128xf32>
    %223 = tpu.matmul %213, %222, %cst_205 {dimension_numbers = #tpu.dot_dimension_numbers<[1], [0], [0], [1], [0, 0, 1, 1], [], []>} : vector<20x128xbf16>, vector<128x128xbf16>, vector<20x128xf32> -> vector<20x128xf32>
    %224 = arith.addf %220, %223 : vector<20x128xf32>
    %c0_206 = arith.constant 0 : index
    %c0_207 = arith.constant 0 : index
    %225 = vector.load %arg36[%c0_206, %c0_207] : memref<1x128xf32, #tpu.memory_space<vmem>>, vector<1x128xf32>
    %226 = vector.broadcast %225 : vector<1x128xf32> to vector<20x128xf32>
    %227 = arith.addf %224, %226 : vector<20x128xf32>
    %cst_208 = arith.constant 0.000000e+00 : f32
    %228 = vector.broadcast %cst_208 : f32 to vector<20x128xf32>
    %229 = arith.maximumf %227, %228 : vector<20x128xf32>
    %230 = arith.truncf %229 : vector<20x128xf32> to vector<20x128xbf16>
    %c0_209 = arith.constant 0 : index
    %c0_210 = arith.constant 0 : index
    %c0_211 = arith.constant 0 : index
    %231 = vector.load %arg37[%c0_209, %c0_210, %c0_211] : memref<2x128x128xbf16, #tpu.memory_space<vmem>>, vector<1x128x128xbf16>
    %232 = vector.shape_cast %231 : vector<1x128x128xbf16> to vector<128x128xbf16>
    %cst_212 = arith.constant dense<0.000000e+00> : vector<20x128xf32>
    %233 = tpu.matmul %230, %232, %cst_212 {dimension_numbers = #tpu.dot_dimension_numbers<[1], [0], [0], [1], [0, 0, 1, 1], [], []>} : vector<20x128xbf16>, vector<128x128xbf16>, vector<20x128xf32> -> vector<20x128xf32>
    %234 = arith.truncf %233 : vector<20x128xf32> to vector<20x128xbf16>
    %c1_213 = arith.constant 1 : index
    %c0_214 = arith.constant 0 : index
    %c0_215 = arith.constant 0 : index
    %235 = vector.load %arg37[%c1_213, %c0_214, %c0_215] : memref<2x128x128xbf16, #tpu.memory_space<vmem>>, vector<1x128x128xbf16>
    %236 = vector.shape_cast %235 : vector<1x128x128xbf16> to vector<128x128xbf16>
    %cst_216 = arith.constant dense<0.000000e+00> : vector<20x128xf32>
    %237 = tpu.matmul %230, %236, %cst_216 {dimension_numbers = #tpu.dot_dimension_numbers<[1], [0], [0], [1], [0, 0, 1, 1], [], []>} : vector<20x128xbf16>, vector<128x128xbf16>, vector<20x128xf32> -> vector<20x128xf32>
    %238 = arith.truncf %237 : vector<20x128xf32> to vector<20x128xbf16>
    %c0_217 = arith.constant 0 : index
    %c0_218 = arith.constant 0 : index
    %239 = vector.load %arg39[%c0_217, %c0_218] : memref<36x20xbf16, #tpu.memory_space<vmem>>, vector<36x20xbf16>
    %cst_219 = arith.constant dense<0.000000e+00> : vector<36x128xf32>
    %240 = tpu.matmul %239, %234, %cst_219 {dimension_numbers = #tpu.dot_dimension_numbers<[1], [0], [0], [1], [0, 0, 1, 1], [], []>} : vector<36x20xbf16>, vector<20x128xbf16>, vector<36x128xf32> -> vector<36x128xf32>
    %c0_220 = arith.constant 0 : index
    %c0_221 = arith.constant 0 : index
    %241 = vector.load %arg40[%c0_220, %c0_221] : memref<36x20xbf16, #tpu.memory_space<vmem>>, vector<36x20xbf16>
    %cst_222 = arith.constant dense<0.000000e+00> : vector<36x128xf32>
    %242 = tpu.matmul %241, %238, %cst_222 {dimension_numbers = #tpu.dot_dimension_numbers<[1], [0], [0], [1], [0, 0, 1, 1], [], []>} : vector<36x20xbf16>, vector<20x128xbf16>, vector<36x128xf32> -> vector<36x128xf32>
    %243 = arith.addf %240, %242 : vector<36x128xf32>
    %c0_223 = arith.constant 0 : index
    %c0_224 = arith.constant 0 : index
    %244 = vector.load %arg38[%c0_223, %c0_224] : memref<1x128xf32, #tpu.memory_space<vmem>>, vector<1x128xf32>
    %245 = vector.broadcast %244 : vector<1x128xf32> to vector<36x128xf32>
    %246 = arith.addf %243, %245 : vector<36x128xf32>
    %247 = arith.truncf %246 : vector<36x128xf32> to vector<36x128xbf16>
    %248 = tpu.concatenate %247, %50 in 1 : vector<36x128xbf16>, vector<36x128xbf16> -> vector<36x256xbf16>
    %c0_225 = arith.constant 0 : index
    %c0_226 = arith.constant 0 : index
    %249 = vector.load %arg3[%c0_225, %c0_226] : memref<36x36xbf16, #tpu.memory_space<vmem>>, vector<36x36xbf16>
    %cst_227 = arith.constant dense<0.000000e+00> : vector<36x256xf32>
    %250 = tpu.matmul %249, %248, %cst_227 {dimension_numbers = #tpu.dot_dimension_numbers<[1], [0], [0], [1], [0, 0, 1, 1], [], []>} : vector<36x36xbf16>, vector<36x256xbf16>, vector<36x256xf32> -> vector<36x256xf32>
    %251 = arith.truncf %250 : vector<36x256xf32> to vector<36x256xbf16>
    %c0_228 = arith.constant 0 : index
    %c0_229 = arith.constant 0 : index
    %252 = vector.load %arg4[%c0_228, %c0_229] : memref<36x36xbf16, #tpu.memory_space<vmem>>, vector<36x36xbf16>
    %cst_230 = arith.constant dense<0.000000e+00> : vector<36x256xf32>
    %253 = tpu.matmul %252, %248, %cst_230 {dimension_numbers = #tpu.dot_dimension_numbers<[1], [0], [0], [1], [0, 0, 1, 1], [], []>} : vector<36x36xbf16>, vector<36x256xbf16>, vector<36x256xf32> -> vector<36x256xf32>
    %254 = arith.truncf %253 : vector<36x256xf32> to vector<36x256xbf16>
    %c0_231 = arith.constant 0 : index
    %c0_232 = arith.constant 0 : index
    %c0_233 = arith.constant 0 : index
    %255 = vector.load %arg41[%c0_231, %c0_232, %c0_233] : memref<3x256x128xbf16, #tpu.memory_space<vmem>>, vector<1x256x128xbf16>
    %256 = vector.shape_cast %255 : vector<1x256x128xbf16> to vector<256x128xbf16>
    %cst_234 = arith.constant dense<0.000000e+00> : vector<36x128xf32>
    %257 = tpu.matmul %251, %256, %cst_234 {dimension_numbers = #tpu.dot_dimension_numbers<[1], [0], [0], [1], [0, 0, 1, 1], [], []>} : vector<36x256xbf16>, vector<256x128xbf16>, vector<36x128xf32> -> vector<36x128xf32>
    %c1_235 = arith.constant 1 : index
    %c0_236 = arith.constant 0 : index
    %c0_237 = arith.constant 0 : index
    %258 = vector.load %arg41[%c1_235, %c0_236, %c0_237] : memref<3x256x128xbf16, #tpu.memory_space<vmem>>, vector<1x256x128xbf16>
    %259 = vector.shape_cast %258 : vector<1x256x128xbf16> to vector<256x128xbf16>
    %cst_238 = arith.constant dense<0.000000e+00> : vector<36x128xf32>
    %260 = tpu.matmul %248, %259, %cst_238 {dimension_numbers = #tpu.dot_dimension_numbers<[1], [0], [0], [1], [0, 0, 1, 1], [], []>} : vector<36x256xbf16>, vector<256x128xbf16>, vector<36x128xf32> -> vector<36x128xf32>
    %261 = arith.addf %257, %260 : vector<36x128xf32>
    %c2_239 = arith.constant 2 : index
    %c0_240 = arith.constant 0 : index
    %c0_241 = arith.constant 0 : index
    %262 = vector.load %arg41[%c2_239, %c0_240, %c0_241] : memref<3x256x128xbf16, #tpu.memory_space<vmem>>, vector<1x256x128xbf16>
    %263 = vector.shape_cast %262 : vector<1x256x128xbf16> to vector<256x128xbf16>
    %cst_242 = arith.constant dense<0.000000e+00> : vector<36x128xf32>
    %264 = tpu.matmul %254, %263, %cst_242 {dimension_numbers = #tpu.dot_dimension_numbers<[1], [0], [0], [1], [0, 0, 1, 1], [], []>} : vector<36x256xbf16>, vector<256x128xbf16>, vector<36x128xf32> -> vector<36x128xf32>
    %265 = arith.addf %261, %264 : vector<36x128xf32>
    %c0_243 = arith.constant 0 : index
    %c0_244 = arith.constant 0 : index
    %266 = vector.load %arg42[%c0_243, %c0_244] : memref<1x128xf32, #tpu.memory_space<vmem>>, vector<1x128xf32>
    %267 = vector.broadcast %266 : vector<1x128xf32> to vector<36x128xf32>
    %268 = arith.addf %265, %267 : vector<36x128xf32>
    %cst_245 = arith.constant 0.000000e+00 : f32
    %269 = vector.broadcast %cst_245 : f32 to vector<36x128xf32>
    %270 = arith.maximumf %268, %269 : vector<36x128xf32>
    %271 = arith.truncf %270 : vector<36x128xf32> to vector<36x128xbf16>
    %c0_246 = arith.constant 0 : index
    %c0_247 = arith.constant 0 : index
    %272 = vector.load %arg3[%c0_246, %c0_247] : memref<36x36xbf16, #tpu.memory_space<vmem>>, vector<36x36xbf16>
    %cst_248 = arith.constant dense<0.000000e+00> : vector<36x128xf32>
    %273 = tpu.matmul %272, %271, %cst_248 {dimension_numbers = #tpu.dot_dimension_numbers<[1], [0], [0], [1], [0, 0, 1, 1], [], []>} : vector<36x36xbf16>, vector<36x128xbf16>, vector<36x128xf32> -> vector<36x128xf32>
    %274 = arith.truncf %273 : vector<36x128xf32> to vector<36x128xbf16>
    %c0_249 = arith.constant 0 : index
    %c0_250 = arith.constant 0 : index
    %275 = vector.load %arg4[%c0_249, %c0_250] : memref<36x36xbf16, #tpu.memory_space<vmem>>, vector<36x36xbf16>
    %cst_251 = arith.constant dense<0.000000e+00> : vector<36x128xf32>
    %276 = tpu.matmul %275, %271, %cst_251 {dimension_numbers = #tpu.dot_dimension_numbers<[1], [0], [0], [1], [0, 0, 1, 1], [], []>} : vector<36x36xbf16>, vector<36x128xbf16>, vector<36x128xf32> -> vector<36x128xf32>
    %277 = arith.truncf %276 : vector<36x128xf32> to vector<36x128xbf16>
    %c0_252 = arith.constant 0 : index
    %c0_253 = arith.constant 0 : index
    %c0_254 = arith.constant 0 : index
    %278 = vector.load %arg43[%c0_252, %c0_253, %c0_254] : memref<3x128x128xbf16, #tpu.memory_space<vmem>>, vector<1x128x128xbf16>
    %279 = vector.shape_cast %278 : vector<1x128x128xbf16> to vector<128x128xbf16>
    %cst_255 = arith.constant dense<0.000000e+00> : vector<36x128xf32>
    %280 = tpu.matmul %274, %279, %cst_255 {dimension_numbers = #tpu.dot_dimension_numbers<[1], [0], [0], [1], [0, 0, 1, 1], [], []>} : vector<36x128xbf16>, vector<128x128xbf16>, vector<36x128xf32> -> vector<36x128xf32>
    %c1_256 = arith.constant 1 : index
    %c0_257 = arith.constant 0 : index
    %c0_258 = arith.constant 0 : index
    %281 = vector.load %arg43[%c1_256, %c0_257, %c0_258] : memref<3x128x128xbf16, #tpu.memory_space<vmem>>, vector<1x128x128xbf16>
    %282 = vector.shape_cast %281 : vector<1x128x128xbf16> to vector<128x128xbf16>
    %cst_259 = arith.constant dense<0.000000e+00> : vector<36x128xf32>
    %283 = tpu.matmul %271, %282, %cst_259 {dimension_numbers = #tpu.dot_dimension_numbers<[1], [0], [0], [1], [0, 0, 1, 1], [], []>} : vector<36x128xbf16>, vector<128x128xbf16>, vector<36x128xf32> -> vector<36x128xf32>
    %284 = arith.addf %280, %283 : vector<36x128xf32>
    %c2_260 = arith.constant 2 : index
    %c0_261 = arith.constant 0 : index
    %c0_262 = arith.constant 0 : index
    %285 = vector.load %arg43[%c2_260, %c0_261, %c0_262] : memref<3x128x128xbf16, #tpu.memory_space<vmem>>, vector<1x128x128xbf16>
    %286 = vector.shape_cast %285 : vector<1x128x128xbf16> to vector<128x128xbf16>
    %cst_263 = arith.constant dense<0.000000e+00> : vector<36x128xf32>
    %287 = tpu.matmul %277, %286, %cst_263 {dimension_numbers = #tpu.dot_dimension_numbers<[1], [0], [0], [1], [0, 0, 1, 1], [], []>} : vector<36x128xbf16>, vector<128x128xbf16>, vector<36x128xf32> -> vector<36x128xf32>
    %288 = arith.addf %284, %287 : vector<36x128xf32>
    %c0_264 = arith.constant 0 : index
    %c0_265 = arith.constant 0 : index
    %289 = vector.load %arg44[%c0_264, %c0_265] : memref<1x128xf32, #tpu.memory_space<vmem>>, vector<1x128xf32>
    %290 = vector.broadcast %289 : vector<1x128xf32> to vector<36x128xf32>
    %291 = arith.addf %288, %290 : vector<36x128xf32>
    %cst_266 = arith.constant 0.000000e+00 : f32
    %292 = vector.broadcast %cst_266 : f32 to vector<36x128xf32>
    %293 = arith.maximumf %291, %292 : vector<36x128xf32>
    %294 = arith.truncf %293 : vector<36x128xf32> to vector<36x128xbf16>
    %c0_267 = arith.constant 0 : index
    %c0_268 = arith.constant 0 : index
    %295 = vector.load %arg45[%c0_267, %c0_268] : memref<32x36xbf16, #tpu.memory_space<vmem>>, vector<32x36xbf16>
    %cst_269 = arith.constant dense<0.000000e+00> : vector<32x128xf32>
    %296 = tpu.matmul %295, %294, %cst_269 {dimension_numbers = #tpu.dot_dimension_numbers<[1], [0], [0], [1], [0, 0, 1, 1], [], []>} : vector<32x36xbf16>, vector<36x128xbf16>, vector<32x128xf32> -> vector<32x128xf32>
    %297 = arith.truncf %296 : vector<32x128xf32> to vector<32x128xbf16>
    %c0_270 = arith.constant 0 : index
    %c0_271 = arith.constant 0 : index
    %298 = vector.load %arg46[%c0_270, %c0_271] : memref<128x32xbf16, #tpu.memory_space<vmem>>, vector<128x32xbf16>
    %cst_272 = arith.constant dense<0.000000e+00> : vector<32x32xf32>
    %299 = tpu.matmul %297, %298, %cst_272 {dimension_numbers = #tpu.dot_dimension_numbers<[1], [0], [0], [1], [0, 0, 1, 1], [], []>} : vector<32x128xbf16>, vector<128x32xbf16>, vector<32x32xf32> -> vector<32x32xf32>
    %c0_273 = arith.constant 0 : index
    %c0_274 = arith.constant 0 : index
    %300 = vector.load %arg47[%c0_273, %c0_274] : memref<1x32xf32, #tpu.memory_space<vmem>>, vector<1x32xf32>
    %301 = vector.broadcast %300 : vector<1x32xf32> to vector<32x32xf32>
    %302 = arith.addf %299, %301 : vector<32x32xf32>
    %c0_275 = arith.constant 0 : index
    %c0_276 = arith.constant 0 : index
    %303 = vector.load %arg48[%c0_275, %c0_276] : memref<32x32xf32, #tpu.memory_space<vmem>>, vector<32x32xf32>
    tpu.vector_store %arg48[%c0_275, %c0_276], %302 {strides = array<i32>} : memref<32x32xf32, #tpu.memory_space<vmem>>, vector<32x32xf32>,
    return
  }
  func.func @transform_0(%arg0: i32) -> (i32, i32) {
    %c0_i32 = arith.constant 0 : i32
    %c0_i32_0 = arith.constant 0 : i32
    return %arg0, %c0_i32 : i32, i32
  }
  func.func @transform_1(%arg0: i32) -> (i32, i32) {
    %c0_i32 = arith.constant 0 : i32
    %c0_i32_0 = arith.constant 0 : i32
    %c0_i32_1 = arith.constant 0 : i32
    return %c0_i32, %c0_i32_0 : i32, i32
  }
  func.func @transform_2(%arg0: i32) -> (i32, i32) {
    %c0_i32 = arith.constant 0 : i32
    %c0_i32_0 = arith.constant 0 : i32
    %c0_i32_1 = arith.constant 0 : i32
    return %c0_i32, %c0_i32_0 : i32, i32
  }
  func.func @transform_3(%arg0: i32) -> (i32, i32) {
    %c0_i32 = arith.constant 0 : i32
    %c0_i32_0 = arith.constant 0 : i32
    %c0_i32_1 = arith.constant 0 : i32
    return %c0_i32, %c0_i32_0 : i32, i32
  }
  func.func @transform_4(%arg0: i32) -> (i32, i32) {
    %c0_i32 = arith.constant 0 : i32
    %c0_i32_0 = arith.constant 0 : i32
    %c0_i32_1 = arith.constant 0 : i32
    return %c0_i32, %c0_i32_0 : i32, i32
  }
  func.func @transform_5(%arg0: i32) -> (i32, i32) {
    %c0_i32 = arith.constant 0 : i32
    %c0_i32_0 = arith.constant 0 : i32
    %c0_i32_1 = arith.constant 0 : i32
    return %c0_i32, %c0_i32_0 : i32, i32
  }
  func.func @transform_6(%arg0: i32) -> (i32, i32) {
    %c0_i32 = arith.constant 0 : i32
    %c0_i32_0 = arith.constant 0 : i32
    %c0_i32_1 = arith.constant 0 : i32
    return %c0_i32, %c0_i32_0 : i32, i32
  }
  func.func @transform_7(%arg0: i32) -> (i32, i32) {
    %c0_i32 = arith.constant 0 : i32
    %c0_i32_0 = arith.constant 0 : i32
    %c0_i32_1 = arith.constant 0 : i32
    return %c0_i32, %c0_i32_0 : i32, i32
  }
  func.func @transform_8(%arg0: i32) -> (i32, i32, i32) {
    %c0_i32 = arith.constant 0 : i32
    %c0_i32_0 = arith.constant 0 : i32
    %c0_i32_1 = arith.constant 0 : i32
    %c0_i32_2 = arith.constant 0 : i32
    return %c0_i32, %c0_i32_0, %c0_i32_1 : i32, i32, i32
  }
  func.func @transform_9(%arg0: i32) -> (i32, i32) {
    %c0_i32 = arith.constant 0 : i32
    %c0_i32_0 = arith.constant 0 : i32
    %c0_i32_1 = arith.constant 0 : i32
    return %c0_i32, %c0_i32_0 : i32, i32
  }
  func.func @transform_10(%arg0: i32) -> (i32, i32, i32) {
    %c0_i32 = arith.constant 0 : i32
    %c0_i32_0 = arith.constant 0 : i32
    %c0_i32_1 = arith.constant 0 : i32
    %c0_i32_2 = arith.constant 0 : i32
    return %c0_i32, %c0_i32_0, %c0_i32_1 : i32, i32, i32
  }
  func.func @transform_11(%arg0: i32) -> (i32, i32) {
    %c0_i32 = arith.constant 0 : i32
    %c0_i32_0 = arith.constant 0 : i32
    %c0_i32_1 = arith.constant 0 : i32
    return %c0_i32, %c0_i32_0 : i32, i32
  }
  func.func @transform_12(%arg0: i32) -> (i32, i32) {
    %c0_i32 = arith.constant 0 : i32
    %c0_i32_0 = arith.constant 0 : i32
    %c0_i32_1 = arith.constant 0 : i32
    return %c0_i32, %c0_i32_0 : i32, i32
  }
  func.func @transform_13(%arg0: i32) -> (i32, i32) {
    %c0_i32 = arith.constant 0 : i32
    %c0_i32_0 = arith.constant 0 : i32
    %c0_i32_1 = arith.constant 0 : i32
    return %c0_i32, %c0_i32_0 : i32, i32
  }
  func.func @transform_14(%arg0: i32) -> (i32, i32) {
    %c0_i32 = arith.constant 0 : i32
    %c0_i32_0 = arith.constant 0 : i32
    %c0_i32_1 = arith.constant 0 : i32
    return %c0_i32, %c0_i32_0 : i32, i32
  }
  func.func @transform_15(%arg0: i32) -> (i32, i32) {
    %c0_i32 = arith.constant 0 : i32
    %c0_i32_0 = arith.constant 0 : i32
    %c0_i32_1 = arith.constant 0 : i32
    return %c0_i32, %c0_i32_0 : i32, i32
  }
  func.func @transform_16(%arg0: i32) -> (i32, i32, i32) {
    %c0_i32 = arith.constant 0 : i32
    %c0_i32_0 = arith.constant 0 : i32
    %c0_i32_1 = arith.constant 0 : i32
    %c0_i32_2 = arith.constant 0 : i32
    return %c0_i32, %c0_i32_0, %c0_i32_1 : i32, i32, i32
  }
  func.func @transform_17(%arg0: i32) -> (i32, i32) {
    %c0_i32 = arith.constant 0 : i32
    %c0_i32_0 = arith.constant 0 : i32
    %c0_i32_1 = arith.constant 0 : i32
    return %c0_i32, %c0_i32_0 : i32, i32
  }
  func.func @transform_18(%arg0: i32) -> (i32, i32, i32) {
    %c0_i32 = arith.constant 0 : i32
    %c0_i32_0 = arith.constant 0 : i32
    %c0_i32_1 = arith.constant 0 : i32
    %c0_i32_2 = arith.constant 0 : i32
    return %c0_i32, %c0_i32_0, %c0_i32_1 : i32, i32, i32
  }
  func.func @transform_19(%arg0: i32) -> (i32, i32) {
    %c0_i32 = arith.constant 0 : i32
    %c0_i32_0 = arith.constant 0 : i32
    %c0_i32_1 = arith.constant 0 : i32
    return %c0_i32, %c0_i32_0 : i32, i32
  }
  func.func @transform_20(%arg0: i32) -> (i32, i32) {
    %c0_i32 = arith.constant 0 : i32
    %c0_i32_0 = arith.constant 0 : i32
    %c0_i32_1 = arith.constant 0 : i32
    return %c0_i32, %c0_i32_0 : i32, i32
  }
  func.func @transform_21(%arg0: i32) -> (i32, i32) {
    %c0_i32 = arith.constant 0 : i32
    %c0_i32_0 = arith.constant 0 : i32
    %c0_i32_1 = arith.constant 0 : i32
    return %c0_i32, %c0_i32_0 : i32, i32
  }
  func.func @transform_22(%arg0: i32) -> (i32, i32) {
    %c0_i32 = arith.constant 0 : i32
    %c0_i32_0 = arith.constant 0 : i32
    %c0_i32_1 = arith.constant 0 : i32
    return %c0_i32, %c0_i32_0 : i32, i32
  }
  func.func @transform_23(%arg0: i32) -> (i32, i32) {
    %c0_i32 = arith.constant 0 : i32
    %c0_i32_0 = arith.constant 0 : i32
    %c0_i32_1 = arith.constant 0 : i32
    return %c0_i32, %c0_i32_0 : i32, i32
  }
  func.func @transform_24(%arg0: i32) -> (i32, i32, i32) {
    %c0_i32 = arith.constant 0 : i32
    %c0_i32_0 = arith.constant 0 : i32
    %c0_i32_1 = arith.constant 0 : i32
    %c0_i32_2 = arith.constant 0 : i32
    return %c0_i32, %c0_i32_0, %c0_i32_1 : i32, i32, i32
  }
  func.func @transform_25(%arg0: i32) -> (i32, i32) {
    %c0_i32 = arith.constant 0 : i32
    %c0_i32_0 = arith.constant 0 : i32
    %c0_i32_1 = arith.constant 0 : i32
    return %c0_i32, %c0_i32_0 : i32, i32
  }
  func.func @transform_26(%arg0: i32) -> (i32, i32, i32) {
    %c0_i32 = arith.constant 0 : i32
    %c0_i32_0 = arith.constant 0 : i32
    %c0_i32_1 = arith.constant 0 : i32
    %c0_i32_2 = arith.constant 0 : i32
    return %c0_i32, %c0_i32_0, %c0_i32_1 : i32, i32, i32
  }
  func.func @transform_27(%arg0: i32) -> (i32, i32) {
    %c0_i32 = arith.constant 0 : i32
    %c0_i32_0 = arith.constant 0 : i32
    %c0_i32_1 = arith.constant 0 : i32
    return %c0_i32, %c0_i32_0 : i32, i32
  }
  func.func @transform_28(%arg0: i32) -> (i32, i32, i32) {
    %c0_i32 = arith.constant 0 : i32
    %c0_i32_0 = arith.constant 0 : i32
    %c0_i32_1 = arith.constant 0 : i32
    %c0_i32_2 = arith.constant 0 : i32
    return %c0_i32, %c0_i32_0, %c0_i32_1 : i32, i32, i32
  }
  func.func @transform_29(%arg0: i32) -> (i32, i32) {
    %c0_i32 = arith.constant 0 : i32
    %c0_i32_0 = arith.constant 0 : i32
    %c0_i32_1 = arith.constant 0 : i32
    return %c0_i32, %c0_i32_0 : i32, i32
  }
  func.func @transform_30(%arg0: i32) -> (i32, i32) {
    %c0_i32 = arith.constant 0 : i32
    %c0_i32_0 = arith.constant 0 : i32
    %c0_i32_1 = arith.constant 0 : i32
    return %c0_i32, %c0_i32_0 : i32, i32
  }
  func.func @transform_31(%arg0: i32) -> (i32, i32) {
    %c0_i32 = arith.constant 0 : i32
    %c0_i32_0 = arith.constant 0 : i32
    %c0_i32_1 = arith.constant 0 : i32
    return %c0_i32, %c0_i32_0 : i32, i32
  }
  func.func @transform_32(%arg0: i32) -> (i32, i32, i32) {
    %c0_i32 = arith.constant 0 : i32
    %c0_i32_0 = arith.constant 0 : i32
    %c0_i32_1 = arith.constant 0 : i32
    %c0_i32_2 = arith.constant 0 : i32
    return %c0_i32, %c0_i32_0, %c0_i32_1 : i32, i32, i32
  }
  func.func @transform_33(%arg0: i32) -> (i32, i32) {
    %c0_i32 = arith.constant 0 : i32
    %c0_i32_0 = arith.constant 0 : i32
    %c0_i32_1 = arith.constant 0 : i32
    return %c0_i32, %c0_i32_0 : i32, i32
  }
  func.func @transform_34(%arg0: i32) -> (i32, i32, i32) {
    %c0_i32 = arith.constant 0 : i32
    %c0_i32_0 = arith.constant 0 : i32
    %c0_i32_1 = arith.constant 0 : i32
    %c0_i32_2 = arith.constant 0 : i32
    return %c0_i32, %c0_i32_0, %c0_i32_1 : i32, i32, i32
  }
  func.func @transform_35(%arg0: i32) -> (i32, i32) {
    %c0_i32 = arith.constant 0 : i32
    %c0_i32_0 = arith.constant 0 : i32
    %c0_i32_1 = arith.constant 0 : i32
    return %c0_i32, %c0_i32_0 : i32, i32
  }
  func.func @transform_36(%arg0: i32) -> (i32, i32, i32) {
    %c0_i32 = arith.constant 0 : i32
    %c0_i32_0 = arith.constant 0 : i32
    %c0_i32_1 = arith.constant 0 : i32
    %c0_i32_2 = arith.constant 0 : i32
    return %c0_i32, %c0_i32_0, %c0_i32_1 : i32, i32, i32
  }
  func.func @transform_37(%arg0: i32) -> (i32, i32) {
    %c0_i32 = arith.constant 0 : i32
    %c0_i32_0 = arith.constant 0 : i32
    %c0_i32_1 = arith.constant 0 : i32
    return %c0_i32, %c0_i32_0 : i32, i32
  }
  func.func @transform_38(%arg0: i32) -> (i32, i32) {
    %c0_i32 = arith.constant 0 : i32
    %c0_i32_0 = arith.constant 0 : i32
    %c0_i32_1 = arith.constant 0 : i32
    return %c0_i32, %c0_i32_0 : i32, i32
  }
  func.func @transform_39(%arg0: i32) -> (i32, i32) {
    %c0_i32 = arith.constant 0 : i32
    %c0_i32_0 = arith.constant 0 : i32
    %c0_i32_1 = arith.constant 0 : i32
    return %c0_i32, %c0_i32_0 : i32, i32
  }
  func.func @transform_40(%arg0: i32) -> (i32, i32, i32) {
    %c0_i32 = arith.constant 0 : i32
    %c0_i32_0 = arith.constant 0 : i32
    %c0_i32_1 = arith.constant 0 : i32
    %c0_i32_2 = arith.constant 0 : i32
    return %c0_i32, %c0_i32_0, %c0_i32_1 : i32, i32, i32
  }
  func.func @transform_41(%arg0: i32) -> (i32, i32) {
    %c0_i32 = arith.constant 0 : i32
    %c0_i32_0 = arith.constant 0 : i32
    %c0_i32_1 = arith.constant 0 : i32
    return %c0_i32, %c0_i32_0 : i32, i32
  }
  func.func @transform_42(%arg0: i32) -> (i32, i32, i32) {
    %c0_i32 = arith.constant 0 : i32
    %c0_i32_0 = arith.constant 0 : i32
    %c0_i32_1 = arith.constant 0 : i32
    %c0_i32_2 = arith.constant 0 : i32
    return %c0_i32, %c0_i32_0, %c0_i32_1 : i32, i32, i32
  }
  func.func @transform_43(%arg0: i32) -> (i32, i32) {
    %c0_i32 = arith.constant 0 : i32
    %c0_i32_0 = arith.constant 0 : i32
    %c0_i32_1 = arith.constant 0 : i32
    return %c0_i32, %c0_i32_0 : i32, i32
  }
  func.func @transform_44(%arg0: i32) -> (i32, i32) {
    %c0_i32 = arith.constant 0 : i32
    %c0_i32_0 = arith.constant 0 : i32
    %c0_i32_1 = arith.constant 0 : i32
    return %c0_i32, %c0_i32_0 : i32, i32
  }
  func.func @transform_45(%arg0: i32) -> (i32, i32) {
    %c0_i32 = arith.constant 0 : i32
    %c0_i32_0 = arith.constant 0 : i32
    %c0_i32_1 = arith.constant 0 : i32
    return %c0_i32, %c0_i32_0 : i32, i32
  }
  func.func @transform_46(%arg0: i32) -> (i32, i32) {
    %c0_i32 = arith.constant 0 : i32
    %c0_i32_0 = arith.constant 0 : i32
    %c0_i32_1 = arith.constant 0 : i32
    return %c0_i32, %c0_i32_0 : i32, i32
  }
  func.func @transform_47(%arg0: i32) -> (i32, i32) {
    %c0_i32 = arith.constant 0 : i32
    %c0_i32_0 = arith.constant 0 : i32
    return %arg0, %c0_i32 : i32, i32
  }
}

</mosaic_0001>

<bundles_post_ra>
// kernel: _lambda_.1
= control target key start
LH: loop header
LB: loop body
LE: loop exit
PB: predicated region body
PF: predicated region fallthrough
CT: control target
= control target key end

     0   :  { %s8636_s6 = smov 1   ;;  %s8637_s10 = smov 2   ;;  %s9633_s0 = inlined_call_operand.smem [shape: u32[48], index: -1, kind: input, shape index: {}] }
   0x1   :  { %s8737_s5 = sld [smem:[%s9633_s0]]   ;;  %s8638_s14 = smov 3  }
   0x2   :  { %s8742_s9 = sld [smem:[%s9633_s0 + %s8636_s6]]   ;;  %s8639_s18 = smov 4  }
   0x3   :  { %s8747_s13 = sld [smem:[%s9633_s0 + %s8637_s10]]   ;;  %s8640_s22 = smov 5  }
   0x4   :  { %s8752_s17 = sld [smem:[%s9633_s0 + %s8638_s14]]   ;;  %s8641_s26 = smov 6  }
   0x5   :  { %s8757_s21 = sld [smem:[%s9633_s0 + %s8639_s18]]   ;;  %s8642_s30 = smov 7  }
   0x6   :  { %s8762_s25 = sld [smem:[%s9633_s0 + %s8640_s22]]   ;;  %s8643_s4 = smov 8  }
   0x7   :  { %9662 = sst [smem:[#allocation88_spill]] %s8737_s5  ;;  %s8644_s10 = smov 9  }
   0x8   :  { %s8767_s29 = sld [smem:[%s9633_s0 + %s8641_s26]]   ;;  %s8645_s15 = smov 10  }
   0x9   :  { %9663 = sst [smem:[#allocation89_spill]] %s8747_s13  ;;  %s8646_s20 = smov 11  }
   0xa   :  { %s8772_s3 = sld [smem:[%s9633_s0 + %s8642_s30]]   ;;  %s8647_s26 = smov 12  }
   0xb   :  { %9664 = sst [smem:[#allocation90_spill]] %s8757_s21  ;;  %s8648_s1 = smov 13  }
   0xc   :  { %s8777_s8 = sld [smem:[%s9633_s0 + %s8643_s4]]   ;;  %s8649_s7 = smov 14  }
   0xd   :  { %s8782_s14 = sld [smem:[%s9633_s0 + %s8644_s10]]   ;;  %s8651_s22 = smov 16  }
   0xe   :  { %9665 = sst [smem:[#allocation91_spill]] %s8767_s29  ;;  %s8652_s28 = smov 17  }
   0xf   :  { %s8787_s19 = sld [smem:[%s9633_s0 + %s8645_s15]]   ;;  %s8650_s15 = smov 15  }
  0x10   :  { %s8792_s24 = sld [smem:[%s9633_s0 + %s8646_s20]]  }
  0x11   :  { %s8797_s30 = sld [smem:[%s9633_s0 + %s8647_s26]]  }
  0x12   :  { %9666 = sst [smem:[#allocation92_spill]] %s8777_s8 }
  0x13   :  { %s8802_s6 = sld [smem:[%s9633_s0 + %s8648_s1]]  }
  0x14   :  { %s8807_s12 = sld [smem:[%s9633_s0 + %s8649_s7]]   ;;  %s8653_s7 = smov 18  }
  0x15   :  { %9667 = sst [smem:[#allocation93_spill]] %s8787_s19 }
  0x16   :  { %s8812_s20 = sld [smem:[%s9633_s0 + %s8650_s15]]   ;;  %s8654_s15 = smov 19  }
  0x17   :  { %9668 = sst [smem:[#allocation94_spill]] %s8797_s30 }
  0x18   :  { %s8817_s27 = sld [smem:[%s9633_s0 + %s8651_s22]]   ;;  %s8655_s22 = smov 20  }
  0x19   :  { %s8822_s4 = sld [smem:[%s9633_s0 + %s8652_s28]]   ;;  %s8656_s28 = smov 21  }
  0x1a   :  { %9669 = sst [smem:[#allocation95_spill]] %s8807_s12 }
  0x1b   :  { %s8827_s12 = sld [smem:[%s9633_s0 + %s8653_s7]]   ;;  %s8657_s7 = smov 22  }
  0x1c   :  { %s8832_s30 = sld [smem:[%s9633_s0 + %s8654_s15]]   ;;  %s8658_s15 = smov 23  }
  0x1d   :  { %s8842_s19 = sld [smem:[%s9633_s0 + %s8656_s28]]   ;;  %s8660_s28 = smov 25  }
  0x1e   :  { %9670 = sst [smem:[#allocation96_spill]] %s8817_s27 }
  0x1f   :  { %s8837_s27 = sld [smem:[%s9633_s0 + %s8655_s22]]   ;;  %s8659_s22 = smov 24  }
  0x20   :  { %s8852_s8 = sld [smem:[%s9633_s0 + %s8658_s15]]   ;;  %s8662_s15 = smov 27  }
  0x21   :  { %9671 = sst [smem:[#allocation97_spill]] %s8827_s12 }
  0x22   :  { %s8847_s12 = sld [smem:[%s9633_s0 + %s8657_s7]]   ;;  %s8661_s7 = smov 26  }
  0x23   :  { %s8862_s29 = sld [smem:[%s9633_s0 + %s8660_s28]]   ;;  %s8664_s28 = smov 29  }
  0x24   :  { %s8872_s21 = sld [smem:[%s9633_s0 + %s8662_s15]]   ;;  %s8666_s15 = smov 31  }
  0x25   :  { %9672 = sst [smem:[#allocation98_spill]] %s8837_s27 }
  0x26   :  { %s8857_s27 = sld [smem:[%s9633_s0 + %s8659_s22]]   ;;  %s8663_s22 = smov 28  }
  0x27   :  { %s8882_s13 = sld [smem:[%s9633_s0 + %s8664_s28]]   ;;  %s8668_s28 = smov 33  }
  0x28   :  { %9673 = sst [smem:[#allocation99_spill]] %s8847_s12 }
  0x29   :  { %s8867_s12 = sld [smem:[%s9633_s0 + %s8661_s7]]   ;;  %s8665_s7 = smov 30  }
  0x2a   :  { %s8892_s5 = sld [smem:[%s9633_s0 + %s8666_s15]]   ;;  %s8670_s15 = smov 35  }
  0x2c   :  { %9674 = sst [smem:[#allocation100_spill]] %s8857_s27 }
  0x2d   :  { %s8877_s27 = sld [smem:[%s9633_s0 + %s8663_s22]]   ;;  %s8667_s22 = smov 32  }
  0x2e   :  { %9677 = sst [smem:[#allocation103_spill]] %s8882_s13 }
  0x2f   :  { %9675 = sst [smem:[#allocation101_spill]] %s8867_s12 }
  0x30   :  { %s8887_s12 = sld [smem:[%s9633_s0 + %s8665_s7]]   ;;  %s8669_s7 = smov 34  }
  0x31   :  { %9679 = sst [smem:[#allocation105_spill]] %s8892_s5 }
  0x32   :  { %s8902_s13 = sld [smem:[%s9633_s0 + %s8668_s28]]   ;;  %s8672_s28 = smov 37  }
  0x33   :  { %9676 = sst [smem:[#allocation102_spill]] %s8877_s27 }
  0x34   :  { %s8897_s27 = sld [smem:[%s9633_s0 + %s8667_s22]]   ;;  %s8671_s22 = smov 36  }
  0x35   :  { %s8912_s5 = sld [smem:[%s9633_s0 + %s8670_s15]]   ;;  %s8674_s15 = smov 39  }
  0x36   :  { %9678 = sst [smem:[#allocation104_spill]] %s8887_s12 }
  0x37   :  { %s8907_s12 = sld [smem:[%s9633_s0 + %s8669_s7]]   ;;  %s8673_s7 = smov 38  }
  0x38   :  { %9681 = sst [smem:[#allocation107_spill]] %s8902_s13 }
  0x39   :  { %s8922_s13 = sld [smem:[%s9633_s0 + %s8672_s28]]   ;;  %s8676_s28 = smov 41  }
  0x3a   :  { %9680 = sst [smem:[#allocation106_spill]] %s8897_s27 }
  0x3b   :  { %9683 = sst [smem:[#allocation109_spill]] %s8912_s5 }
  0x3c   :  { %s8917_s27 = sld [smem:[%s9633_s0 + %s8671_s22]]   ;;  %s8675_s22 = smov 40  }
  0x3d   :  { %9682 = sst [smem:[#allocation108_spill]] %s8907_s12 }
  0x3e   :  { %s8927_s12 = sld [smem:[%s9633_s0 + %s8673_s7]]   ;;  %s8677_s7 = smov 42  }
  0x3f   :  { %9685 = sst [smem:[#allocation111_spill]] %s8922_s13 }
  0x40   :  { %s8932_s5 = sld [smem:[%s9633_s0 + %s8674_s15]]   ;;  %s8678_s15 = smov 43  }
  0x41   :  { %s8942_s13 = sld [smem:[%s9633_s0 + %s8676_s28]]   ;;  %s8680_s28 = smov 45  }
  0x42   :  { %9684 = sst [smem:[#allocation110_spill]] %s8917_s27 }
  0x43   :  { %s8937_s27 = sld [smem:[%s9633_s0 + %s8675_s22]]   ;;  %s8679_s22 = smov 44  }
  0x44   :  { %9686 = sst [smem:[#allocation112_spill]] %s8927_s12 }
  0x45   :  { %s8947_s12 = sld [smem:[%s9633_s0 + %s8677_s7]]   ;;  %s8681_s7 = smov 46  }
  0x46   :  { %9687 = sst [smem:[#allocation113_spill]] %s8932_s5 }
  0x47   :  { %9689 = sst [smem:[#allocation115_spill]] %s8942_s13 }
  0x48   :  { %s8952_s5 = sld [smem:[%s9633_s0 + %s8678_s15]]   ;;  %s8682_s15 = smov 47  }
  0x49   :  { %9688 = sst [smem:[#allocation114_spill]] %s8937_s27 }
  0x4a   :  { %s8957_s27 = sld [smem:[%s9633_s0 + %s8679_s22]]  }
  0x4b   :  { %9690 = sst [smem:[#allocation116_spill]] %s8947_s12 }
  0x4c   :  { %s8962_s13 = sld [smem:[%s9633_s0 + %s8680_s28]]  }
  0x4d   :  { %s8967_s12 = sld [smem:[%s9633_s0 + %s8681_s7]]  }
  0x4e   :  { %9691 = sst [smem:[#allocation117_spill]] %s8952_s5 }
  0x4f   :  { %s8972_s5 = sld [smem:[%s9633_s0 + %s8682_s15]]  }
  0x50   :  { %100 = vsyncpa [#allocation3], 0 }
  0x51   :  { %101 = vsyncpa [#allocation5], 0 }
  0x52   :  { %102 = vsyncpa [#allocation8], 0 }
  0x53   :  { %103 = vsyncpa [#allocation11], 0 }
  0x54   :  { %104 = vsyncpa [#allocation14], 0 }
  0x55   :  { %105 = vsyncpa [#allocation17], 0 }
  0x56   :  { %106 = vsyncpa [#allocation20], 0 }
  0x57   :  { %107 = vsyncpa [#allocation23], 0 }
  0x58   :  { %108 = vsyncpa [#allocation26], 0 }
  0x59   :  { %109 = vsyncpa [#allocation29], 0 }
  0x5a   :  { %110 = vsyncpa [#allocation32], 0 }
  0x5b   :  { %111 = vsyncpa [#allocation35], 0 }
  0x5c   :  { %112 = vsyncpa [#allocation38], 0 }
  0x5d   :  { %113 = vsyncpa [#allocation41], 0 }
  0x5e   :  { %114 = vsyncpa [#allocation44], 0 }
  0x5f   :  { %115 = vsyncpa [#allocation47], 0 }
  0x60   :  { %116 = vsyncpa [#allocation50], 0 }
  0x61   :  { %117 = vsyncpa [#allocation53], 0 }
  0x62   :  { %118 = vsyncpa [#allocation56], 0 }
  0x63   :  { %119 = vsyncpa [#allocation59], 0 }
  0x64   :  { %120 = vsyncpa [#allocation62], 0  ;;  %s139_s0 = sshll.u32 %s8742_s9, 4  ;;  %s140_s0 = int_to_ptr.hbm [resolvable:$true] %s139_s0 }
  0x65   :  { %121 = vsyncpa [#allocation65], 0  ;;  %s8683_s22 = smov [#allocation4]   ;;  %s165_s26 = sshll.u32 %s8752_s17, 4  ;;  %s166_s26 = int_to_ptr.hbm [resolvable:$true] %s165_s26 }
  0x66   :  { %s141_s23 = sshll.u32 %s8683_s22, 4  ;;  %s7584_s28 = sshra.s32 %s140_s0, 4  ;;  %s142_s23 = int_to_ptr.vmem [resolvable:$true] %s141_s23  ;;  %s7585_s28 = int_to_ptr.hbm [resolvable:$true] %s7584_s28 }
  0x67   :  { %s7586_s1 = scalar_lea.hbm %s7585_s28, 20  ;;  %s7588_s2 = scalar_lea.hbm %s8742_s9, 20 }
  0x68   :  { %p7587_p0 = scmp.ne.s32.totalorder %s7585_s28, %s7586_s1  ;;  %p7589_p1 = scmp.lt.s32.totalorder %s7585_s28, %s8742_s9 }
  0x69   :  { %p7590_p2 = scmp.lt.s32.totalorder %s7588_s2, %s7586_s1 }
  0x6b   :  { %p7591_p3 = por %p7590_p2, %p7589_p1 }
  0x6d   :  { %p7592_p4 = pnand %p7591_p3, %p7587_p0 }
  0x6f   :  { %7595 = shalt.err (!%p7592_p4)
}
  0x70   :  { %s8684_s7 = smov 64   ;;  %s8685_s10 = smov 4  }
  0x71   :  { %147 = dma.hbm_to_vmem [thread:$0]  %s140_s0, 320, %s142_s23, [#allocation5], %s8684_s7, %s8684_s7, %s8685_s10  }
  0x72   :  { %s8686_s11 = smov [#allocation7]   ;;  %s191_s16 = sshll.u32 %s8762_s25, 4  ;;  %s8982_s16 = int_to_ptr.hbm [resolvable:$true] %s191_s16 }
  0x73   :  { %s167_s15 = sshll.u32 %s8686_s11, 4  ;;  %s7608_s9 = sshra.s32 %s166_s26, 4  ;;  %s168_s15 = int_to_ptr.vmem [resolvable:$true] %s167_s15  ;;  %s7609_s9 = int_to_ptr.hbm [resolvable:$true] %s7608_s9 }
  0x74   :  { %s7610_s18 = scalar_lea.hbm %s7609_s9, 20  ;;  %s7612_s22 = scalar_lea.hbm %s8752_s17, 20 }
  0x75   :  { %p7611_p5 = scmp.ne.s32.totalorder %s7609_s9, %s7610_s18  ;;  %p7613_p6 = scmp.lt.s32.totalorder %s7609_s9, %s8752_s17 }
  0x76   :  { %p7614_p7 = scmp.lt.s32.totalorder %s7612_s22, %s7610_s18 }
  0x78   :  { %p7615_p8 = por %p7614_p7, %p7613_p6 }
  0x7a   :  { %p7616_p9 = pnand %p7615_p8, %p7611_p5 }
  0x7c   :  { %7619 = shalt.err (!%p7616_p9)
}
  0x7d   :  { %173 = dma.hbm_to_vmem [thread:$0]  %s166_s26, 320, %s168_s15, [#allocation8], %s8684_s7, %s8684_s7, %s8685_s10  }
  0x7e   :  { %s217_s0 = sshll.u32 %s8772_s3, 4  ;;  %s8687_s23 = smov [#allocation10]   ;;  %s8990_s0 = int_to_ptr.hbm [resolvable:$true] %s217_s0 }
  0x7f   :  { %s193_s28 = sshll.u32 %s8687_s23, 4  ;;  %s7632_s1 = sshra.s32 %s8982_s16, 4  ;;  %s194_s28 = int_to_ptr.vmem [resolvable:$true] %s193_s28  ;;  %s7633_s1 = int_to_ptr.hbm [resolvable:$true] %s7632_s1 }
  0x80   :  { %s7634_s17 = scalar_lea.hbm %s7633_s1, 12  ;;  %s7636_s2 = scalar_lea.hbm %s8762_s25, 12 }
  0x81   :  { %p7635_p10 = scmp.ne.s32.totalorder %s7633_s1, %s7634_s17  ;;  %p7637_p11 = scmp.lt.s32.totalorder %s7633_s1, %s8762_s25 }
  0x82   :  { %p7638_p12 = scmp.lt.s32.totalorder %s7636_s2, %s7634_s17 }
  0x84   :  { %p7639_p13 = por %p7638_p12, %p7637_p11 }
  0x86   :  { %p7640_p0 = pnand %p7639_p13, %p7635_p10 }
  0x88   :  { %7643 = shalt.err (!%p7640_p0)
}
  0x89   :  { %199 = dma.hbm_to_vmem [thread:$0]  %s8982_s16, 192, %s194_s28, [#allocation11], %s8684_s7, %s8684_s7, %s8685_s10  }
  0x8a   :  { %s8688_s26 = smov [#allocation13]   ;;  %s244_s15 = sshll.u32 %s8782_s14, 4  ;;  %s245_s15 = int_to_ptr.hbm [resolvable:$true] %s244_s15 }
  0x8b   :  { %s219_s11 = sshll.u32 %s8688_s26, 4  ;;  %s7656_s9 = sshra.s32 %s8990_s0, 4  ;;  %s220_s11 = int_to_ptr.vmem [resolvable:$true] %s219_s11  ;;  %s7657_s9 = int_to_ptr.hbm [resolvable:$true] %s7656_s9 }
  0x8c   :  { %s7658_s25 = scalar_lea.hbm %s7657_s9, 8  ;;  %s7660_s18 = scalar_lea.hbm %s8772_s3, 8 }
  0x8d   :  { %p7659_p1 = scmp.ne.s32.totalorder %s7657_s9, %s7658_s25  ;;  %p7661_p2 = scmp.lt.s32.totalorder %s7657_s9, %s8772_s3 }
  0x8e   :  { %p7662_p3 = scmp.lt.s32.totalorder %s7660_s18, %s7658_s25 }
  0x90   :  { %p7663_p4 = por %p7662_p3, %p7661_p2 }
  0x92   :  { %p7664_p5 = pnand %p7663_p4, %p7659_p1 }
  0x94   :  { %7667 = shalt.err (!%p7664_p5)
}
  0x95   :  { %225 = dma.hbm_to_vmem [thread:$0]  %s8990_s0, 128, %s220_s11, [#allocation14], %s8684_s7, %s8684_s7, %s8685_s10  }
  0x96   :  { %s268_s16 = sshll.u32 %s8792_s24, 4  ;;  %s8689_s22 = smov [#allocation16]   ;;  %s269_s16 = int_to_ptr.hbm [resolvable:$true] %s268_s16 }
  0x97   :  { %s246_s23 = sshll.u32 %s8689_s22, 4  ;;  %s7680_s28 = sshra.s32 %s245_s15, 4  ;;  %s247_s23 = int_to_ptr.vmem [resolvable:$true] %s246_s23  ;;  %s7681_s28 = int_to_ptr.hbm [resolvable:$true] %s7680_s28 }
  0x98   :  { %s7682_s3 = scalar_lea.hbm %s7681_s28, 1  ;;  %s7684_s1 = scalar_lea.hbm %s8782_s14, 1 }
  0x99   :  { %p7683_p6 = scmp.ne.s32.totalorder %s7681_s28, %s7682_s3  ;;  %p7685_p7 = scmp.lt.s32.totalorder %s7681_s28, %s8782_s14 }
  0x9a   :  { %p7686_p8 = scmp.lt.s32.totalorder %s7684_s1, %s7682_s3 }
  0x9c   :  { %p7687_p9 = por %p7686_p8, %p7685_p7 }
  0x9e   :  { %p7688_p10 = pnand %p7687_p9, %p7683_p6 }
  0xa0   :  { %7691 = shalt.err (!%p7688_p10)
}
  0xa1   :  { %249 = dma.hbm_to_vmem [thread:$0]  %s245_s15, 16, %s247_s23, [#allocation17]  }
  0xa2   :  { %s8690_s0 = smov [#allocation19]   ;;  %s291_s2 = sshll.u32 %s8802_s6, 4  ;;  %s9011_s2 = int_to_ptr.hbm [resolvable:$true] %s291_s2 }
  0xa3   :  { %s270_s17 = sshll.u32 %s8690_s0, 4  ;;  %s7704_s26 = sshra.s32 %s269_s16, 4  ;;  %s271_s17 = int_to_ptr.vmem [resolvable:$true] %s270_s17  ;;  %s7705_s26 = int_to_ptr.hbm [resolvable:$true] %s7704_s26 }
  0xa4   :  { %s7706_s11 = scalar_lea.hbm %s7705_s26, 1  ;;  %s7708_s9 = scalar_lea.hbm %s8792_s24, 1 }
  0xa5   :  { %p7707_p11 = scmp.ne.s32.totalorder %s7705_s26, %s7706_s11  ;;  %p7709_p12 = scmp.lt.s32.totalorder %s7705_s26, %s8792_s24 }
  0xa6   :  { %p7710_p13 = scmp.lt.s32.totalorder %s7708_s9, %s7706_s11 }
  0xa8   :  { %p7711_p0 = por %p7710_p13, %p7709_p12 }
  0xaa   :  { %p7712_p1 = pnand %p7711_p0, %p7707_p11 }
  0xac   :  { %7715 = shalt.err (!%p7712_p1)
}
  0xad   :  { %273 = dma.hbm_to_vmem [thread:$0]  %s269_s16, 16, %s271_s17, [#allocation20]  }
  0xae   :  { %s317_s14 = sshll.u32 %s8812_s20, 4  ;;  %s8691_s15 = smov [#allocation22]   ;;  %s9016_s14 = int_to_ptr.hbm [resolvable:$true] %s317_s14 }
  0xaf   :  { %s293_s25 = sshll.u32 %s8691_s15, 4  ;;  %s7728_s18 = sshra.s32 %s9011_s2, 4  ;;  %s294_s25 = int_to_ptr.vmem [resolvable:$true] %s293_s25  ;;  %s7729_s18 = int_to_ptr.hbm [resolvable:$true] %s7728_s18 }
  0xb0   :  { %s7730_s22 = scalar_lea.hbm %s7729_s18, 12  ;;  %s7732_s24 = scalar_lea.hbm %s8802_s6, 12 }
  0xb1   :  { %p7731_p2 = scmp.ne.s32.totalorder %s7729_s18, %s7730_s22  ;;  %p7733_p3 = scmp.lt.s32.totalorder %s7729_s18, %s8802_s6 }
  0xb2   :  { %p7734_p4 = scmp.lt.s32.totalorder %s7732_s24, %s7730_s22 }
  0xb4   :  { %p7735_p5 = por %p7734_p4, %p7733_p3 }
  0xb6   :  { %p7736_p6 = pnand %p7735_p5, %p7731_p2 }
  0xb8   :  { %7739 = shalt.err (!%p7736_p6)
}
  0xb9   :  { %299 = dma.hbm_to_vmem [thread:$0]  %s9011_s2, 192, %s294_s25, [#allocation23], %s8684_s7, %s8684_s7, %s8685_s10  }
  0xba   :  { %s8692_s16 = smov [#allocation25]   ;;  %s344_s28 = sshll.u32 %s8822_s4, 4  ;;  %s345_s28 = int_to_ptr.hbm [resolvable:$true] %s344_s28 }
  0xbb   :  { %s319_s23 = sshll.u32 %s8692_s16, 4  ;;  %s7752_s3 = sshra.s32 %s9016_s14, 4  ;;  %s320_s23 = int_to_ptr.vmem [resolvable:$true] %s319_s23  ;;  %s7753_s3 = int_to_ptr.hbm [resolvable:$true] %s7752_s3 }
  0xbc   :  { %s7754_s6 = scalar_lea.hbm %s7753_s3, 64  ;;  %s7756_s1 = scalar_lea.hbm %s8812_s20, 64 }
  0xbd   :  { %p7755_p7 = scmp.ne.s32.totalorder %s7753_s3, %s7754_s6  ;;  %p7757_p8 = scmp.lt.s32.totalorder %s7753_s3, %s8812_s20 }
  0xbe   :  { %p7758_p9 = scmp.lt.s32.totalorder %s7756_s1, %s7754_s6 }
  0xc0   :  { %p7759_p10 = por %p7758_p9, %p7757_p8 }
  0xc2   :  { %p7760_p11 = pnand %p7759_p10, %p7755_p7 }
  0xc4   :  { %7763 = shalt.err (!%p7760_p11)
}
  0xc5   :  { %325 = dma.hbm_to_vmem [thread:$0]  %s9016_s14, 1024, %s320_s23, [#allocation26], %s8684_s7, %s8684_s7, %s8685_s10  }
  0xc6   :  { %s368_s0 = sshll.u32 %s8832_s30, 4  ;;  %s8693_s17 = smov [#allocation28]   ;;  %s369_s0 = int_to_ptr.hbm [resolvable:$true] %s368_s0 }
  0xc7   :  { %s346_s2 = sshll.u32 %s8693_s17, 4  ;;  %s7776_s26 = sshra.s32 %s345_s28, 4  ;;  %s347_s2 = int_to_ptr.vmem [resolvable:$true] %s346_s2  ;;  %s7777_s26 = int_to_ptr.hbm [resolvable:$true] %s7776_s26 }
  0xc8   :  { %s7778_s20 = scalar_lea.hbm %s7777_s26, 1  ;;  %s7780_s11 = scalar_lea.hbm %s8822_s4, 1 }
  0xc9   :  { %p7779_p12 = scmp.ne.s32.totalorder %s7777_s26, %s7778_s20  ;;  %p7781_p13 = scmp.lt.s32.totalorder %s7777_s26, %s8822_s4 }
  0xca   :  { %p7782_p0 = scmp.lt.s32.totalorder %s7780_s11, %s7778_s20 }
  0xcc   :  { %p7783_p1 = por %p7782_p0, %p7781_p13 }
  0xce   :  { %p7784_p2 = pnand %p7783_p1, %p7779_p12 }
  0xd0   :  { %7787 = shalt.err (!%p7784_p2)
}
  0xd1   :  { %349 = dma.hbm_to_vmem [thread:$0]  %s345_s28, 16, %s347_s2, [#allocation29]  }
  0xd2   :  { %s8694_s9 = smov [#allocation31]   ;;  %s391_s15 = sshll.u32 %s8842_s19, 4  ;;  %s9037_s15 = int_to_ptr.hbm [resolvable:$true] %s391_s15 }
  0xd3   :  { %s370_s14 = sshll.u32 %s8694_s9, 4  ;;  %s7800_s25 = sshra.s32 %s369_s0, 4  ;;  %s371_s14 = int_to_ptr.vmem [resolvable:$true] %s370_s14  ;;  %s7801_s25 = int_to_ptr.hbm [resolvable:$true] %s7800_s25 }
  0xd4   :  { %s7802_s18 = scalar_lea.hbm %s7801_s25, 1  ;;  %s7804_s22 = scalar_lea.hbm %s8832_s30, 1 }
  0xd5   :  { %p7803_p3 = scmp.ne.s32.totalorder %s7801_s25, %s7802_s18  ;;  %p7805_p4 = scmp.lt.s32.totalorder %s7801_s25, %s8832_s30 }
  0xd6   :  { %p7806_p5 = scmp.lt.s32.totalorder %s7804_s22, %s7802_s18 }
  0xd8   :  { %p7807_p6 = por %p7806_p5, %p7805_p4 }
  0xda   :  { %p7808_p7 = pnand %p7807_p6, %p7803_p3 }
  0xdc   :  { %7811 = shalt.err (!%p7808_p7)
}
  0xdd   :  { %373 = dma.hbm_to_vmem [thread:$0]  %s369_s0, 16, %s371_s14, [#allocation32]  }
  0xde   :  { %s417_s4 = sshll.u32 %s8852_s8, 4  ;;  %s8695_s24 = smov [#allocation34]   ;;  %s9042_s4 = int_to_ptr.hbm [resolvable:$true] %s417_s4 }
  0xdf   :  { %s393_s16 = sshll.u32 %s8695_s24, 4  ;;  %s7824_s23 = sshra.s32 %s9037_s15, 4  ;;  %s394_s16 = int_to_ptr.vmem [resolvable:$true] %s393_s16  ;;  %s7825_s23 = int_to_ptr.hbm [resolvable:$true] %s7824_s23 }
  0xe0   :  { %s7826_s28 = scalar_lea.hbm %s7825_s23, 8  ;;  %s7828_s30 = scalar_lea.hbm %s8842_s19, 8 }
  0xe1   :  { %p7827_p8 = scmp.ne.s32.totalorder %s7825_s23, %s7826_s28  ;;  %p7829_p9 = scmp.lt.s32.totalorder %s7825_s23, %s8842_s19 }
  0xe2   :  { %p7830_p10 = scmp.lt.s32.totalorder %s7828_s30, %s7826_s28 }
  0xe4   :  { %p7831_p11 = por %p7830_p10, %p7829_p9 }
  0xe6   :  { %p7832_p12 = pnand %p7831_p11, %p7827_p8 }
  0xe8   :  { %7835 = shalt.err (!%p7832_p12)
}
  0xe9   :  { %399 = dma.hbm_to_vmem [thread:$0]  %s9037_s15, 128, %s394_s16, [#allocation35], %s8684_s7, %s8684_s7, %s8685_s10  }
  0xea   :  { %s8696_s3 = smov [#allocation37]   ;;  %s444_s1 = sshll.u32 %s8862_s29, 4  ;;  %s445_s1 = int_to_ptr.hbm [resolvable:$true] %s444_s1 }
  0xeb   :  { %s419_s6 = sshll.u32 %s8696_s3, 4  ;;  %s7848_s0 = sshra.s32 %s9042_s4, 4  ;;  %s420_s6 = int_to_ptr.vmem [resolvable:$true] %s419_s6  ;;  %s7849_s0 = int_to_ptr.hbm [resolvable:$true] %s7848_s0 }
  0xec   :  { %s7850_s19 = scalar_lea.hbm %s7849_s0, 64  ;;  %s7852_s17 = scalar_lea.hbm %s8852_s8, 64 }
  0xed   :  { %p7851_p13 = scmp.ne.s32.totalorder %s7849_s0, %s7850_s19  ;;  %p7853_p0 = scmp.lt.s32.totalorder %s7849_s0, %s8852_s8 }
  0xee   :  { %p7854_p1 = scmp.lt.s32.totalorder %s7852_s17, %s7850_s19 }
  0xf0   :  { %p7855_p2 = por %p7854_p1, %p7853_p0 }
  0xf2   :  { %p7856_p3 = pnand %p7855_p2, %p7851_p13 }
  0xf4   :  { %7859 = shalt.err (!%p7856_p3)
}
  0xf5   :  { %425 = dma.hbm_to_vmem [thread:$0]  %s9042_s4, 1024, %s420_s6, [#allocation38], %s8684_s7, %s8684_s7, %s8685_s10  }
  0xf6   :  { %s468_s2 = sshll.u32 %s8872_s21, 4  ;;  %s8697_s26 = smov [#allocation40]   ;;  %s469_s2 = int_to_ptr.hbm [resolvable:$true] %s468_s2 }
  0xf7   :  { %s446_s20 = sshll.u32 %s8697_s26, 4  ;;  %s7872_s11 = sshra.s32 %s445_s1, 4  ;;  %s447_s20 = int_to_ptr.vmem [resolvable:$true] %s446_s20  ;;  %s7873_s11 = int_to_ptr.hbm [resolvable:$true] %s7872_s11 }
  0xf8   :  { %s7874_s8 = scalar_lea.hbm %s7873_s11, 1  ;;  %s7876_s9 = scalar_lea.hbm %s8862_s29, 1 }
  0xf9   :  { %p7875_p4 = scmp.ne.s32.totalorder %s7873_s11, %s7874_s8  ;;  %p7877_p5 = scmp.lt.s32.totalorder %s7873_s11, %s8862_s29 }
  0xfa   :  { %p7878_p6 = scmp.lt.s32.totalorder %s7876_s9, %s7874_s8 }
  0xfc   :  { %p7879_p7 = por %p7878_p6, %p7877_p5 }
  0xfe   :  { %p7880_p8 = pnand %p7879_p7, %p7875_p4 }
 0x100   :  { %7883 = shalt.err (!%p7880_p8)
}
 0x101   :  { %449 = dma.hbm_to_vmem [thread:$0]  %s445_s1, 16, %s447_s20, [#allocation41]  }
 0x102   :  { %s9692_s14 = sld [smem:[#allocation103_spill]]  ;;  %s8698_s15 = smov [#allocation43]  }
 0x103   :  { %s470_s25 = sshll.u32 %s8698_s15, 4  ;;  %s7896_s22 = sshra.s32 %s469_s2, 4  ;;  %s471_s25 = int_to_ptr.vmem [resolvable:$true] %s470_s25  ;;  %s7897_s22 = int_to_ptr.hbm [resolvable:$true] %s7896_s22 }
 0x104   :  { %s7898_s4 = scalar_lea.hbm %s7897_s22, 1  ;;  %s7900_s24 = scalar_lea.hbm %s8872_s21, 1 }
 0x105   :  { %p7899_p9 = scmp.ne.s32.totalorder %s7897_s22, %s7898_s4  ;;  %p7901_p10 = scmp.lt.s32.totalorder %s7897_s22, %s8872_s21 }
 0x106   :  { %p7902_p11 = scmp.lt.s32.totalorder %s7900_s24, %s7898_s4 }
 0x108   :  { %s492_s18 = sshll.u32 %s9692_s14, 4  ;;  %p7903_p12 = por %p7902_p11, %p7901_p10  ;;  %s493_s18 = int_to_ptr.hbm [resolvable:$true] %s492_s18 }
 0x10a   :  { %p7904_p13 = pnand %p7903_p12, %p7899_p9 }
 0x10c   :  { %7907 = shalt.err (!%p7904_p13)
}
 0x10d   :  { %473 = dma.hbm_to_vmem [thread:$0]  %s469_s2, 16, %s471_s25, [#allocation44]  }
 0x10e   :  { %s9693_s29 = sld [smem:[#allocation105_spill]]  ;;  %s8699_s23 = smov [#allocation46]  }
 0x10f   :  { %s494_s28 = sshll.u32 %s8699_s23, 4  ;;  %s7920_s30 = sshra.s32 %s493_s18, 4  ;;  %s495_s28 = int_to_ptr.vmem [resolvable:$true] %s494_s28  ;;  %s7921_s30 = int_to_ptr.hbm [resolvable:$true] %s7920_s30 }
 0x110   :  { %s7922_s3 = scalar_lea.hbm %s7921_s30, 1  ;;  %s7924_s6 = scalar_lea.hbm %s9692_s14, 1 }
 0x111   :  { %p7923_p0 = scmp.ne.s32.totalorder %s7921_s30, %s7922_s3  ;;  %p7925_p1 = scmp.lt.s32.totalorder %s7921_s30, %s9692_s14 }
 0x112   :  { %p7926_p2 = scmp.lt.s32.totalorder %s7924_s6, %s7922_s3 }
 0x114   :  { %s515_s16 = sshll.u32 %s9693_s29, 4  ;;  %p7927_p3 = por %p7926_p2, %p7925_p1  ;;  %s9066_s16 = int_to_ptr.hbm [resolvable:$true] %s515_s16 }
 0x116   :  { %p7928_p4 = pnand %p7927_p3, %p7923_p0 }
 0x118   :  { %7931 = shalt.err (!%p7928_p4)
}
 0x119   :  { %497 = dma.hbm_to_vmem [thread:$0]  %s493_s18, 16, %s495_s28, [#allocation47]  }
 0x11a   :  { %s9694_s21 = sld [smem:[#allocation107_spill]]  ;;  %s8700_s1 = smov [#allocation49]  }
 0x11b   :  { %s517_s0 = sshll.u32 %s8700_s1, 4  ;;  %s7944_s17 = sshra.s32 %s9066_s16, 4  ;;  %s518_s0 = int_to_ptr.vmem [resolvable:$true] %s517_s0  ;;  %s7945_s17 = int_to_ptr.hbm [resolvable:$true] %s7944_s17 }
 0x11c   :  { %s7946_s2 = scalar_lea.hbm %s7945_s17, 12  ;;  %s7948_s26 = scalar_lea.hbm %s9693_s29, 12 }
 0x11d   :  { %p7947_p5 = scmp.ne.s32.totalorder %s7945_s17, %s7946_s2  ;;  %p7949_p6 = scmp.lt.s32.totalorder %s7945_s17, %s9693_s29 }
 0x11e   :  { %p7950_p7 = scmp.lt.s32.totalorder %s7948_s26, %s7946_s2 }
 0x120   :  { %s542_s19 = sshll.u32 %s9694_s21, 4  ;;  %p7951_p8 = por %p7950_p7, %p7949_p6  ;;  %s543_s19 = int_to_ptr.hbm [resolvable:$true] %s542_s19 }
 0x122   :  { %p7952_p9 = pnand %p7951_p8, %p7947_p5 }
 0x124   :  { %7955 = shalt.err (!%p7952_p9)
}
 0x125   :  { %s9695_s20 = sld [smem:[#allocation109_spill]]  ;;  %s8701_s8 = smov [#allocation52]  }
 0x126   :  { %523 = dma.hbm_to_vmem [thread:$0]  %s9066_s16, 192, %s518_s0, [#allocation50], %s8684_s7, %s8684_s7, %s8685_s10  }
 0x127   :  { %s544_s9 = sshll.u32 %s8701_s8, 4  ;;  %s7968_s14 = sshra.s32 %s543_s19, 4  ;;  %s545_s9 = int_to_ptr.vmem [resolvable:$true] %s544_s9  ;;  %s7969_s14 = int_to_ptr.hbm [resolvable:$true] %s7968_s14 }
 0x128   :  { %s7970_s15 = scalar_lea.hbm %s7969_s14, 1  ;;  %s7972_s25 = scalar_lea.hbm %s9694_s21, 1 }
 0x129   :  { %p7971_p10 = scmp.ne.s32.totalorder %s7969_s14, %s7970_s15  ;;  %p7973_p11 = scmp.lt.s32.totalorder %s7969_s14, %s9694_s21 }
 0x12a   :  { %p7974_p12 = scmp.lt.s32.totalorder %s7972_s25, %s7970_s15 }
 0x12b   :  { %s566_s11 = sshll.u32 %s9695_s20, 4  ;;  %s567_s11 = int_to_ptr.hbm [resolvable:$true] %s566_s11 }
 0x12c   :  { %p7975_p13 = por %p7974_p12, %p7973_p11 }
 0x12e   :  { %p7976_p0 = pnand %p7975_p13, %p7971_p10 }
 0x130   :  { %7979 = shalt.err (!%p7976_p0)
}
 0x131   :  { %547 = dma.hbm_to_vmem [thread:$0]  %s543_s19, 16, %s545_s9, [#allocation53]  }
 0x132   :  { %s9696_s18 = sld [smem:[#allocation111_spill]]  ;;  %s8702_s22 = smov [#allocation55]  }
 0x133   :  { %s568_s4 = sshll.u32 %s8702_s22, 4  ;;  %s7992_s29 = sshra.s32 %s567_s11, 4  ;;  %s569_s4 = int_to_ptr.vmem [resolvable:$true] %s568_s4  ;;  %s7993_s29 = int_to_ptr.hbm [resolvable:$true] %s7992_s29 }
 0x134   :  { %s7994_s16 = scalar_lea.hbm %s7993_s29, 1  ;;  %s7996_s23 = scalar_lea.hbm %s9695_s20, 1 }
 0x135   :  { %p7995_p1 = scmp.ne.s32.totalorder %s7993_s29, %s7994_s16  ;;  %p7997_p2 = scmp.lt.s32.totalorder %s7993_s29, %s9695_s20 }
 0x136   :  { %p7998_p3 = scmp.lt.s32.totalorder %s7996_s23, %s7994_s16 }
 0x138   :  { %s590_s24 = sshll.u32 %s9696_s18, 4  ;;  %p7999_p4 = por %p7998_p3, %p7997_p2  ;;  %s591_s24 = int_to_ptr.hbm [resolvable:$true] %s590_s24 }
 0x13a   :  { %p8000_p5 = pnand %p7999_p4, %p7995_p1 }
 0x13c   :  { %8003 = shalt.err (!%p8000_p5)
}
 0x13d   :  { %571 = dma.hbm_to_vmem [thread:$0]  %s567_s11, 16, %s569_s4, [#allocation56]  }
 0x13e   :  { %s9697_s28 = sld [smem:[#allocation114_spill]]  ;;  %s8703_s3 = smov [#allocation58]  }
 0x13f   :  { %s592_s6 = sshll.u32 %s8703_s3, 4  ;;  %s8016_s21 = sshra.s32 %s591_s24, 4  ;;  %s593_s6 = int_to_ptr.vmem [resolvable:$true] %s592_s6  ;;  %s8017_s21 = int_to_ptr.hbm [resolvable:$true] %s8016_s21 }
 0x140   :  { %s8018_s1 = scalar_lea.hbm %s8017_s21, 1  ;;  %s8020_s0 = scalar_lea.hbm %s9696_s18, 1 }
 0x141   :  { %p8019_p6 = scmp.ne.s32.totalorder %s8017_s21, %s8018_s1  ;;  %p8021_p7 = scmp.lt.s32.totalorder %s8017_s21, %s9696_s18 }
 0x142   :  { %p8022_p8 = scmp.lt.s32.totalorder %s8020_s0, %s8018_s1 }
 0x144   :  { %s615_s30 = sshll.u32 %s9697_s28, 4  ;;  %p8023_p9 = por %p8022_p8, %p8021_p7  ;;  %s9085_s30 = int_to_ptr.hbm [resolvable:$true] %s615_s30 }
 0x146   :  { %p8024_p10 = pnand %p8023_p9, %p8019_p6 }
 0x148   :  { %8027 = shalt.err (!%p8024_p10)
}
 0x149   :  { %595 = dma.hbm_to_vmem [thread:$0]  %s591_s24, 16, %s593_s6, [#allocation59]  }
 0x14a   :  { %s9698_s19 = sld [smem:[#allocation88_spill]]  ;;  %s8704_s17 = smov [#allocation61]  }
 0x14b   :  { %s617_s2 = sshll.u32 %s8704_s17, 4  ;;  %s8040_s20 = sshra.s32 %s9085_s30, 4  ;;  %s618_s2 = int_to_ptr.vmem [resolvable:$true] %s617_s2  ;;  %s8041_s20 = int_to_ptr.hbm [resolvable:$true] %s8040_s20 }
 0x14c   :  { %s8042_s11 = scalar_lea.hbm %s8041_s20, 384  ;;  %s8044_s8 = scalar_lea.hbm %s9697_s28, 384 }
 0x14d   :  { %p8043_p11 = scmp.ne.s32.totalorder %s8041_s20, %s8042_s11  ;;  %p8045_p12 = scmp.lt.s32.totalorder %s8041_s20, %s9697_s28 }
 0x14e   :  { %p8046_p13 = scmp.lt.s32.totalorder %s8044_s8, %s8042_s11 }
 0x150   :  { %s126_s26 = sshll.u32 %s9698_s19, 4  ;;  %p8047_p0 = por %p8046_p13, %p8045_p12  ;;  %s9090_s26 = int_to_ptr.hbm [resolvable:$true] %s126_s26 }
 0x152   :  { %p8048_p1 = pnand %p8047_p0, %p8043_p11 }
 0x154   :  { %8051 = shalt.err (!%p8048_p1)
}
 0x155   :  { %s9699_s9 = sld [smem:[#allocation89_spill]]  ;;  %s8705_s14 = smov [#allocation2]  }
 0x156   :  { %623 = dma.hbm_to_vmem [thread:$0]  %s9085_s30, 6144, %s618_s2, [#allocation62], %s8684_s7, %s8684_s7, %s8685_s10  }
 0x157   :  { %s128_s15 = sshll.u32 %s8705_s14, 4  ;;  %s8064_s18 = sshra.s32 %s9090_s26, 4  ;;  %s129_s15 = int_to_ptr.vmem [resolvable:$true] %s128_s15  ;;  %s8065_s18 = int_to_ptr.hbm [resolvable:$true] %s8064_s18 }
 0x158   :  { %s8066_s22 = scalar_lea.hbm %s8065_s18, 32  ;;  %s8068_s4 = scalar_lea.hbm %s9698_s19, 32 }
 0x159   :  { %p8067_p2 = scmp.ne.s32.totalorder %s8065_s18, %s8066_s22  ;;  %p8069_p3 = scmp.lt.s32.totalorder %s8065_s18, %s9698_s19 }
 0x15a   :  { %p8070_p4 = scmp.lt.s32.totalorder %s8068_s4, %s8066_s22 }
 0x15b   :  { %s152_s25 = sshll.u32 %s9699_s9, 4  ;;  %s153_s25 = int_to_ptr.hbm [resolvable:$true] %s152_s25 }
 0x15c   :  { %p8071_p5 = por %p8070_p4, %p8069_p3 }
 0x15e   :  { %p8072_p6 = pnand %p8071_p5, %p8067_p2 }
 0x160   :  { %8075 = shalt.err (!%p8072_p6)
}
 0x161   :  { %s8706_s24 = smov 128   ;;  %s9700_s29 = sld [smem:[#allocation90_spill]] }
 0x162   :  { %s8707_s16 = smov 8   ;;  %s8708_s23 = smov [#allocation6]  }
 0x163   :  { %134 = dma.hbm_to_vmem [thread:$0]  %s9090_s26, 512, %s129_s15, [#allocation3], %s8706_s24, %s8706_s24, %s8707_s16  }
 0x164   :  { %s154_s28 = sshll.u32 %s8708_s23, 4  ;;  %s8088_s3 = sshra.s32 %s153_s25, 4  ;;  %s155_s28 = int_to_ptr.vmem [resolvable:$true] %s154_s28  ;;  %s8089_s3 = int_to_ptr.hbm [resolvable:$true] %s8088_s3 }
 0x165   :  { %s8090_s6 = scalar_lea.hbm %s8089_s3, 20  ;;  %s8092_s21 = scalar_lea.hbm %s9699_s9, 20 }
 0x166   :  { %p8091_p7 = scmp.ne.s32.totalorder %s8089_s3, %s8090_s6  ;;  %p8093_p8 = scmp.lt.s32.totalorder %s8089_s3, %s9699_s9 }
 0x167   :  { %s178_s30 = sshll.u32 %s9700_s29, 4  ;;  %p8094_p9 = scmp.lt.s32.totalorder %s8092_s21, %s8090_s6  ;;  %s9105_s30 = int_to_ptr.hbm [resolvable:$true] %s178_s30 }
 0x169   :  { %p8095_p10 = por %p8094_p9, %p8093_p8 }
 0x16b   :  { %p8096_p11 = pnand %p8095_p10, %p8091_p7 }
 0x16d   :  { %8099 = shalt.err (!%p8096_p11)
}
 0x16e   :  { %s9701_s1 = sld [smem:[#allocation91_spill]]  ;;  %s8709_s19 = smov [#allocation9]  }
 0x16f   :  { %160 = dma.hbm_to_vmem [thread:$0]  %s153_s25, 320, %s155_s28, [#allocation5], %s8684_s7, %s8684_s7, %s8685_s10  }
 0x170   :  { %s180_s17 = sshll.u32 %s8709_s19, 4  ;;  %s8112_s2 = sshra.s32 %s9105_s30, 4  ;;  %s181_s17 = int_to_ptr.vmem [resolvable:$true] %s180_s17  ;;  %s8113_s2 = int_to_ptr.hbm [resolvable:$true] %s8112_s2 }
 0x171   :  { %s8114_s26 = scalar_lea.hbm %s8113_s2, 12  ;;  %s8116_s20 = scalar_lea.hbm %s9700_s29, 12 }
 0x172   :  { %p8115_p12 = scmp.ne.s32.totalorder %s8113_s2, %s8114_s26  ;;  %p8117_p13 = scmp.lt.s32.totalorder %s8113_s2, %s9700_s29 }
 0x173   :  { %p8118_p0 = scmp.lt.s32.totalorder %s8116_s20, %s8114_s26 }
 0x174   :  { %s204_s0 = sshll.u32 %s9701_s1, 4  ;;  %s9113_s0 = int_to_ptr.hbm [resolvable:$true] %s204_s0 }
 0x175   :  { %p8119_p1 = por %p8118_p0, %p8117_p13 }
 0x177   :  { %p8120_p2 = pnand %p8119_p1, %p8115_p12 }
 0x179   :  { %8123 = shalt.err (!%p8120_p2)
}
 0x17a   :  { %s9702_s11 = sld [smem:[#allocation92_spill]]  ;;  %s8710_s8 = smov [#allocation12]  }
 0x17b   :  { %186 = dma.hbm_to_vmem [thread:$0]  %s9105_s30, 192, %s181_s17, [#allocation8], %s8684_s7, %s8684_s7, %s8685_s10  }
 0x17c   :  { %s206_s9 = sshll.u32 %s8710_s8, 4  ;;  %s8136_s15 = sshra.s32 %s9113_s0, 4  ;;  %s207_s9 = int_to_ptr.vmem [resolvable:$true] %s206_s9  ;;  %s8137_s15 = int_to_ptr.hbm [resolvable:$true] %s8136_s15 }
 0x17d   :  { %s8138_s25 = scalar_lea.hbm %s8137_s15, 8  ;;  %s8140_s18 = scalar_lea.hbm %s9701_s1, 8 }
 0x17e   :  { %p8139_p3 = scmp.ne.s32.totalorder %s8137_s15, %s8138_s25  ;;  %p8141_p4 = scmp.lt.s32.totalorder %s8137_s15, %s9701_s1 }
 0x17f   :  { %p8142_p5 = scmp.lt.s32.totalorder %s8140_s18, %s8138_s25 }
 0x180   :  { %s230_s14 = sshll.u32 %s9702_s11, 4  ;;  %s9123_s14 = int_to_ptr.hbm [resolvable:$true] %s230_s14 }
 0x181   :  { %p8143_p6 = por %p8142_p5, %p8141_p4 }
 0x183   :  { %p8144_p7 = pnand %p8143_p6, %p8139_p3 }
 0x185   :  { %8147 = shalt.err (!%p8144_p7)
}
 0x186   :  { %s9703_s22 = sld [smem:[#allocation93_spill]]  ;;  %s8711_s24 = smov [#allocation15]  }
 0x187   :  { %212 = dma.hbm_to_vmem [thread:$0]  %s9113_s0, 128, %s207_s9, [#allocation11], %s8684_s7, %s8684_s7, %s8685_s10  }
 0x188   :  { %s232_s29 = sshll.u32 %s8711_s24, 4  ;;  %s8160_s16 = sshra.s32 %s9123_s14, 4  ;;  %s233_s29 = int_to_ptr.vmem [resolvable:$true] %s232_s29  ;;  %s8161_s16 = int_to_ptr.hbm [resolvable:$true] %s8160_s16 }
 0x189   :  { %s8162_s23 = scalar_lea.hbm %s8161_s16, 24  ;;  %s8164_s28 = scalar_lea.hbm %s9702_s11, 24 }
 0x18a   :  { %p8163_p8 = scmp.ne.s32.totalorder %s8161_s16, %s8162_s23  ;;  %p8165_p9 = scmp.lt.s32.totalorder %s8161_s16, %s9702_s11 }
 0x18b   :  { %p8166_p10 = scmp.lt.s32.totalorder %s8164_s28, %s8162_s23 }
 0x18c   :  { %s254_s4 = sshll.u32 %s9703_s22, 4  ;;  %s9133_s4 = int_to_ptr.hbm [resolvable:$true] %s254_s4 }
 0x18d   :  { %p8167_p11 = por %p8166_p10, %p8165_p9 }
 0x18f   :  { %p8168_p12 = pnand %p8167_p11, %p8163_p8 }
 0x191   :  { %8171 = shalt.err (!%p8168_p12)
}
 0x192   :  { %s9704_s30 = sld [smem:[#allocation94_spill]]  ;;  %s8712_s3 = smov [#allocation18]  }
 0x193   :  { %238 = dma.hbm_to_vmem [thread:$0]  %s9123_s14, 384, %s233_s29, [#allocation14], %s8684_s7, %s8684_s7, %s8685_s10  }
 0x194   :  { %s256_s6 = sshll.u32 %s8712_s3, 4  ;;  %s8184_s1 = sshra.s32 %s9133_s4, 4  ;;  %s257_s6 = int_to_ptr.vmem [resolvable:$true] %s256_s6  ;;  %s8185_s1 = int_to_ptr.hbm [resolvable:$true] %s8184_s1 }
 0x195   :  { %s8186_s0 = scalar_lea.hbm %s8185_s1, 192  ;;  %s8188_s19 = scalar_lea.hbm %s9703_s22, 192 }
 0x196   :  { %p8187_p13 = scmp.ne.s32.totalorder %s8185_s1, %s8186_s0  ;;  %p8189_p0 = scmp.lt.s32.totalorder %s8185_s1, %s9703_s22 }
 0x197   :  { %p8190_p1 = scmp.lt.s32.totalorder %s8188_s19, %s8186_s0 }
 0x198   :  { %s278_s21 = sshll.u32 %s9704_s30, 4  ;;  %s9143_s21 = int_to_ptr.hbm [resolvable:$true] %s278_s21 }
 0x199   :  { %p8191_p2 = por %p8190_p1, %p8189_p0 }
 0x19b   :  { %p8192_p3 = pnand %p8191_p2, %p8187_p13 }
 0x19d   :  { %8195 = shalt.err (!%p8192_p3)
}
 0x19e   :  { %s9705_s17 = sld [smem:[#allocation95_spill]]  ;;  %s8713_s26 = smov [#allocation21]  }
 0x19f   :  { %262 = dma.hbm_to_vmem [thread:$0]  %s9133_s4, 3072, %s257_s6, [#allocation17], %s8684_s7, %s8684_s7, %s8685_s10  }
 0x1a0   :  { %s280_s20 = sshll.u32 %s8713_s26, 4  ;;  %s8208_s11 = sshra.s32 %s9143_s21, 4  ;;  %s281_s20 = int_to_ptr.vmem [resolvable:$true] %s280_s20  ;;  %s8209_s11 = int_to_ptr.hbm [resolvable:$true] %s8208_s11 }
 0x1a1   :  { %s8210_s8 = scalar_lea.hbm %s8209_s11, 12  ;;  %s8212_s9 = scalar_lea.hbm %s9704_s30, 12 }
 0x1a2   :  { %p8211_p4 = scmp.ne.s32.totalorder %s8209_s11, %s8210_s8  ;;  %p8213_p5 = scmp.lt.s32.totalorder %s8209_s11, %s9704_s30 }
 0x1a3   :  { %p8214_p6 = scmp.lt.s32.totalorder %s8212_s9, %s8210_s8 }
 0x1a4   :  { %s304_s2 = sshll.u32 %s9705_s17, 4  ;;  %s9153_s2 = int_to_ptr.hbm [resolvable:$true] %s304_s2 }
 0x1a5   :  { %p8215_p7 = por %p8214_p6, %p8213_p5 }
 0x1a7   :  { %p8216_p8 = pnand %p8215_p7, %p8211_p4 }
 0x1a9   :  { %8219 = shalt.err (!%p8216_p8)
}
 0x1aa   :  { %s9706_s14 = sld [smem:[#allocation96_spill]]  ;;  %s8714_s15 = smov [#allocation24]  }
 0x1ab   :  { %286 = dma.hbm_to_vmem [thread:$0]  %s9143_s21, 192, %s281_s20, [#allocation20], %s8684_s7, %s8684_s7, %s8685_s10  }
 0x1ac   :  { %s306_s25 = sshll.u32 %s8714_s15, 4  ;;  %s8232_s22 = sshra.s32 %s9153_s2, 4  ;;  %s307_s25 = int_to_ptr.vmem [resolvable:$true] %s306_s25  ;;  %s8233_s22 = int_to_ptr.hbm [resolvable:$true] %s8232_s22 }
 0x1ad   :  { %s8234_s4 = scalar_lea.hbm %s8233_s22, 64  ;;  %s8236_s24 = scalar_lea.hbm %s9705_s17, 64 }
 0x1ae   :  { %p8235_p9 = scmp.ne.s32.totalorder %s8233_s22, %s8234_s4  ;;  %p8237_p10 = scmp.lt.s32.totalorder %s8233_s22, %s9705_s17 }
 0x1af   :  { %p8238_p11 = scmp.lt.s32.totalorder %s8236_s24, %s8234_s4 }
 0x1b0   :  { %s330_s18 = sshll.u32 %s9706_s14, 4  ;;  %s9163_s18 = int_to_ptr.hbm [resolvable:$true] %s330_s18 }
 0x1b1   :  { %p8239_p12 = por %p8238_p11, %p8237_p10 }
 0x1b3   :  { %p8240_p13 = pnand %p8239_p12, %p8235_p9 }
 0x1b5   :  { %8243 = shalt.err (!%p8240_p13)
}
 0x1b6   :  { %s9707_s29 = sld [smem:[#allocation97_spill]]  ;;  %s8715_s23 = smov [#allocation27]  }
 0x1b7   :  { %312 = dma.hbm_to_vmem [thread:$0]  %s9153_s2, 1024, %s307_s25, [#allocation23], %s8684_s7, %s8684_s7, %s8685_s10  }
 0x1b8   :  { %s332_s28 = sshll.u32 %s8715_s23, 4  ;;  %s8256_s30 = sshra.s32 %s9163_s18, 4  ;;  %s333_s28 = int_to_ptr.vmem [resolvable:$true] %s332_s28  ;;  %s8257_s30 = int_to_ptr.hbm [resolvable:$true] %s8256_s30 }
 0x1b9   :  { %s8258_s3 = scalar_lea.hbm %s8257_s30, 96  ;;  %s8260_s6 = scalar_lea.hbm %s9706_s14, 96 }
 0x1ba   :  { %p8259_p0 = scmp.ne.s32.totalorder %s8257_s30, %s8258_s3  ;;  %p8261_p1 = scmp.lt.s32.totalorder %s8257_s30, %s9706_s14 }
 0x1bb   :  { %p8262_p2 = scmp.lt.s32.totalorder %s8260_s6, %s8258_s3 }
 0x1bc   :  { %s354_s16 = sshll.u32 %s9707_s29, 4  ;;  %s9173_s16 = int_to_ptr.hbm [resolvable:$true] %s354_s16 }
 0x1bd   :  { %p8263_p3 = por %p8262_p2, %p8261_p1 }
 0x1bf   :  { %p8264_p4 = pnand %p8263_p3, %p8259_p0 }
 0x1c1   :  { %8267 = shalt.err (!%p8264_p4)
}
 0x1c2   :  { %s9708_s21 = sld [smem:[#allocation98_spill]]  ;;  %s8716_s1 = smov [#allocation30]  }
 0x1c3   :  { %338 = dma.hbm_to_vmem [thread:$0]  %s9163_s18, 1536, %s333_s28, [#allocation26], %s8684_s7, %s8684_s7, %s8685_s10  }
 0x1c4   :  { %s356_s0 = sshll.u32 %s8716_s1, 4  ;;  %s8280_s17 = sshra.s32 %s9173_s16, 4  ;;  %s357_s0 = int_to_ptr.vmem [resolvable:$true] %s356_s0  ;;  %s8281_s17 = int_to_ptr.hbm [resolvable:$true] %s8280_s17 }
 0x1c5   :  { %s8282_s2 = scalar_lea.hbm %s8281_s17, 192  ;;  %s8284_s26 = scalar_lea.hbm %s9707_s29, 192 }
 0x1c6   :  { %p8283_p5 = scmp.ne.s32.totalorder %s8281_s17, %s8282_s2  ;;  %p8285_p6 = scmp.lt.s32.totalorder %s8281_s17, %s9707_s29 }
 0x1c7   :  { %p8286_p7 = scmp.lt.s32.totalorder %s8284_s26, %s8282_s2 }
 0x1c8   :  { %s378_s19 = sshll.u32 %s9708_s21, 4  ;;  %s9183_s19 = int_to_ptr.hbm [resolvable:$true] %s378_s19 }
 0x1c9   :  { %p8287_p8 = por %p8286_p7, %p8285_p6 }
 0x1cb   :  { %p8288_p9 = pnand %p8287_p8, %p8283_p5 }
 0x1cd   :  { %8291 = shalt.err (!%p8288_p9)
}
 0x1ce   :  { %s9709_s20 = sld [smem:[#allocation99_spill]]  ;;  %s8717_s8 = smov [#allocation33]  }
 0x1cf   :  { %362 = dma.hbm_to_vmem [thread:$0]  %s9173_s16, 3072, %s357_s0, [#allocation29], %s8684_s7, %s8684_s7, %s8685_s10  }
 0x1d0   :  { %s380_s9 = sshll.u32 %s8717_s8, 4  ;;  %s8304_s14 = sshra.s32 %s9183_s19, 4  ;;  %s381_s9 = int_to_ptr.vmem [resolvable:$true] %s380_s9  ;;  %s8305_s14 = int_to_ptr.hbm [resolvable:$true] %s8304_s14 }
 0x1d1   :  { %s8306_s15 = scalar_lea.hbm %s8305_s14, 8  ;;  %s8308_s25 = scalar_lea.hbm %s9708_s21, 8 }
 0x1d2   :  { %p8307_p10 = scmp.ne.s32.totalorder %s8305_s14, %s8306_s15  ;;  %p8309_p11 = scmp.lt.s32.totalorder %s8305_s14, %s9708_s21 }
 0x1d3   :  { %p8310_p12 = scmp.lt.s32.totalorder %s8308_s25, %s8306_s15 }
 0x1d4   :  { %s404_s11 = sshll.u32 %s9709_s20, 4  ;;  %s9193_s11 = int_to_ptr.hbm [resolvable:$true] %s404_s11 }
 0x1d5   :  { %p8311_p13 = por %p8310_p12, %p8309_p11 }
 0x1d7   :  { %p8312_p0 = pnand %p8311_p13, %p8307_p10 }
 0x1d9   :  { %8315 = shalt.err (!%p8312_p0)
}
 0x1da   :  { %s9710_s18 = sld [smem:[#allocation100_spill]]  ;;  %s8718_s22 = smov [#allocation36]  }
 0x1db   :  { %386 = dma.hbm_to_vmem [thread:$0]  %s9183_s19, 128, %s381_s9, [#allocation32], %s8684_s7, %s8684_s7, %s8685_s10  }
 0x1dc   :  { %s406_s4 = sshll.u32 %s8718_s22, 4  ;;  %s8328_s29 = sshra.s32 %s9193_s11, 4  ;;  %s407_s4 = int_to_ptr.vmem [resolvable:$true] %s406_s4  ;;  %s8329_s29 = int_to_ptr.hbm [resolvable:$true] %s8328_s29 }
 0x1dd   :  { %s8330_s16 = scalar_lea.hbm %s8329_s29, 64  ;;  %s8332_s23 = scalar_lea.hbm %s9709_s20, 64 }
 0x1de   :  { %p8331_p1 = scmp.ne.s32.totalorder %s8329_s29, %s8330_s16  ;;  %p8333_p2 = scmp.lt.s32.totalorder %s8329_s29, %s9709_s20 }
 0x1df   :  { %p8334_p3 = scmp.lt.s32.totalorder %s8332_s23, %s8330_s16 }
 0x1e0   :  { %s430_s24 = sshll.u32 %s9710_s18, 4  ;;  %s9203_s24 = int_to_ptr.hbm [resolvable:$true] %s430_s24 }
 0x1e1   :  { %p8335_p4 = por %p8334_p3, %p8333_p2 }
 0x1e3   :  { %p8336_p5 = pnand %p8335_p4, %p8331_p1 }
 0x1e5   :  { %8339 = shalt.err (!%p8336_p5)
}
 0x1e6   :  { %s9711_s28 = sld [smem:[#allocation101_spill]]  ;;  %s8719_s3 = smov [#allocation39]  }
 0x1e7   :  { %412 = dma.hbm_to_vmem [thread:$0]  %s9193_s11, 1024, %s407_s4, [#allocation35], %s8684_s7, %s8684_s7, %s8685_s10  }
 0x1e8   :  { %s432_s6 = sshll.u32 %s8719_s3, 4  ;;  %s8352_s21 = sshra.s32 %s9203_s24, 4  ;;  %s433_s6 = int_to_ptr.vmem [resolvable:$true] %s432_s6  ;;  %s8353_s21 = int_to_ptr.hbm [resolvable:$true] %s8352_s21 }
 0x1e9   :  { %s8354_s1 = scalar_lea.hbm %s8353_s21, 96  ;;  %s8356_s0 = scalar_lea.hbm %s9710_s18, 96 }
 0x1ea   :  { %p8355_p6 = scmp.ne.s32.totalorder %s8353_s21, %s8354_s1  ;;  %p8357_p7 = scmp.lt.s32.totalorder %s8353_s21, %s9710_s18 }
 0x1eb   :  { %p8358_p8 = scmp.lt.s32.totalorder %s8356_s0, %s8354_s1 }
 0x1ec   :  { %s454_s30 = sshll.u32 %s9711_s28, 4  ;;  %s9213_s30 = int_to_ptr.hbm [resolvable:$true] %s454_s30 }
 0x1ed   :  { %p8359_p9 = por %p8358_p8, %p8357_p7 }
 0x1ef   :  { %p8360_p10 = pnand %p8359_p9, %p8355_p6 }
 0x1f1   :  { %8363 = shalt.err (!%p8360_p10)
}
 0x1f2   :  { %s9712_s19 = sld [smem:[#allocation102_spill]]  ;;  %s8720_s17 = smov [#allocation42]  }
 0x1f3   :  { %438 = dma.hbm_to_vmem [thread:$0]  %s9203_s24, 1536, %s433_s6, [#allocation38], %s8684_s7, %s8684_s7, %s8685_s10  }
 0x1f4   :  { %s456_s2 = sshll.u32 %s8720_s17, 4  ;;  %s8376_s20 = sshra.s32 %s9213_s30, 4  ;;  %s457_s2 = int_to_ptr.vmem [resolvable:$true] %s456_s2  ;;  %s8377_s20 = int_to_ptr.hbm [resolvable:$true] %s8376_s20 }
 0x1f5   :  { %s8378_s11 = scalar_lea.hbm %s8377_s20, 192  ;;  %s8380_s8 = scalar_lea.hbm %s9711_s28, 192 }
 0x1f6   :  { %p8379_p11 = scmp.ne.s32.totalorder %s8377_s20, %s8378_s11  ;;  %p8381_p12 = scmp.lt.s32.totalorder %s8377_s20, %s9711_s28 }
 0x1f7   :  { %p8382_p13 = scmp.lt.s32.totalorder %s8380_s8, %s8378_s11 }
 0x1f8   :  { %s478_s26 = sshll.u32 %s9712_s19, 4  ;;  %s9223_s26 = int_to_ptr.hbm [resolvable:$true] %s478_s26 }
 0x1f9   :  { %p8383_p0 = por %p8382_p13, %p8381_p12 }
 0x1fb   :  { %p8384_p1 = pnand %p8383_p0, %p8379_p11 }
 0x1fd   :  { %8387 = shalt.err (!%p8384_p1)
}
 0x1fe   :  { %s9713_s9 = sld [smem:[#allocation104_spill]]  ;;  %s8721_s15 = smov [#allocation45]  }
 0x1ff   :  { %462 = dma.hbm_to_vmem [thread:$0]  %s9213_s30, 3072, %s457_s2, [#allocation41], %s8684_s7, %s8684_s7, %s8685_s10  }
 0x200   :  { %s480_s25 = sshll.u32 %s8721_s15, 4  ;;  %s8400_s18 = sshra.s32 %s9223_s26, 4  ;;  %s481_s25 = int_to_ptr.vmem [resolvable:$true] %s480_s25  ;;  %s8401_s18 = int_to_ptr.hbm [resolvable:$true] %s8400_s18 }
 0x201   :  { %s8402_s22 = scalar_lea.hbm %s8401_s18, 128  ;;  %s8404_s4 = scalar_lea.hbm %s9712_s19, 128 }
 0x202   :  { %p8403_p2 = scmp.ne.s32.totalorder %s8401_s18, %s8402_s22  ;;  %p8405_p3 = scmp.lt.s32.totalorder %s8401_s18, %s9712_s19 }
 0x203   :  { %p8406_p4 = scmp.lt.s32.totalorder %s8404_s4, %s8402_s22 }
 0x204   :  { %s502_s14 = sshll.u32 %s9713_s9, 4  ;;  %s9233_s14 = int_to_ptr.hbm [resolvable:$true] %s502_s14 }
 0x205   :  { %p8407_p5 = por %p8406_p4, %p8405_p3 }
 0x207   :  { %p8408_p6 = pnand %p8407_p5, %p8403_p2 }
 0x209   :  { %8411 = shalt.err (!%p8408_p6)
}
 0x20a   :  { %s9714_s24 = sld [smem:[#allocation106_spill]]  ;;  %s8722_s29 = smov [#allocation48]  }
 0x20b   :  { %486 = dma.hbm_to_vmem [thread:$0]  %s9223_s26, 2048, %s481_s25, [#allocation44], %s8684_s7, %s8684_s7, %s8685_s10  }
 0x20c   :  { %s504_s16 = sshll.u32 %s8722_s29, 4  ;;  %s8424_s28 = sshra.s32 %s9233_s14, 4  ;;  %s505_s16 = int_to_ptr.vmem [resolvable:$true] %s504_s16  ;;  %s8425_s28 = int_to_ptr.hbm [resolvable:$true] %s8424_s28 }
 0x20d   :  { %s8426_s30 = scalar_lea.hbm %s8425_s28, 12  ;;  %s8428_s3 = scalar_lea.hbm %s9713_s9, 12 }
 0x20e   :  { %p8427_p7 = scmp.ne.s32.totalorder %s8425_s28, %s8426_s30  ;;  %p8429_p8 = scmp.lt.s32.totalorder %s8425_s28, %s9713_s9 }
 0x20f   :  { %p8430_p9 = scmp.lt.s32.totalorder %s8428_s3, %s8426_s30 }
 0x210   :  { %s528_s23 = sshll.u32 %s9714_s24, 4  ;;  %s9243_s23 = int_to_ptr.hbm [resolvable:$true] %s528_s23 }
 0x211   :  { %p8431_p10 = por %p8430_p9, %p8429_p8 }
 0x213   :  { %p8432_p11 = pnand %p8431_p10, %p8427_p7 }
 0x215   :  { %8435 = shalt.err (!%p8432_p11)
}
 0x216   :  { %s9715_s6 = sld [smem:[#allocation108_spill]]  ;;  %s8723_s1 = smov [#allocation51]  }
 0x217   :  { %510 = dma.hbm_to_vmem [thread:$0]  %s9233_s14, 192, %s505_s16, [#allocation47], %s8684_s7, %s8684_s7, %s8685_s10  }
 0x218   :  { %s530_s0 = sshll.u32 %s8723_s1, 4  ;;  %s8448_s19 = sshra.s32 %s9243_s23, 4  ;;  %s531_s0 = int_to_ptr.vmem [resolvable:$true] %s530_s0  ;;  %s8449_s19 = int_to_ptr.hbm [resolvable:$true] %s8448_s19 }
 0x219   :  { %s8450_s17 = scalar_lea.hbm %s8449_s19, 384  ;;  %s8452_s2 = scalar_lea.hbm %s9714_s24, 384 }
 0x21a   :  { %p8451_p12 = scmp.ne.s32.totalorder %s8449_s19, %s8450_s17  ;;  %p8453_p13 = scmp.lt.s32.totalorder %s8449_s19, %s9714_s24 }
 0x21b   :  { %p8454_p0 = scmp.lt.s32.totalorder %s8452_s2, %s8450_s17 }
 0x21c   :  { %s552_s21 = sshll.u32 %s9715_s6, 4  ;;  %s9253_s21 = int_to_ptr.hbm [resolvable:$true] %s552_s21 }
 0x21d   :  { %p8455_p1 = por %p8454_p0, %p8453_p13 }
 0x21f   :  { %p8456_p2 = pnand %p8455_p1, %p8451_p12 }
 0x221   :  { %8459 = shalt.err (!%p8456_p2)
}
 0x222   :  { %s9716_s26 = sld [smem:[#allocation110_spill]]  ;;  %s8724_s20 = smov [#allocation54]  }
 0x223   :  { %536 = dma.hbm_to_vmem [thread:$0]  %s9243_s23, 6144, %s531_s0, [#allocation50], %s8684_s7, %s8684_s7, %s8685_s10  }
 0x224   :  { %s554_s11 = sshll.u32 %s8724_s20, 4  ;;  %s8472_s9 = sshra.s32 %s9253_s21, 4  ;;  %s555_s11 = int_to_ptr.vmem [resolvable:$true] %s554_s11  ;;  %s8473_s9 = int_to_ptr.hbm [resolvable:$true] %s8472_s9 }
 0x225   :  { %s8474_s14 = scalar_lea.hbm %s8473_s9, 192  ;;  %s8476_s15 = scalar_lea.hbm %s9715_s6, 192 }
 0x226   :  { %p8475_p3 = scmp.ne.s32.totalorder %s8473_s9, %s8474_s14  ;;  %p8477_p4 = scmp.lt.s32.totalorder %s8473_s9, %s9715_s6 }
 0x227   :  { %p8478_p5 = scmp.lt.s32.totalorder %s8476_s15, %s8474_s14 }
 0x228   :  { %s576_s8 = sshll.u32 %s9716_s26, 4  ;;  %s9263_s8 = int_to_ptr.hbm [resolvable:$true] %s576_s8 }
 0x229   :  { %p8479_p6 = por %p8478_p5, %p8477_p4 }
 0x22b   :  { %p8480_p7 = pnand %p8479_p6, %p8475_p3 }
 0x22d   :  { %8483 = shalt.err (!%p8480_p7)
}
 0x22e   :  { %s9717_s25 = sld [smem:[#allocation112_spill]]  ;;  %s8725_s22 = smov [#allocation57]  }
 0x22f   :  { %560 = dma.hbm_to_vmem [thread:$0]  %s9253_s21, 3072, %s555_s11, [#allocation53], %s8684_s7, %s8684_s7, %s8685_s10  }
 0x230   :  { %s578_s4 = sshll.u32 %s8725_s22, 4  ;;  %s8496_s24 = sshra.s32 %s9263_s8, 4  ;;  %s579_s4 = int_to_ptr.vmem [resolvable:$true] %s578_s4  ;;  %s8497_s24 = int_to_ptr.hbm [resolvable:$true] %s8496_s24 }
 0x231   :  { %s8498_s29 = scalar_lea.hbm %s8497_s24, 128  ;;  %s8500_s16 = scalar_lea.hbm %s9716_s26, 128 }
 0x232   :  { %p8499_p8 = scmp.ne.s32.totalorder %s8497_s24, %s8498_s29  ;;  %p8501_p9 = scmp.lt.s32.totalorder %s8497_s24, %s9716_s26 }
 0x233   :  { %p8502_p10 = scmp.lt.s32.totalorder %s8500_s16, %s8498_s29 }
 0x234   :  { %s600_s18 = sshll.u32 %s9717_s25, 4  ;;  %s9273_s18 = int_to_ptr.hbm [resolvable:$true] %s600_s18 }
 0x235   :  { %p8503_p11 = por %p8502_p10, %p8501_p9 }
 0x237   :  { %p8504_p12 = pnand %p8503_p11, %p8499_p8 }
 0x239   :  { %8507 = shalt.err (!%p8504_p12)
}
 0x23a   :  { %s9718_s23 = sld [smem:[#allocation116_spill]]  ;;  %s8726_s28 = smov [#allocation60]  }
 0x23b   :  { %584 = dma.hbm_to_vmem [thread:$0]  %s9263_s8, 2048, %s579_s4, [#allocation56], %s8684_s7, %s8684_s7, %s8685_s10  }
 0x23c   :  { %s602_s30 = sshll.u32 %s8726_s28, 4  ;;  %s8520_s6 = sshra.s32 %s9273_s18, 4  ;;  %s603_s30 = int_to_ptr.vmem [resolvable:$true] %s602_s30  ;;  %s8521_s6 = int_to_ptr.hbm [resolvable:$true] %s8520_s6 }
 0x23d   :  { %s8522_s21 = scalar_lea.hbm %s8521_s6, 20  ;;  %s8524_s1 = scalar_lea.hbm %s9717_s25, 20 }
 0x23e   :  { %p8523_p13 = scmp.ne.s32.totalorder %s8521_s6, %s8522_s21  ;;  %p8525_p0 = scmp.lt.s32.totalorder %s8521_s6, %s9717_s25 }
 0x23f   :  { %p8526_p1 = scmp.lt.s32.totalorder %s8524_s1, %s8522_s21 }
 0x240   :  { %s630_s3 = sshll.u32 %s9718_s23, 4  ;;  %s9283_s3 = int_to_ptr.hbm [resolvable:$true] %s630_s3 }
 0x241   :  { %p8527_p2 = por %p8526_p1, %p8525_p0 }
 0x243   :  { %p8528_p3 = pnand %p8527_p2, %p8523_p13 }
 0x245   :  { %8531 = shalt.err (!%p8528_p3)
}
 0x246   :  { %608 = dma.hbm_to_vmem [thread:$0]  %s9273_s18, 320, %s603_s30, [#allocation59], %s8684_s7, %s8684_s7, %s8685_s10  }
 0x247   :  { %s647_s0 = sshll.u32 %s8962_s13, 4  ;;  %s8727_s19 = smov [#allocation63]   ;;  %s9293_s0 = int_to_ptr.hbm [resolvable:$true] %s647_s0 }
 0x248   :  { %s632_s17 = sshll.u32 %s8727_s19, 4  ;;  %s8544_s2 = sshra.s32 %s9283_s3, 4  ;;  %s633_s17 = int_to_ptr.vmem [resolvable:$true] %s632_s17  ;;  %s8545_s2 = int_to_ptr.hbm [resolvable:$true] %s8544_s2 }
 0x249   :  { %s8546_s26 = scalar_lea.hbm %s8545_s2, 192  ;;  %s8548_s20 = scalar_lea.hbm %s9718_s23, 192 }
 0x24a   :  { %p8547_p4 = scmp.ne.s32.totalorder %s8545_s2, %s8546_s26  ;;  %p8549_p5 = scmp.lt.s32.totalorder %s8545_s2, %s9718_s23 }
 0x24b   :  { %p8550_p6 = scmp.lt.s32.totalorder %s8548_s20, %s8546_s26 }
 0x24d   :  { %p8551_p7 = por %p8550_p6, %p8549_p5 }
 0x24f   :  { %p8552_p8 = pnand %p8551_p7, %p8547_p4 }
 0x251   :  { %8555 = shalt.err (!%p8552_p8)
}
 0x252   :  { %638 = dma.hbm_to_vmem [thread:$0]  %s9283_s3, 3072, %s633_s17, [#allocation62], %s8684_s7, %s8684_s7, %s8685_s10  }
 0x253   :  { %s8728_s11 = smov [#allocation64]   ;;  %s8568_s9 = sshra.s32 %s9293_s0, 4  ;;  %s8569_s9 = int_to_ptr.hbm [resolvable:$true] %s8568_s9 }
 0x254   :  { %s649_s8 = sshll.u32 %s8728_s11, 4  ;;  %s8570_s14 = scalar_lea.hbm %s8569_s9, 64  ;;  %s650_s8 = int_to_ptr.vmem [resolvable:$true] %s649_s8 }
 0x255   :  { %p8571_p9 = scmp.ne.s32.totalorder %s8569_s9, %s8570_s14  ;;  %s8572_s15 = scalar_lea.hbm %s8962_s13, 64 }
 0x256   :  { %p8573_p10 = scmp.lt.s32.totalorder %s8569_s9, %s8962_s13  ;;  %p8574_p11 = scmp.lt.s32.totalorder %s8572_s15, %s8570_s14 }
 0x258   :  { %p8575_p12 = por %p8574_p11, %p8573_p10 }
 0x25a   :  { %p8576_p13 = pnand %p8575_p12, %p8571_p9 }
 0x25c   :  { %8579 = shalt.err (!%p8576_p13)
}
 0x25d   :  { %655 = dma.hbm_to_vmem [thread:$0]  %s9293_s0, 1024, %s650_s8, [#allocation65], %s8684_s7, %s8684_s7, %s8685_s10  }
 0x25e   :  { %8592 = dma.done.wait [#allocation3], 512  }
 0x25f   :  { %8593 = vsyncadd [#allocation3], 4294966784 }
 0x260   :  { %8594 = dma.done.wait [#allocation5], 640  }
 0x261   :  { %8595 = vsyncadd [#allocation5], 4294966656 }
 0x262   :  { %8596 = dma.done.wait [#allocation8], 512  }
 0x263   :  { %8597 = vsyncadd [#allocation8], 4294966784 }
 0x264   :  { %8598 = dma.done.wait [#allocation11], 320  }
 0x265   :  { %8599 = vsyncadd [#allocation11], 4294966976 }
 0x266   :  { %8600 = dma.done.wait [#allocation14], 512  }
 0x267   :  { %8601 = vsyncadd [#allocation14], 4294966784 }
 0x268   :  { %8602 = dma.done.wait [#allocation17], 3088  }
 0x269   :  { %8603 = vsyncadd [#allocation17], 4294964208 }
 0x26a   :  { %8604 = dma.done.wait [#allocation20], 208  }
 0x26b   :  { %8605 = vsyncadd [#allocation20], 4294967088 }
 0x26c   :  { %8606 = dma.done.wait [#allocation23], 1216  }
 0x26d   :  { %8607 = vsyncadd [#allocation23], 4294966080 }
 0x26e   :  { %8608 = dma.done.wait [#allocation26], 2560  }
 0x26f   :  { %8609 = vsyncadd [#allocation26], 4294964736 }
 0x270   :  { %8610 = dma.done.wait [#allocation29], 3088  }
 0x271   :  { %8611 = vsyncadd [#allocation29], 4294964208 }
 0x272   :  { %8612 = dma.done.wait [#allocation32], 144  }
 0x273   :  { %8613 = vsyncadd [#allocation32], 4294967152 }
 0x274   :  { %8614 = dma.done.wait [#allocation35], 1152  }
 0x275   :  { %8615 = vsyncadd [#allocation35], 4294966144 }
 0x276   :  { %8616 = dma.done.wait [#allocation38], 2560  }
 0x277   :  { %8617 = vsyncadd [#allocation38], 4294964736 }
 0x278   :  { %8618 = dma.done.wait [#allocation41], 3088  }
 0x279   :  { %8619 = vsyncadd [#allocation41], 4294964208 }
 0x27a   :  { %8620 = dma.done.wait [#allocation44], 2064  }
 0x27b   :  { %8621 = vsyncadd [#allocation44], 4294965232 }
 0x27c   :  { %8622 = dma.done.wait [#allocation47], 208  }
 0x27d   :  { %8623 = vsyncadd [#allocation47], 4294967088 }
 0x27e   :  { %8624 = dma.done.wait [#allocation50], 6336  }
 0x27f   :  { %8625 = vsyncadd [#allocation50], 4294960960 }
 0x280   :  { %8626 = dma.done.wait [#allocation53], 3088  }
 0x281   :  { %8627 = vsyncadd [#allocation53], 4294964208 }
 0x282   :  { %8628 = dma.done.wait [#allocation56], 2064  }
 0x283   :  { %8629 = vsyncadd [#allocation56], 4294965232 }
 0x284   :  { %8630 = dma.done.wait [#allocation59], 336  }
 0x285   :  { %8631 = vsyncadd [#allocation59], 4294966960 }
 0x286   :  { %8632 = dma.done.wait [#allocation62], 9216  }
 0x287   :  { %8633 = vsyncadd [#allocation62], 4294958080 }
 0x288   :  { %8634 = dma.done.wait [#allocation65], 1024  }
 0x289   :  { %8635 = vsyncadd [#allocation65], 4294966272  ;;  %v829_v0 = vld [vmem:[#allocation2 + $0x10] sm:$0xff]  ;;  %v830_v1 = vld [vmem:[#allocation2 + $0x18] sm:$0xff]  ;;  %vm851_vm0 = vcmask 261120   ;;  %vm1009_vm1 = vcmask 130048  }
 0x28a   :  { %v827_v2 = vld [vmem:[#allocation2] sm:$0xff]  ;;  %v832_v3 = vpack.c.bf16 %v830_v1, %v829_v0  ;;  %v828_v4 = vld [vmem:[#allocation2 + $0x8] sm:$0xff]  ;;  %v837_v8 = vld [vmem:[#allocation4 + $0x10] sm:$0x3]  ;;  %vm915_vm2 = vcmask 1041408   ;;  %vm905_vm3 = vcmask 293888  }
 0x28b   :  { %v831_v5 = vpack.c.bf16 %v828_v4, %v827_v2  ;;  %v7134_v6 = vld [vmem:[#allocation4] sm:$0xff]  ;;  %v7135_v7 = vld [vmem:[#allocation4 + $0x8] sm:$0xff]  ;;  %v847_v9 = vunpack.c.l.b16 %v837_v8  ;;  %v9316_v22 = vld [vmem:[#allocation6] sm:$0xff]  ;;  %vm1865_vm4 = vcmask 523264   ;;  %vm1757_vm5 = vcmask 162816   ;;  %s9719_s13 = sld [smem:[#allocation113_spill]] }
 0x28c   :  { %867 = vmatpush.bf16.msra.mxu0 %v832_v3  ;;  %v7141_v11 = vld [vmem:[#allocation15 + $0x8] sm:$0xff]  ;;  %v9324_v24 = vld [vmem:[#allocation6 + $0x8] sm:$0xff]  ;;  %v891_v26 = vld [vmem:[#allocation6 + $0x10] sm:$0x3]  ;;  %vm2549_vm6 = vcmask 1045504   ;;  %vm2545_vm7 = vcmask 97280  }
 0x28d   :  { %v850_v10 = vpack.c.b16 %v847_v9, %v847_v9  ;;  %1025 = vmatpush.bf16.msra.mxu3 %v7141_v11  ;;  %v9318_v23 = vld [vmem:[#allocation7] sm:$0xff]  ;;  %v9326_v25 = vld [vmem:[#allocation7 + $0x8] sm:$0xff]  ;;  %v949_v27 = vld [vmem:[#allocation7 + $0x10] sm:$0x3]  ;;  %v901_v28 = vunpack.c.l.b16 %v891_v26  ;;  %s9720_s7 = sld [smem:[#allocation115_spill]] }
 0x28e   :  { %v959_v29 = vunpack.c.l.b16 %v949_v27  ;;  %v7140_v33 = vld [vmem:[#allocation15] sm:$0xff]  ;;  %v7142_v34 = vld [vmem:[#allocation15 + $0x10] sm:$0xff]  ;;  %s9721_s10 = sld [smem:[#allocation117_spill]] }
 0x28f   :  { %v9332_v30 = vpack.c.b16 %v901_v28, %v901_v28  ;;  %v7158_v47 = vld [vmem:[#allocation18 + $0x78] sm:$0xff]  ;;  %v7157_v48 = vld [vmem:[#allocation18 + $0x70] sm:$0xff]  ;;  %v7156_v51 = vld [vmem:[#allocation18 + $0x68] sm:$0xff] }
 0x290   :  { %868 = vmatpush.bf16.msra.mxu0 %v831_v5  ;;  %v9334_v31 = vpack.c.b16 %v959_v29, %v959_v29  ;;  %v7155_v61 = vld [vmem:[#allocation18 + $0x60] sm:$0xff]  ;;  %v7154_v62 = vld [vmem:[#allocation18 + $0x58] sm:$0xff]  ;;  %v7153_v63 = vld [vmem:[#allocation18 + $0x50] sm:$0xff] }
 0x291   :  { %7471 = vmatpush.bf16.msrb.mxu3 %v7140_v33  ;;  %v7152_v0 = vld [vmem:[#allocation18 + $0x48] sm:$0xff]  ;;  %v7151_v1 = vld [vmem:[#allocation18 + $0x40] sm:$0xff] }
 0x293   :  { %5701 = vmatmul.msk.bf16.vlgmr.msra.gmra.mxu0 %vm851_vm0, %v7134_v6  ;;  %v7565_v6 = vld [vmem:[#allocation16] ss:$0 sm:$0xff] }
 0x294   :  { %1104 = vmatpush.bf16.msrb.mxu0 %v7142_v34 }
 0x2a3   :  { %5702 = vmatmul.msk.bf16.gmra.mxu0 %vm851_vm0, %v7135_v7 }
 0x2b3   :  { %5703 = vmatmul.msk.bf16.gmra.mxu0 %vm851_vm0, %v850_v10 }
 0x310   :  { %v870_v12 = vpop.f32.mrf.mxu0 }
 0x318   :  { %v872_v13 = vpop.f32.mrf.mxu0 }
 0x319   :  { %v884_v14 = vpack.c.bf16 %v872_v13, %v870_v12 }
 0x31b   :  { %5730 = vmatmul.msk.bf16.vlgmr.msra.gmra.mxu3 %vm1009_vm1, %v884_v14 }
 0x31c   :  { %1278 = vmatpush.bf16.msra.mxu3 %v7158_v47  ;;  %v7148_v47 = vld [vmem:[#allocation18 + $0x28] sm:$0xff] }
 0x320   :  { %v875_v15 = vpop.f32.mrf.mxu0  ;;  %1279 = vmatpush.bf16.msra.mxu3 %v7157_v48  ;;  %v7147_v48 = vld [vmem:[#allocation18 + $0x20] sm:$0xff] }
 0x324   :  { %1280 = vmatpush.bf16.msra.mxu3 %v7156_v51  ;;  %v7162_v51 = vld [vmem:[#allocation18 + $0x98] sm:$0xff] }
 0x328   :  { %v877_v16 = vpop.f32.mrf.mxu0  ;;  %1281 = vmatpush.bf16.msra.mxu3 %v7155_v61 }
 0x329   :  { %v885_v17 = vpack.c.bf16 %v877_v16, %v875_v15 }
 0x32b   :  { %5731 = vmatmul.msk.bf16.gmra.mxu3 %vm1009_vm1, %v885_v17 }
 0x32c   :  { %1282 = vmatpush.bf16.msra.mxu3 %v7154_v62 }
 0x330   :  { %v880_v18 = vpop.f32.mrf.mxu0  ;;  %1283 = vmatpush.bf16.msra.mxu3 %v7153_v63 }
 0x331   :  { %v886_v19 = vpack.c.bf16 %v880_v18, %v880_v18 }
 0x333   :  { %v917_v20 = vsel %vm915_vm2, %v886_v19, 0 }
 0x334   :  { %924 = vmatpush.bf16.msra.mxu1 %v917_v20  ;;  %977 = vmatpush.bf16.msra.mxu2 %v917_v20 }
 0x335   :  { %1284 = vmatpush.bf16.msra.mxu3 %v7152_v0 }
 0x338   :  { %v882_v21 = vpop.f32.mrf.mxu0  ;;  %925 = vmatpush.bf16.msra.mxu1 %v885_v17  ;;  %978 = vmatpush.bf16.msra.mxu2 %v885_v17 }
 0x339   :  { %1285 = vmatpush.bf16.msra.mxu3 %v7151_v1 }
 0x33b   :  { %5732 = vmatmul.msk.bf16.gmra.mxu3 %vm1009_vm1, %v886_v19 }
 0x33c   :  { %926 = vmatpush.bf16.msra.mxu1 %v884_v14  ;;  %979 = vmatpush.bf16.msra.mxu2 %v884_v14 }
 0x33f   :  { %5712 = vmatmul.msk.bf16.vlgmr.msra.gmra.mxu1 %vm905_vm3, %v9316_v22  ;;  %5723 = vmatmul.msk.bf16.vlgmr.msra.gmra.mxu2 %vm905_vm3, %v9318_v23 }
 0x340   :  { %1063 = vmatpush.bf16.msrb.mxu2 %v7140_v33 }
 0x34f   :  { %5713 = vmatmul.msk.bf16.gmra.mxu1 %vm905_vm3, %v9324_v24  ;;  %5724 = vmatmul.msk.bf16.gmra.mxu2 %vm905_vm3, %v9326_v25 }
 0x35f   :  { %5714 = vmatmul.msk.bf16.gmra.mxu1 %vm905_vm3, %v9332_v30  ;;  %5725 = vmatmul.msk.bf16.gmra.mxu2 %vm905_vm3, %v9334_v31 }
 0x39e   :  { %v1027_v32 = vpop.f32.mrf.mxu3 }
 0x3a6   :  { %v1029_v35 = vpop.f32.mrf.mxu3 }
 0x3ae   :  { %v1032_v36 = vpop.f32.mrf.mxu3 }
 0x3b6   :  { %v9340_v37 = vpop.f32.mrf.mxu3 }
 0x3bc   :  { %v928_v38 = vpop.f32.mrf.mxu1 }
 0x3be   :  { %v9342_v39 = vpop.f32.mrf.mxu3 }
 0x3c2   :  { %v981_v40 = vpop.f32.mrf.mxu2 }
 0x3c4   :  { %v930_v41 = vpop.f32.mrf.mxu1 }
 0x3c5   :  { %v942_v42 = vpack.c.bf16 %v930_v41, %v928_v38 }
 0x3c6   :  { %v1039_v43 = vpop.f32.mrf.mxu3 }
 0x3c7   :  { %5737 = vmatmul.msk.bf16.vlgmr.msrb.gmra.mxu2 %vm1009_vm1, %v942_v42 }
 0x3ca   :  { %v983_v44 = vpop.f32.mrf.mxu2 }
 0x3cb   :  { %v995_v45 = vpack.c.bf16 %v983_v44, %v981_v40 }
 0x3cc   :  { %v933_v46 = vpop.f32.mrf.mxu1 }
 0x3cd   :  { %5744 = vmatmul.msk.bf16.vlgmr.msrb.gmra.mxu0 %vm1009_vm1, %v995_v45 }
 0x3d2   :  { %v986_v49 = vpop.f32.mrf.mxu2 }
 0x3d4   :  { %v935_v50 = vpop.f32.mrf.mxu1 }
 0x3d5   :  { %v943_v52 = vpack.c.bf16 %v935_v50, %v933_v46  ;;  %v7145_v50 = vld [vmem:[#allocation18 + $0x10] sm:$0xff] }
 0x3d7   :  { %5738 = vmatmul.msk.bf16.vlgmr.msrb.gmra.mxu3 %vm1009_vm1, %v943_v52 }
 0x3da   :  { %v988_v53 = vpop.f32.mrf.mxu2 }
 0x3db   :  { %v996_v54 = vpack.c.bf16 %v988_v53, %v986_v49  ;;  %v7163_v49 = vld [vmem:[#allocation18 + $0xa0] sm:$0xff]  ;;  %v7144_v53 = vld [vmem:[#allocation18 + $0x8] sm:$0xff] }
 0x3dc   :  { %v938_v55 = vpop.f32.mrf.mxu1 }
 0x3dd   :  { %5745 = vmatmul.msk.bf16.gmra.mxu0 %vm1009_vm1, %v996_v54  ;;  %v944_v57 = vpack.c.bf16 %v938_v55, %v938_v55  ;;  %v7161_v54 = vld [vmem:[#allocation18 + $0x90] sm:$0xff]  ;;  %v7143_v55 = vld [vmem:[#allocation18] sm:$0xff] }
 0x3e2   :  { %v991_v56 = vpop.f32.mrf.mxu2 }
 0x3e3   :  { %v997_v59 = vpack.c.bf16 %v991_v56, %v991_v56  ;;  %v7160_v56 = vld [vmem:[#allocation18 + $0x88] sm:$0xff] }
 0x3e4   :  { %v940_v58 = vpop.f32.mrf.mxu1 }
 0x3e5   :  { %v7159_v58 = vld [vmem:[#allocation18 + $0x80] sm:$0xff] }
 0x3e7   :  { %5739 = vmatmul.msk.bf16.gmra.mxu3 %vm1009_vm1, %v944_v57 }
 0x3ea   :  { %v993_v60 = vpop.f32.mrf.mxu2 }
 0x3ed   :  { %5746 = vmatmul.msk.bf16.gmra.mxu0 %vm1009_vm1, %v997_v59 }
 0x44a   :  { %v1065_v2 = vpop.f32.mrf.mxu2  ;;  %v1106_v3 = vpop.f32.mrf.mxu0 }
 0x44b   :  { %v1066_v4 = vadd.f32 %v1065_v2, %v1027_v32 }
 0x44d   :  { %v1120_v5 = vadd.f32 %v1106_v3, %v1066_v4 }
 0x44f   :  { %v1129_v10 = vadd.f32 %v7565_v6, %v1120_v5 }
 0x451   :  { %v1134_v13 = vmax.f32 %v1129_v10, 0.0 }
 0x452   :  { %v1067_v7 = vpop.f32.mrf.mxu2  ;;  %v1108_v8 = vpop.f32.mrf.mxu0 }
 0x453   :  { %v1068_v9 = vadd.f32 %v1067_v7, %v1029_v35 }
 0x455   :  { %v1121_v11 = vadd.f32 %v1108_v8, %v1068_v9 }
 0x457   :  { %v1130_v12 = vadd.f32 %v7565_v6, %v1121_v11 }
 0x459   :  { %v1135_v14 = vmax.f32 %v1130_v12, 0.0 }
 0x45a   :  { %v1070_v15 = vpop.f32.mrf.mxu3  ;;  %v1111_v16 = vpop.f32.mrf.mxu0 }
 0x45b   :  { %v1139_v17 = vpack.c.bf16 %v1135_v14, %v1134_v13  ;;  %v1071_v18 = vadd.f32 %v1070_v15, %v1032_v36 }
 0x45d   :  { %1286 = vmatmul.bf16.vlgmr.msra.gmra.mxu3 %v1139_v17  ;;  %v1122_v19 = vadd.f32 %v1111_v16, %v1071_v18 }
 0x45f   :  { %v1131_v27 = vadd.f32 %v7565_v6, %v1122_v19 }
 0x461   :  { %v1136_v32 = vmax.f32 %v1131_v27, 0.0 }
 0x462   :  { %v1072_v20 = vpop.f32.mrf.mxu3  ;;  %v1113_v21 = vpop.f32.mrf.mxu0 }
 0x463   :  { %v1073_v26 = vadd.f32 %v1072_v20, %v9340_v37  ;;  %v7150_v37 = vld [vmem:[#allocation18 + $0x38] sm:$0xff] }
 0x464   :  { %1349 = vmatpush.bf16.msra.mxu0 %v7150_v37 }
 0x465   :  { %v1123_v28 = vadd.f32 %v1113_v21, %v1073_v26 }
 0x467   :  { %v1132_v29 = vadd.f32 %v7565_v6, %v1123_v28 }
 0x469   :  { %v1137_v33 = vmax.f32 %v1132_v29, 0.0 }
 0x46a   :  { %v1075_v34 = vpop.f32.mrf.mxu3  ;;  %v1116_v35 = vpop.f32.mrf.mxu0 }
 0x46b   :  { %v1076_v38 = vadd.f32 %v1075_v34, %v9342_v39  ;;  %v1140_v40 = vpack.c.bf16 %v1137_v33, %v1136_v32  ;;  %v7149_v39 = vld [vmem:[#allocation18 + $0x30] sm:$0xff] }
 0x46c   :  { %1350 = vmatpush.bf16.msra.mxu0 %v7149_v39 }
 0x46d   :  { %v1124_v41 = vadd.f32 %v1116_v35, %v1076_v38  ;;  %1291 = vmatmul.bf16.gmra.mxu3 %v1140_v40  ;;  %v7566_v35 = vld [vmem:[#allocation19] ss:$0 sm:$0xff] }
 0x46f   :  { %v1133_v42 = vadd.f32 %v7565_v6, %v1124_v41 }
 0x470   :  { %1351 = vmatpush.bf16.msra.mxu0 %v7148_v47 }
 0x471   :  { %v1138_v36 = vmax.f32 %v1133_v42, 0.0 }
 0x472   :  { %v1077_v43 = vpop.f32.mrf.mxu3  ;;  %v1118_v44 = vpop.f32.mrf.mxu0 }
 0x473   :  { %v1141_v45 = vpack.c.bf16 %v1138_v36, %v1138_v36 }
 0x474   :  { %1352 = vmatpush.bf16.msra.mxu0 %v7147_v48 }
 0x475   :  { %v1143_v46 = vsel %vm915_vm2, %v1141_v45, 0 }
 0x476   :  { %1150 = vmatpush.bf16.msrb.mxu1 %v1143_v46  ;;  %1176 = vmatpush.bf16.msra.mxu2 %v1143_v46 }
 0x47a   :  { %1151 = vmatpush.bf16.msrb.mxu1 %v1140_v40  ;;  %1177 = vmatpush.bf16.msra.mxu2 %v1140_v40 }
 0x47d   :  { %1296 = vmatmul.bf16.gmra.mxu3 %v1141_v45 }
 0x47e   :  { %1152 = vmatpush.bf16.msrb.mxu1 %v1139_v17  ;;  %1178 = vmatpush.bf16.msra.mxu2 %v1139_v17 }
 0x481   :  { %5747 = vmatmul.msk.bf16.vlgmr.msrb.gmra.mxu1 %vm905_vm3, %v9316_v22  ;;  %5750 = vmatmul.msk.bf16.vlgmr.msra.gmra.mxu2 %vm905_vm3, %v9318_v23  ;;  %v7166_v22 = vld [vmem:[#allocation18 + $0xb8] sm:$0xff]  ;;  %v7165_v23 = vld [vmem:[#allocation18 + $0xb0] sm:$0xff] }
 0x482   :  { %1437 = vmatpush.bf16.msra.mxu1 %v7166_v22 }
 0x486   :  { %1438 = vmatpush.bf16.msra.mxu1 %v7165_v23 }
 0x491   :  { %5748 = vmatmul.msk.bf16.gmra.mxu1 %vm905_vm3, %v9324_v24  ;;  %5751 = vmatmul.msk.bf16.gmra.mxu2 %vm905_vm3, %v9326_v25  ;;  %v7164_v24 = vld [vmem:[#allocation18 + $0xa8] sm:$0xff]  ;;  %v7146_v25 = vld [vmem:[#allocation18 + $0x18] sm:$0xff] }
 0x492   :  { %1439 = vmatpush.bf16.msra.mxu1 %v7164_v24  ;;  %1353 = vmatpush.bf16.msra.mxu0 %v7146_v25 }
 0x496   :  { %1440 = vmatpush.bf16.msra.mxu1 %v7163_v49  ;;  %1354 = vmatpush.bf16.msra.mxu0 %v7145_v50 }
 0x49a   :  { %1441 = vmatpush.bf16.msra.mxu1 %v7162_v51  ;;  %1355 = vmatpush.bf16.msra.mxu0 %v7144_v53 }
 0x49e   :  { %1442 = vmatpush.bf16.msra.mxu1 %v7161_v54  ;;  %1356 = vmatpush.bf16.msra.mxu0 %v7143_v55 }
 0x4a1   :  { %5752 = vmatmul.msk.bf16.gmra.mxu2 %vm905_vm3, %v9334_v31  ;;  %5749 = vmatmul.msk.bf16.gmra.mxu1 %vm905_vm3, %v9332_v30 }
 0x4a2   :  { %1443 = vmatpush.bf16.msra.mxu1 %v7160_v56 }
 0x4a6   :  { %1444 = vmatpush.bf16.msra.mxu1 %v7159_v58 }
 0x4e0   :  { %v1287_v52 = vpop.f32.mrf.mxu3 }
 0x4e8   :  { %v1289_v57 = vpop.f32.mrf.mxu3 }
 0x4f0   :  { %v1292_v59 = vpop.f32.mrf.mxu3 }
 0x4f8   :  { %v1294_v60 = vpop.f32.mrf.mxu3 }
 0x4fe   :  { %v1154_v61 = vpop.f32.mrf.mxu1 }
 0x500   :  { %v1297_v62 = vpop.f32.mrf.mxu3 }
 0x504   :  { %v1180_v63 = vpop.f32.mrf.mxu2 }
 0x506   :  { %v1156_v0 = vpop.f32.mrf.mxu1 }
 0x507   :  { %v1168_v1 = vpack.c.bf16 %v1156_v0, %v1154_v61 }
 0x508   :  { %v1299_v2 = vpop.f32.mrf.mxu3 }
 0x509   :  { %1357 = vmatmul.bf16.vlgmr.msra.gmra.mxu0 %v1168_v1  ;;  %v7167_v2 = vld [vmem:[#allocation21] sm:$0xff] }
 0x50c   :  { %v1182_v3 = vpop.f32.mrf.mxu2 }
 0x50d   :  { %v1194_v4 = vpack.c.bf16 %v1182_v3, %v1180_v63  ;;  %v1486_v3 = vld [vmem:[#allocation21 + $0x8] sm:$0x3] }
 0x50e   :  { %v1159_v5 = vpop.f32.mrf.mxu1 }
 0x50f   :  { %1445 = vmatmul.bf16.vlgmr.msra.gmra.mxu1 %v1194_v4  ;;  %v1492_v4 = vunpack.c.l.b16 %v1486_v3 }
 0x514   :  { %v1185_v6 = vpop.f32.mrf.mxu2 }
 0x516   :  { %v1161_v7 = vpop.f32.mrf.mxu1 }
 0x517   :  { %v1169_v8 = vpack.c.bf16 %v1161_v7, %v1159_v5  ;;  %v1494_v5 = vpack.c.b16 %v1492_v4, %v1492_v4  ;;  %v1539_v7 = vld [vmem:[#allocation22 + $0x8] sm:$0x3] }
 0x519   :  { %1362 = vmatmul.bf16.gmra.mxu0 %v1169_v8  ;;  %v1545_v8 = vunpack.c.l.b16 %v1539_v7  ;;  %v7190_v7 = vld [vmem:[#allocation27 + $0x18] sm:$0xff] }
 0x51c   :  { %v1187_v9 = vpop.f32.mrf.mxu2 }
 0x51d   :  { %v1195_v10 = vpack.c.bf16 %v1187_v9, %v1185_v6  ;;  %v7168_v6 = vld [vmem:[#allocation22] sm:$0xff]  ;;  %v1547_v9 = vpack.c.b16 %v1545_v8, %v1545_v8 }
 0x51e   :  { %v1164_v11 = vpop.f32.mrf.mxu1  ;;  %v7189_v8 = vld [vmem:[#allocation27 + $0x10] sm:$0xff] }
 0x51f   :  { %1450 = vmatmul.bf16.gmra.mxu1 %v1195_v10  ;;  %v1170_v13 = vpack.c.bf16 %v1164_v11, %v1164_v11  ;;  %v7176_v10 = vld [vmem:[#allocation24 + $0x38] sm:$0xff] }
 0x520   :  { %v7184_v11 = vld [vmem:[#allocation25 + $0x38] sm:$0xff]  ;;  %1641 = vmatpush.bf16.msrb.mxu3 %v7176_v10  ;;  %v7188_v10 = vld [vmem:[#allocation27 + $0x8] sm:$0xff] }
 0x521   :  { %1723 = vmatpush.bf16.msrb.mxu0 %v7184_v11  ;;  %v7197_v11 = vld [vmem:[#allocation27 + $0x50] sm:$0xff] }
 0x524   :  { %v1190_v12 = vpop.f32.mrf.mxu2 }
 0x525   :  { %v1196_v15 = vpack.c.bf16 %v1190_v12, %v1190_v12  ;;  %v7175_v12 = vld [vmem:[#allocation24 + $0x30] sm:$0xff] }
 0x526   :  { %v1166_v14 = vpop.f32.mrf.mxu1  ;;  %1642 = vmatpush.bf16.msrb.mxu3 %v7175_v12  ;;  %v7187_v12 = vld [vmem:[#allocation27] sm:$0xff] }
 0x527   :  { %v7174_v14 = vld [vmem:[#allocation24 + $0x28] sm:$0xff] }
 0x529   :  { %1367 = vmatmul.bf16.gmra.mxu0 %v1170_v13  ;;  %v7183_v13 = vld [vmem:[#allocation25 + $0x30] sm:$0xff] }
 0x52a   :  { %1724 = vmatpush.bf16.msrb.mxu0 %v7183_v13  ;;  %1643 = vmatpush.bf16.msrb.mxu3 %v7174_v14  ;;  %v7196_v13 = vld [vmem:[#allocation27 + $0x48] sm:$0xff]  ;;  %v7195_v14 = vld [vmem:[#allocation27 + $0x40] sm:$0xff] }
 0x52c   :  { %v1192_v16 = vpop.f32.mrf.mxu2 }
 0x52d   :  { %v7173_v16 = vld [vmem:[#allocation24 + $0x20] sm:$0xff] }
 0x52e   :  { %1644 = vmatpush.bf16.msrb.mxu3 %v7173_v16 }
 0x52f   :  { %1455 = vmatmul.bf16.gmra.mxu1 %v1196_v15  ;;  %v7182_v15 = vld [vmem:[#allocation25 + $0x28] sm:$0xff] }
 0x530   :  { %1725 = vmatpush.bf16.msrb.mxu0 %v7182_v15 }
 0x586   :  { %v1358_v17 = vpop.f32.mrf.mxu0 }
 0x587   :  { %v1359_v42 = vadd.f32 %v1358_v17, %v1287_v52  ;;  %v7181_v17 = vld [vmem:[#allocation25 + $0x20] sm:$0xff] }
 0x588   :  { %1726 = vmatpush.bf16.msrb.mxu0 %v7181_v17 }
 0x58c   :  { %v1446_v18 = vpop.f32.mrf.mxu1 }
 0x58d   :  { %v1460_v46 = vadd.f32 %v1446_v18, %v1359_v42  ;;  %v7172_v18 = vld [vmem:[#allocation24 + $0x18] sm:$0xff] }
 0x58e   :  { %v1360_v19 = vpop.f32.mrf.mxu0  ;;  %1645 = vmatpush.bf16.msrb.mxu3 %v7172_v18  ;;  %v7214_v18 = vld [vmem:[#allocation30 + $0x78] sm:$0xff] }
 0x58f   :  { %v1361_v38 = vadd.f32 %v1360_v19, %v1289_v57  ;;  %v1469_v24 = vadd.f32 %v7566_v35, %v1460_v46  ;;  %v7180_v19 = vld [vmem:[#allocation25 + $0x18] sm:$0xff] }
 0x590   :  { %1727 = vmatpush.bf16.msrb.mxu0 %v7180_v19  ;;  %v7213_v19 = vld [vmem:[#allocation30 + $0x70] sm:$0xff] }
 0x591   :  { %v1474_v55 = vmax.f32 %v1469_v24, 0.0 }
 0x594   :  { %v1448_v20 = vpop.f32.mrf.mxu1 }
 0x595   :  { %v1461_v36 = vadd.f32 %v1448_v20, %v1361_v38 }
 0x596   :  { %v1363_v21 = vpop.f32.mrf.mxu0 }
 0x597   :  { %v1364_v33 = vadd.f32 %v1363_v21, %v1292_v59  ;;  %v1470_v47 = vadd.f32 %v7566_v35, %v1461_v36  ;;  %v7171_v21 = vld [vmem:[#allocation24 + $0x10] sm:$0xff] }
 0x598   :  { %1646 = vmatpush.bf16.msrb.mxu3 %v7171_v21 }
 0x599   :  { %v1475_v50 = vmax.f32 %v1470_v47, 0.0  ;;  %v7191_v47 = vld [vmem:[#allocation27 + $0x20] sm:$0xff] }
 0x59b   :  { %v1480_v57 = vpack.c.bf16 %v1475_v50, %v1475_v50 }
 0x59c   :  { %v1451_v26 = vpop.f32.mrf.mxu1 }
 0x59d   :  { %v1462_v40 = vadd.f32 %v1451_v26, %v1364_v33  ;;  %v7179_v26 = vld [vmem:[#allocation25 + $0x10] sm:$0xff]  ;;  %v7177_v33 = vld [vmem:[#allocation25] sm:$0xff] }
 0x59e   :  { %v1365_v27 = vpop.f32.mrf.mxu0  ;;  %1728 = vmatpush.bf16.msrb.mxu0 %v7179_v26 }
 0x59f   :  { %v1366_v29 = vadd.f32 %v1365_v27, %v1294_v60  ;;  %v1471_v37 = vadd.f32 %v7566_v35, %v1462_v40  ;;  %v1479_v60 = vpack.c.bf16 %v1474_v55, %v1474_v55  ;;  %v7170_v27 = vld [vmem:[#allocation24 + $0x8] sm:$0xff] }
 0x5a0   :  { %1647 = vmatpush.bf16.msrb.mxu3 %v7170_v27 }
 0x5a1   :  { %v1476_v25 = vmax.f32 %v1471_v37, 0.0  ;;  %v1500_v0 = vunpack.c.l.b16 %v1479_v60  ;;  %v7194_v37 = vld [vmem:[#allocation27 + $0x38] sm:$0xff] }
 0x5a3   :  { %v1481_v52 = vpack.c.bf16 %v1476_v25, %v1476_v25 }
 0x5a4   :  { %v1453_v28 = vpop.f32.mrf.mxu1 }
 0x5a5   :  { %v1463_v34 = vadd.f32 %v1453_v28, %v1366_v29  ;;  %v1502_v61 = vunpack.c.l.b16 %v1481_v52  ;;  %v7178_v28 = vld [vmem:[#allocation25 + $0x8] sm:$0xff] }
 0x5a6   :  { %v1368_v32 = vpop.f32.mrf.mxu0  ;;  %1729 = vmatpush.bf16.msrb.mxu0 %v7178_v28 }
 0x5a7   :  { %v1369_v41 = vadd.f32 %v1368_v32, %v1297_v62  ;;  %v1472_v43 = vadd.f32 %v7566_v35, %v1463_v34  ;;  %v1501_v62 = vunpack.c.l.b16 %v1480_v57  ;;  %v7169_v32 = vld [vmem:[#allocation24] sm:$0xff] }
 0x5a8   :  { %1648 = vmatpush.bf16.msrb.mxu3 %v7169_v32 }
 0x5a9   :  { %v1477_v23 = vmax.f32 %v1472_v43, 0.0  ;;  %v9375_v1 = vpack.c.b16 %v1501_v62, %v1500_v0  ;;  %v9389_v62 = vld [vmem:[#allocation10] sm:$0xff]  ;;  %v1789_v0 = vld [vmem:[#allocation10 + $0x8] sm:$0x3] }
 0x5aa   :  { %1730 = vmatpush.bf16.msrb.mxu0 %v7177_v33  ;;  %v1795_v3 = vunpack.c.l.b16 %v1789_v0 }
 0x5ab   :  { %v1482_v51 = vpack.c.bf16 %v1477_v23, %v1477_v23 }
 0x5ac   :  { %v1456_v44 = vpop.f32.mrf.mxu1  ;;  %1875 = vmatpush.bf16.msra.mxu3 %v7194_v37 }
 0x5ad   :  { %v1464_v45 = vadd.f32 %v1456_v44, %v1369_v41  ;;  %v1503_v58 = vunpack.c.l.b16 %v1482_v51 }
 0x5ae   :  { %v1370_v39 = vpop.f32.mrf.mxu0  ;;  %1923 = vmatpush.bf16.msra.mxu0 %v7190_v7 }
 0x5af   :  { %v1473_v22 = vadd.f32 %v7566_v35, %v1464_v45  ;;  %v9372_v63 = vpack.c.b16 %v1503_v58, %v1502_v61  ;;  %v7193_v39 = vld [vmem:[#allocation27 + $0x30] sm:$0xff]  ;;  %v9387_v61 = vld [vmem:[#allocation9] sm:$0xff] }
 0x5b0   :  { %1876 = vmatpush.bf16.msra.mxu3 %v7193_v39 }
 0x5b1   :  { %v1478_v48 = vmax.f32 %v1473_v22, 0.0  ;;  %v7192_v22 = vld [vmem:[#allocation27 + $0x28] sm:$0xff] }
 0x5b2   :  { %1924 = vmatpush.bf16.msra.mxu0 %v7189_v8 }
 0x5b3   :  { %v1483_v49 = vpack.c.bf16 %v1478_v48, %v1478_v48 }
 0x5b4   :  { %v1458_v53 = vpop.f32.mrf.mxu1  ;;  %1877 = vmatpush.bf16.msra.mxu3 %v7192_v22 }
 0x5b5   :  { %v1504_v54 = vunpack.c.l.b16 %v1483_v49 }
 0x5b6   :  { %1925 = vmatpush.bf16.msra.mxu0 %v7188_v10  ;;  %v7222_v10 = vld [vmem:[#allocation30 + $0xb8] sm:$0xff] }
 0x5b7   :  { %v9365_v56 = vpack.c.b16 %v1504_v54, %v1504_v54 }
 0x5b8   :  { %1878 = vmatpush.bf16.msra.mxu3 %v7191_v47 }
 0x5b9   :  { %v9369_v59 = vsel %vm915_vm2, %v9365_v56, 0 }
 0x5ba   :  { %1524 = vmatpush.bf16.msrb.mxu2 %v9369_v59  ;;  %1926 = vmatpush.bf16.msra.mxu0 %v7187_v12  ;;  %v7221_v12 = vld [vmem:[#allocation30 + $0xb0] sm:$0xff] }
 0x5be   :  { %1525 = vmatpush.bf16.msrb.mxu2 %v9372_v63 }
 0x5c2   :  { %1526 = vmatpush.bf16.msrb.mxu2 %v9375_v1 }
 0x5c5   :  { %5853 = vmatmul.msk.bf16.vlgmr.msrb.gmra.mxu2 %vm905_vm3, %v7167_v2  ;;  %v1748_v2 = vld [vmem:[#allocation9 + $0x8] sm:$0x3] }
 0x5c6   :  { %1559 = vmatpush.bf16.msra.mxu2 %v9369_v59  ;;  %v1754_v4 = vunpack.c.l.b16 %v1748_v2 }
 0x5ca   :  { %1560 = vmatpush.bf16.msra.mxu2 %v9372_v63 }
 0x5ce   :  { %1561 = vmatpush.bf16.msra.mxu2 %v9375_v1 }
 0x5d5   :  { %5854 = vmatmul.msk.bf16.gmra.mxu2 %vm905_vm3, %v1494_v5  ;;  %v9396_v5 = vpack.c.b16 %v1795_v3, %v1795_v3 }
 0x5e5   :  { %5859 = vmatmul.msk.bf16.vlgmr.msra.gmra.mxu2 %vm905_vm3, %v7168_v6  ;;  %v9398_v6 = vpack.c.b16 %v1754_v4, %v1754_v4 }
 0x5f5   :  { %5860 = vmatmul.msk.bf16.gmra.mxu2 %vm905_vm3, %v1547_v9  ;;  %v7198_v9 = vld [vmem:[#allocation27 + $0x58] sm:$0xff] }
 0x648   :  { %v1528_v20 = vpop.f32.mrf.mxu2 }
 0x650   :  { %v1530_v29 = vpop.f32.mrf.mxu2 }
 0x658   :  { %v1533_v34 = vpop.f32.mrf.mxu2 }
 0x660   :  { %v1535_v35 = vpop.f32.mrf.mxu2 }
 0x668   :  { %v1563_v38 = vpop.f32.mrf.mxu2 }
 0x669   :  { %v1572_v41 = vmax.f32 %v1528_v20, %v1563_v38 }
 0x670   :  { %v1565_v40 = vpop.f32.mrf.mxu2 }
 0x671   :  { %v1573_v42 = vmax.f32 %v1530_v29, %v1565_v40 }
 0x673   :  { %v1575_v36 = vpack.c.bf16 %v1573_v42, %v1572_v41  ;;  %v7212_v42 = vld [vmem:[#allocation30 + $0x68] sm:$0xff] }
 0x675   :  { %1649 = vmatmul.bf16.vlgmr.msrb.gmra.mxu3 %v1575_v36  ;;  %1731 = vmatmul.bf16.vlgmr.msrb.gmra.mxu0 %v1575_v36  ;;  %v7211_v36 = vld [vmem:[#allocation30 + $0x60] sm:$0xff] }
 0x676   :  { %2133 = vmatpush.bf16.msrb.mxu0 %v7214_v18  ;;  %v7218_v18 = vld [vmem:[#allocation30 + $0x98] sm:$0xff] }
 0x678   :  { %v1568_v43 = vpop.f32.mrf.mxu2 }
 0x679   :  { %v1574_v44 = vmax.f32 %v1533_v34, %v1568_v43  ;;  %v7210_v43 = vld [vmem:[#allocation30 + $0x58] sm:$0xff] }
 0x67a   :  { %2134 = vmatpush.bf16.msrb.mxu0 %v7213_v19  ;;  %v7201_v19 = vld [vmem:[#allocation30 + $0x10] sm:$0xff] }
 0x67b   :  { %v1576_v46 = vpack.c.bf16 %v1574_v44, %v1574_v44  ;;  %v7209_v44 = vld [vmem:[#allocation30 + $0x50] sm:$0xff] }
 0x67e   :  { %2135 = vmatpush.bf16.msrb.mxu0 %v7212_v42 }
 0x680   :  { %v1570_v45 = vpop.f32.mrf.mxu2 }
 0x681   :  { %v7208_v45 = vld [vmem:[#allocation30 + $0x48] sm:$0xff] }
 0x682   :  { %2136 = vmatpush.bf16.msrb.mxu0 %v7211_v36 }
 0x685   :  { %1654 = vmatmul.bf16.gmra.mxu3 %v1576_v46  ;;  %1736 = vmatmul.bf16.gmra.mxu0 %v1576_v46  ;;  %v7207_v46 = vld [vmem:[#allocation30 + $0x40] sm:$0xff] }
 0x686   :  { %2137 = vmatpush.bf16.msrb.mxu0 %v7210_v43 }
 0x68a   :  { %2138 = vmatpush.bf16.msrb.mxu0 %v7209_v44 }
 0x68e   :  { %2139 = vmatpush.bf16.msrb.mxu0 %v7208_v45 }
 0x692   :  { %2140 = vmatpush.bf16.msrb.mxu0 %v7207_v46 }
 0x6f2   :  { %v1732_v23 = vpop.f32.mrf.mxu0 }
 0x6f8   :  { %v1650_v48 = vpop.f32.mrf.mxu3 }
 0x6f9   :  { %v1741_v49 = vmax.f32 %v1650_v48, %v1732_v23  ;;  %v7567_v48 = vld [vmem:[#allocation28] ss:$0 sm:$0xff] }
 0x6fa   :  { %v1734_v24 = vpop.f32.mrf.mxu0 }
 0x700   :  { %v1652_v25 = vpop.f32.mrf.mxu3 }
 0x701   :  { %v1742_v50 = vmax.f32 %v1652_v25, %v1734_v24 }
 0x702   :  { %v1737_v51 = vpop.f32.mrf.mxu0 }
 0x703   :  { %v1744_v53 = vpack.c.bf16 %v1742_v50, %v1741_v49 }
 0x705   :  { %5953 = vmatmul.msk.bf16.vlgmr.msra.gmra.mxu3 %vm1865_vm4, %v1744_v53 }
 0x708   :  { %v1655_v54 = vpop.f32.mrf.mxu3 }
 0x709   :  { %v1743_v55 = vmax.f32 %v1655_v54, %v1737_v51 }
 0x70a   :  { %v1739_v52 = vpop.f32.mrf.mxu0 }
 0x70b   :  { %v1745_v57 = vpack.c.bf16 %v1743_v55, %v1743_v55 }
 0x70d   :  { %v1765_v58 = vsel %vm915_vm2, %v1745_v57, 0 }
 0x70e   :  { %1773 = vmatpush.bf16.msrb.mxu1 %v1765_v58  ;;  %1810 = vmatpush.bf16.msrb.mxu2 %v1765_v58 }
 0x710   :  { %v1657_v60 = vpop.f32.mrf.mxu3 }
 0x712   :  { %1774 = vmatpush.bf16.msrb.mxu1 %v1744_v53  ;;  %1811 = vmatpush.bf16.msrb.mxu2 %v1744_v53 }
 0x715   :  { %5929 = vmatmul.msk.bf16.vlgmr.msrb.gmra.mxu1 %vm1757_vm5, %v9387_v61  ;;  %5935 = vmatmul.msk.bf16.vlgmr.msrb.gmra.mxu2 %vm1757_vm5, %v9389_v62 }
 0x716   :  { %5954 = vmatmul.msk.bf16.gmra.mxu3 %vm1865_vm4, %v1745_v57  ;;  %1980 = vmatpush.bf16.msra.mxu1 %v7198_v9  ;;  %v7206_v9 = vld [vmem:[#allocation30 + $0x38] sm:$0xff] }
 0x71a   :  { %1981 = vmatpush.bf16.msra.mxu1 %v7197_v11  ;;  %v7205_v11 = vld [vmem:[#allocation30 + $0x30] sm:$0xff] }
 0x71e   :  { %1982 = vmatpush.bf16.msra.mxu1 %v7196_v13  ;;  %v7204_v13 = vld [vmem:[#allocation30 + $0x28] sm:$0xff] }
 0x722   :  { %1983 = vmatpush.bf16.msra.mxu1 %v7195_v14  ;;  %v7220_v14 = vld [vmem:[#allocation30 + $0xa8] sm:$0xff] }
 0x725   :  { %5936 = vmatmul.msk.bf16.gmra.mxu2 %vm1757_vm5, %v9396_v5  ;;  %5930 = vmatmul.msk.bf16.gmra.mxu1 %vm1757_vm5, %v9398_v6 }
 0x726   :  { %2199 = vmatpush.bf16.msrb.mxu1 %v7206_v9 }
 0x72a   :  { %2200 = vmatpush.bf16.msrb.mxu1 %v7205_v11 }
 0x72e   :  { %2201 = vmatpush.bf16.msrb.mxu1 %v7204_v13 }
 0x788   :  { %v1880_v15 = vpop.f32.mrf.mxu3 }
 0x790   :  { %v1882_v16 = vpop.f32.mrf.mxu3 }
 0x792   :  { %v1776_v17 = vpop.f32.mrf.mxu1 }
 0x798   :  { %v1813_v20 = vpop.f32.mrf.mxu2 }
 0x799   :  { %v1885_v21 = vpop.f32.mrf.mxu3 }
 0x79a   :  { %v1778_v26 = vpop.f32.mrf.mxu1 }
 0x79b   :  { %v1785_v27 = vpack.c.bf16 %v1778_v26, %v1776_v17  ;;  %v7202_v17 = vld [vmem:[#allocation30 + $0x18] sm:$0xff]  ;;  %v7216_v26 = vld [vmem:[#allocation30 + $0x88] sm:$0xff] }
 0x79d   :  { %5971 = vmatmul.msk.bf16.vlgmr.msra.gmra.mxu0 %vm1865_vm4, %v1785_v27  ;;  %v7199_v27 = vld [vmem:[#allocation30] sm:$0xff] }
 0x7a0   :  { %v1815_v28 = vpop.f32.mrf.mxu2 }
 0x7a1   :  { %v1822_v29 = vpack.c.bf16 %v1815_v28, %v1813_v20  ;;  %v1887_v32 = vpop.f32.mrf.mxu3  ;;  %v7217_v20 = vld [vmem:[#allocation30 + $0x90] sm:$0xff]  ;;  %v7215_v28 = vld [vmem:[#allocation30 + $0x80] sm:$0xff] }
 0x7a2   :  { %v1781_v33 = vpop.f32.mrf.mxu1 }
 0x7a3   :  { %5989 = vmatmul.msk.bf16.vlgmr.msra.gmra.mxu1 %vm1865_vm4, %v1822_v29  ;;  %v1786_v35 = vpack.c.bf16 %v1781_v33, %v1781_v33 }
 0x7a8   :  { %v1818_v34 = vpop.f32.mrf.mxu2 }
 0x7a9   :  { %v1823_v40 = vpack.c.bf16 %v1818_v34, %v1818_v34 }
 0x7aa   :  { %v1783_v38 = vpop.f32.mrf.mxu1 }
 0x7ad   :  { %5972 = vmatmul.msk.bf16.gmra.mxu0 %vm1865_vm4, %v1786_v35 }
 0x7b0   :  { %v1820_v41 = vpop.f32.mrf.mxu2 }
 0x7b3   :  { %5990 = vmatmul.msk.bf16.gmra.mxu1 %vm1865_vm4, %v1823_v40 }
 0x81a   :  { %v1928_v37 = vpop.f32.mrf.mxu0 }
 0x81b   :  { %v1929_v47 = vadd.f32 %v1928_v37, %v1880_v15  ;;  %v7203_v15 = vld [vmem:[#allocation30 + $0x20] sm:$0xff] }
 0x81c   :  { %2202 = vmatpush.bf16.msrb.mxu1 %v7203_v15 }
 0x820   :  { %v1985_v39 = vpop.f32.mrf.mxu1  ;;  %2203 = vmatpush.bf16.msrb.mxu1 %v7202_v17 }
 0x821   :  { %v1994_v23 = vadd.f32 %v1985_v39, %v1929_v47 }
 0x822   :  { %v1930_v22 = vpop.f32.mrf.mxu0 }
 0x823   :  { %v1931_v24 = vadd.f32 %v1930_v22, %v1882_v16  ;;  %v2001_v49 = vadd.f32 %v7567_v48, %v1994_v23  ;;  %v7219_v16 = vld [vmem:[#allocation30 + $0xa0] sm:$0xff] }
 0x824   :  { %2204 = vmatpush.bf16.msrb.mxu1 %v7201_v19 }
 0x825   :  { %v2004_v54 = vmax.f32 %v2001_v49, 0.0  ;;  %v7239_v49 = vld [vmem:[#allocation37 + $0x30] sm:$0xff] }
 0x828   :  { %v1987_v25 = vpop.f32.mrf.mxu1 }
 0x829   :  { %v1995_v50 = vadd.f32 %v1987_v25, %v1931_v24  ;;  %v7240_v24 = vld [vmem:[#allocation37 + $0x38] sm:$0xff]  ;;  %v7231_v25 = vld [vmem:[#allocation36 + $0x30] sm:$0xff] }
 0x82a   :  { %v1933_v51 = vpop.f32.mrf.mxu0 }
 0x82b   :  { %v2002_v53 = vadd.f32 %v7567_v48, %v1995_v50  ;;  %v1934_v57 = vadd.f32 %v1933_v51, %v1885_v21  ;;  %v7200_v21 = vld [vmem:[#allocation30 + $0x8] sm:$0xff] }
 0x82c   :  { %2205 = vmatpush.bf16.msrb.mxu1 %v7200_v21  ;;  %v6093_v21 = vld [vmem:[#allocation33] sm:$0xf] }
 0x82d   :  { %v2005_v55 = vmax.f32 %v2002_v53, 0.0 }
 0x82f   :  { %v2007_v52 = vpack.c.bf16 %v2005_v55, %v2004_v54  ;;  %v7230_v54 = vld [vmem:[#allocation36 + $0x28] sm:$0xff] }
 0x830   :  { %v1990_v58 = vpop.f32.mrf.mxu1  ;;  %2206 = vmatpush.bf16.msrb.mxu1 %v7199_v27  ;;  %v7238_v55 = vld [vmem:[#allocation37 + $0x28] sm:$0xff]  ;;  %v7223_v27 = vld [vmem:[#allocation33] sm:$0x30] }
 0x831   :  { %v1996_v60 = vadd.f32 %v1990_v58, %v1934_v57  ;;  %2141 = vmatmul.bf16.vlgmr.msrb.gmra.mxu0 %v2007_v52 }
 0x832   :  { %v1935_v0 = vpop.f32.mrf.mxu0 }
 0x833   :  { %v2003_v2 = vadd.f32 %v7567_v48, %v1996_v60  ;;  %v7232_v48 = vld [vmem:[#allocation36 + $0x38] sm:$0xff]  ;;  %v7568_v60 = vld [vmem:[#allocation31] ss:$0 sm:$0xff] }
 0x834   :  { %2443 = vmatpush.bf16.msra.mxu1 %v7232_v48 }
 0x835   :  { %v2006_v3 = vmax.f32 %v2003_v2, 0.0 }
 0x837   :  { %v2008_v4 = vpack.c.bf16 %v2006_v3, %v2006_v3 }
 0x838   :  { %v1992_v7 = vpop.f32.mrf.mxu1  ;;  %2444 = vmatpush.bf16.msra.mxu1 %v7231_v25  ;;  %v7250_v25 = vld [vmem:[#allocation39 + $0x38] sm:$0xff] }
 0x839   :  { %v2010_v8 = vsel %vm915_vm2, %v2008_v4, 0 }
 0x83a   :  { %2018 = vmatpush.bf16.msra.mxu2 %v2010_v8  ;;  %2038 = vmatpush.bf16.msrb.mxu3 %v2010_v8 }
 0x83c   :  { %2445 = vmatpush.bf16.msra.mxu1 %v7230_v54 }
 0x83e   :  { %2019 = vmatpush.bf16.msra.mxu2 %v2007_v52  ;;  %2039 = vmatpush.bf16.msrb.mxu3 %v2007_v52 }
 0x841   :  { %5991 = vmatmul.msk.bf16.vlgmr.msra.gmra.mxu2 %vm1757_vm5, %v9387_v61  ;;  %5993 = vmatmul.msk.bf16.vlgmr.msrb.gmra.mxu3 %vm1757_vm5, %v9389_v62 }
 0x842   :  { %2146 = vmatmul.bf16.gmra.mxu0 %v2008_v4  ;;  %2282 = vmatpush.bf16.msrb.mxu2 %v7222_v10 }
 0x846   :  { %2283 = vmatpush.bf16.msrb.mxu2 %v7221_v12 }
 0x84a   :  { %2284 = vmatpush.bf16.msrb.mxu2 %v7220_v14 }
 0x84e   :  { %2285 = vmatpush.bf16.msrb.mxu2 %v7219_v16 }
 0x851   :  { %5994 = vmatmul.msk.bf16.gmra.mxu3 %vm1757_vm5, %v9396_v5  ;;  %5992 = vmatmul.msk.bf16.gmra.mxu2 %vm1757_vm5, %v9398_v6 }
 0x852   :  { %2286 = vmatpush.bf16.msrb.mxu2 %v7218_v18 }
 0x856   :  { %2287 = vmatpush.bf16.msrb.mxu2 %v7217_v20 }
 0x85a   :  { %2288 = vmatpush.bf16.msrb.mxu2 %v7216_v26 }
 0x85e   :  { %2289 = vmatpush.bf16.msrb.mxu2 %v7215_v28  ;;  %v6098_v28 = vld [vmem:[#allocation34] sm:$0xf] }
 0x862   :  { %2521 = vmatpush.bf16.msra.mxu2 %v7240_v24 }
 0x866   :  { %2522 = vmatpush.bf16.msra.mxu2 %v7239_v49  ;;  %v7249_v49 = vld [vmem:[#allocation39 + $0x30] sm:$0xff] }
 0x86a   :  { %2523 = vmatpush.bf16.msra.mxu2 %v7238_v55 }
 0x8ae   :  { %v2142_v29 = vpop.f32.mrf.mxu0 }
 0x8b6   :  { %v2144_v32 = vpop.f32.mrf.mxu0 }
 0x8bf   :  { %v2147_v33 = vpop.f32.mrf.mxu0 }
 0x8c4   :  { %v2021_v34 = vpop.f32.mrf.mxu2  ;;  %v2041_v35 = vpop.f32.mrf.mxu3 }
 0x8c7   :  { %v2149_v38 = vpop.f32.mrf.mxu0 }
 0x8c8   :  { %v7237_v38 = vld [vmem:[#allocation37 + $0x20] sm:$0xff] }
 0x8c9   :  { %2524 = vmatpush.bf16.msra.mxu2 %v7237_v38 }
 0x8cc   :  { %v2023_v40 = vpop.f32.mrf.mxu2  ;;  %v2043_v41 = vpop.f32.mrf.mxu3 }
 0x8cd   :  { %v2030_v42 = vpack.c.bf16 %v2023_v40, %v2021_v34  ;;  %v2050_v36 = vpack.c.bf16 %v2043_v41, %v2041_v35  ;;  %v7229_v35 = vld [vmem:[#allocation36 + $0x20] sm:$0xff]  ;;  %v7228_v40 = vld [vmem:[#allocation36 + $0x18] sm:$0xff] }
 0x8ce   :  { %2446 = vmatpush.bf16.msra.mxu1 %v7229_v35  ;;  %v7236_v41 = vld [vmem:[#allocation37 + $0x18] sm:$0xff]  ;;  %v7264_v35 = vld [vmem:[#allocation42 + $0x48] sm:$0xff] }
 0x8cf   :  { %2207 = vmatmul.bf16.vlgmr.msrb.gmra.mxu1 %v2030_v42  ;;  %2290 = vmatmul.bf16.vlgmr.msrb.gmra.mxu2 %v2050_v36  ;;  %v7227_v42 = vld [vmem:[#allocation36 + $0x10] sm:$0xff] }
 0x8d0   :  { %2525 = vmatpush.bf16.msra.mxu2 %v7236_v41  ;;  %v7235_v36 = vld [vmem:[#allocation37 + $0x10] sm:$0xff] }
 0x8d2   :  { %2447 = vmatpush.bf16.msra.mxu1 %v7228_v40 }
 0x8d4   :  { %v2046_v43 = vpop.f32.mrf.mxu3  ;;  %v2026_v44 = vpop.f32.mrf.mxu2  ;;  %2526 = vmatpush.bf16.msra.mxu2 %v7235_v36  ;;  %v7263_v36 = vld [vmem:[#allocation42 + $0x40] sm:$0xff] }
 0x8d5   :  { %v2051_v45 = vpack.c.bf16 %v2046_v43, %v2046_v43  ;;  %v2031_v46 = vpack.c.bf16 %v2026_v44, %v2026_v44  ;;  %v7226_v43 = vld [vmem:[#allocation36 + $0x8] sm:$0xff] }
 0x8d6   :  { %2448 = vmatpush.bf16.msra.mxu1 %v7227_v42  ;;  %v7234_v44 = vld [vmem:[#allocation37 + $0x8] sm:$0xff] }
 0x8d8   :  { %2527 = vmatpush.bf16.msra.mxu2 %v7234_v44  ;;  %v7293_v44 = vld [vmem:[#allocation45 + $0x70] sm:$0xff] }
 0x8da   :  { %2449 = vmatpush.bf16.msra.mxu1 %v7226_v43  ;;  %v7294_v43 = vld [vmem:[#allocation45 + $0x78] sm:$0xff] }
 0x8dc   :  { %v2048_v37 = vpop.f32.mrf.mxu3  ;;  %v2028_v39 = vpop.f32.mrf.mxu2 }
 0x8df   :  { %2212 = vmatmul.bf16.gmra.mxu1 %v2031_v46  ;;  %2295 = vmatmul.bf16.gmra.mxu2 %v2051_v45  ;;  %v7225_v45 = vld [vmem:[#allocation36] sm:$0xff] }
 0x8e0   :  { %v7233_v46 = vld [vmem:[#allocation37] sm:$0xff]  ;;  %2450 = vmatpush.bf16.msra.mxu1 %v7225_v45  ;;  %v7292_v45 = vld [vmem:[#allocation45 + $0x68] sm:$0xff] }
 0x8e1   :  { %2528 = vmatpush.bf16.msra.mxu2 %v7233_v46  ;;  %v7291_v46 = vld [vmem:[#allocation45 + $0x60] sm:$0xff] }
 0x8e4   :  { %2640 = vmatpush.bf16.msrb.mxu1 %v7250_v25  ;;  %v7260_v25 = vld [vmem:[#allocation42 + $0x28] sm:$0xff] }
 0x8e8   :  { %2641 = vmatpush.bf16.msrb.mxu1 %v7249_v49 }
 0x94c   :  { %v2208_v22 = vpop.f32.mrf.mxu1 }
 0x94d   :  { %v2209_v52 = vadd.f32 %v2208_v22, %v2142_v29  ;;  %v7224_v29 = vld [vmem:[#allocation34] sm:$0x30] }
 0x94e   :  { %v6099_v34 = vor.u32 %v7224_v29, %v6098_v28  ;;  %v7266_v28 = vld [vmem:[#allocation42 + $0x58] sm:$0xff] }
 0x952   :  { %v2291_v47 = vpop.f32.mrf.mxu2 }
 0x953   :  { %v2300_v58 = vadd.f32 %v2291_v47, %v2209_v52 }
 0x954   :  { %v2210_v23 = vpop.f32.mrf.mxu1 }
 0x955   :  { %v2211_v51 = vadd.f32 %v2210_v23, %v2144_v32  ;;  %v2307_v7 = vadd.f32 %v7568_v60, %v2300_v58 }
 0x957   :  { %v2310_v12 = vmax.f32 %v2307_v7, 0.0 }
 0x959   :  { %v2313_v17 = vpack.c.bf16 %v2310_v12, %v2310_v12  ;;  %v7246_v12 = vld [vmem:[#allocation39 + $0x18] sm:$0xff] }
 0x95a   :  { %v2293_v50 = vpop.f32.mrf.mxu2 }
 0x95b   :  { %v2301_v57 = vadd.f32 %v2293_v50, %v2211_v51  ;;  %v2326_v26 = vunpack.c.l.b16 %v2313_v17  ;;  %v7248_v50 = vld [vmem:[#allocation39 + $0x28] sm:$0xff]  ;;  %v7247_v51 = vld [vmem:[#allocation39 + $0x20] sm:$0xff] }
 0x95c   :  { %v2213_v53 = vpop.f32.mrf.mxu1  ;;  %2642 = vmatpush.bf16.msrb.mxu1 %v7248_v50  ;;  %v7243_v17 = vld [vmem:[#allocation39] sm:$0xff] }
 0x95d   :  { %v2214_v0 = vadd.f32 %v2213_v53, %v2147_v33  ;;  %v2308_v2 = vadd.f32 %v7568_v60, %v2301_v57  ;;  %v6094_v33 = vor.u32 %v7223_v27, %v6093_v21  ;;  %v7269_v21 = vld [vmem:[#allocation42 + $0x70] sm:$0xff]  ;;  %v7267_v27 = vld [vmem:[#allocation42 + $0x60] sm:$0xff] }
 0x95f   :  { %v2311_v10 = vmax.f32 %v2308_v2, 0.0  ;;  %v6172_v2 = vld [vmem:[#allocation13] sm:$0xf] }
 0x960   :  { %2643 = vmatpush.bf16.msrb.mxu1 %v7247_v51  ;;  %v7259_v51 = vld [vmem:[#allocation42 + $0x20] sm:$0xff] }
 0x961   :  { %v2314_v14 = vpack.c.bf16 %v2311_v10, %v2311_v10  ;;  %v7254_v10 = vld [vmem:[#allocation39 + $0x58] sm:$0xff] }
 0x962   :  { %v2296_v3 = vpop.f32.mrf.mxu2 }
 0x963   :  { %v2302_v4 = vadd.f32 %v2296_v3, %v2214_v0  ;;  %v2327_v19 = vunpack.c.l.b16 %v2314_v14  ;;  %v7241_v0 = vld [vmem:[#allocation12] sm:$0x30]  ;;  %v7242_v3 = vld [vmem:[#allocation13] sm:$0x30] }
 0x964   :  { %v2215_v8 = vpop.f32.mrf.mxu1  ;;  %v7245_v14 = vld [vmem:[#allocation39 + $0x10] sm:$0xff] }
 0x965   :  { %v2309_v9 = vadd.f32 %v7568_v60, %v2302_v4  ;;  %v9425_v32 = vpack.c.b16 %v2327_v19, %v2326_v26  ;;  %v6167_v60 = vld [vmem:[#allocation12] sm:$0xf]  ;;  %v7270_v19 = vld [vmem:[#allocation42 + $0x78] sm:$0xff] }
 0x966   :  { %v9433_v8 = vor.u32 %v7241_v0, %v6167_v60  ;;  %v7268_v26 = vld [vmem:[#allocation42 + $0x68] sm:$0xff] }
 0x967   :  { %v2312_v11 = vmax.f32 %v2309_v9, 0.0  ;;  %v9435_v9 = vor.u32 %v7242_v3, %v6172_v2 }
 0x969   :  { %v2315_v13 = vpack.c.bf16 %v2312_v11, %v2312_v11  ;;  %v7253_v11 = vld [vmem:[#allocation39 + $0x50] sm:$0xff] }
 0x96a   :  { %v2298_v15 = vpop.f32.mrf.mxu2 }
 0x96b   :  { %v2328_v16 = vunpack.c.l.b16 %v2315_v13  ;;  %v7252_v13 = vld [vmem:[#allocation39 + $0x48] sm:$0xff]  ;;  %v7251_v15 = vld [vmem:[#allocation39 + $0x40] sm:$0xff] }
 0x96d   :  { %v9417_v18 = vpack.c.b16 %v2328_v16, %v2328_v16  ;;  %v7244_v16 = vld [vmem:[#allocation39 + $0x8] sm:$0xff] }
 0x96f   :  { %v9421_v20 = vsel %vm915_vm2, %v9417_v18, 0 }
 0x970   :  { %2344 = vmatpush.bf16.msra.mxu3 %v9421_v20  ;;  %2368 = vmatpush.bf16.msra.mxu0 %v9421_v20 }
 0x974   :  { %2345 = vmatpush.bf16.msra.mxu3 %v9425_v32  ;;  %2369 = vmatpush.bf16.msra.mxu0 %v9425_v32 }
 0x977   :  { %6095 = vmatmul.msk.bf16.vlgmr.msra.gmra.mxu3 %vm1757_vm5, %v6094_v33  ;;  %6100 = vmatmul.msk.bf16.vlgmr.msra.gmra.mxu0 %vm1757_vm5, %v6099_v34  ;;  %v7265_v33 = vld [vmem:[#allocation42 + $0x50] sm:$0xff] }
 0x9f4   :  { %v2371_v37 = vpop.f32.mrf.mxu0 }
 0x9fa   :  { %v2347_v39 = vpop.f32.mrf.mxu3 }
 0x9fb   :  { %v2376_v23 = vmax.f32 %v2347_v39, %v2371_v37  ;;  %v7290_v37 = vld [vmem:[#allocation45 + $0x58] sm:$0xff]  ;;  %v7289_v39 = vld [vmem:[#allocation45 + $0x50] sm:$0xff] }
 0x9fc   :  { %v2373_v22 = vpop.f32.mrf.mxu0 }
 0xa02   :  { %v2349_v47 = vpop.f32.mrf.mxu3 }
 0xa03   :  { %v2377_v48 = vmax.f32 %v2349_v47, %v2373_v22  ;;  %v7288_v22 = vld [vmem:[#allocation45 + $0x48] sm:$0xff]  ;;  %v7287_v47 = vld [vmem:[#allocation45 + $0x40] sm:$0xff] }
 0xa05   :  { %v2378_v24 = vpack.c.bf16 %v2377_v48, %v2376_v23  ;;  %v7262_v23 = vld [vmem:[#allocation42 + $0x38] sm:$0xff]  ;;  %v7261_v48 = vld [vmem:[#allocation42 + $0x30] sm:$0xff] }
 0xa07   :  { %2451 = vmatmul.bf16.vlgmr.msra.gmra.mxu1 %v2378_v24  ;;  %2529 = vmatmul.bf16.vlgmr.msra.gmra.mxu2 %v2378_v24 }
 0xa84   :  { %v2452_v53 = vpop.f32.mrf.mxu1 }
 0xa8a   :  { %v2530_v54 = vpop.f32.mrf.mxu2 }
 0xa8b   :  { %v2535_v57 = vmax.f32 %v2452_v53, %v2530_v54  ;;  %v7258_v54 = vld [vmem:[#allocation42 + $0x18] sm:$0xff] }
 0xa8c   :  { %v2454_v55 = vpop.f32.mrf.mxu1 }
 0xa92   :  { %v2532_v52 = vpop.f32.mrf.mxu2 }
 0xa93   :  { %v2536_v58 = vmax.f32 %v2454_v55, %v2532_v52  ;;  %v7569_v52 = vld [vmem:[#allocation40] ss:$0 sm:$0xff] }
 0xa95   :  { %v2537_v4 = vpack.c.bf16 %v2536_v58, %v2535_v57 }
 0xa97   :  { %6191 = vmatmul.msk.bf16.vlgmr.msrb.gmra.mxu1 %vm1865_vm4, %v2537_v4  ;;  %v2551_v7 = vsel %vm2549_vm6, %v2537_v4, 0 }
 0xa98   :  { %2560 = vmatpush.bf16.msrb.mxu3 %v2551_v7  ;;  %2585 = vmatpush.bf16.msrb.mxu0 %v2551_v7 }
 0xa9b   :  { %6169 = vmatmul.msk.bf16.vlgmr.msrb.gmra.mxu3 %vm2545_vm7, %v9433_v8  ;;  %6174 = vmatmul.msk.bf16.vlgmr.msrb.gmra.mxu0 %vm2545_vm7, %v9435_v9 }
 0xa9c   :  { %2731 = vmatpush.bf16.msra.mxu0 %v7254_v10  ;;  %2681 = vmatpush.bf16.msra.mxu3 %v7246_v12  ;;  %v7278_v12 = vld [vmem:[#allocation42 + $0xb8] sm:$0xff] }
 0xaa0   :  { %2732 = vmatpush.bf16.msra.mxu0 %v7253_v11  ;;  %2682 = vmatpush.bf16.msra.mxu3 %v7245_v14  ;;  %v7277_v14 = vld [vmem:[#allocation42 + $0xb0] sm:$0xff] }
 0xaa4   :  { %2733 = vmatpush.bf16.msra.mxu0 %v7252_v13  ;;  %2683 = vmatpush.bf16.msra.mxu3 %v7244_v16  ;;  %v7275_v16 = vld [vmem:[#allocation42 + $0xa0] sm:$0xff] }
 0xaa8   :  { %2734 = vmatpush.bf16.msra.mxu0 %v7251_v15  ;;  %2684 = vmatpush.bf16.msra.mxu3 %v7243_v17  ;;  %v7276_v15 = vld [vmem:[#allocation42 + $0xa8] sm:$0xff]  ;;  %v7257_v17 = vld [vmem:[#allocation42 + $0x10] sm:$0xff] }
 0xaac   :  { %2866 = vmatpush.bf16.msrb.mxu3 %v7270_v19  ;;  %2928 = vmatpush.bf16.msrb.mxu0 %v7262_v23  ;;  %v7274_v19 = vld [vmem:[#allocation42 + $0x98] sm:$0xff] }
 0xab0   :  { %2867 = vmatpush.bf16.msrb.mxu3 %v7269_v21  ;;  %2929 = vmatpush.bf16.msrb.mxu0 %v7261_v48  ;;  %v7256_v21 = vld [vmem:[#allocation42 + $0x8] sm:$0xff] }
 0xab4   :  { %2868 = vmatpush.bf16.msrb.mxu3 %v7268_v26  ;;  %2930 = vmatpush.bf16.msrb.mxu0 %v7260_v25  ;;  %v7273_v26 = vld [vmem:[#allocation42 + $0x90] sm:$0xff] }
 0xab8   :  { %2869 = vmatpush.bf16.msrb.mxu3 %v7267_v27  ;;  %2931 = vmatpush.bf16.msrb.mxu0 %v7259_v51  ;;  %v7255_v27 = vld [vmem:[#allocation42] sm:$0xff] }
 0xabc   :  { %2870 = vmatpush.bf16.msrb.mxu3 %v7266_v28  ;;  %2932 = vmatpush.bf16.msrb.mxu0 %v7258_v54  ;;  %v7286_v28 = vld [vmem:[#allocation45 + $0x38] sm:$0xff] }
 0xac0   :  { %2871 = vmatpush.bf16.msrb.mxu3 %v7265_v33  ;;  %2933 = vmatpush.bf16.msrb.mxu0 %v7257_v17 }
 0xac4   :  { %2872 = vmatpush.bf16.msrb.mxu3 %v7264_v35  ;;  %2934 = vmatpush.bf16.msrb.mxu0 %v7256_v21  ;;  %v7296_v21 = vld [vmem:[#allocation49] sm:$0xff] }
 0xac8   :  { %2873 = vmatpush.bf16.msrb.mxu3 %v7263_v36  ;;  %2935 = vmatpush.bf16.msrb.mxu0 %v7255_v27  ;;  %v7283_v36 = vld [vmem:[#allocation45 + $0x20] sm:$0xff]  ;;  %v3196_v27 = vld [vmem:[#allocation49 + $0x8] sm:$0x3] }
 0xb14   :  { %v2645_v24 = vpop.f32.mrf.mxu1 }
 0xb18   :  { %v2587_v29 = vpop.f32.mrf.mxu0 }
 0xb1c   :  { %v2647_v57 = vpop.f32.mrf.mxu1 }
 0xb1e   :  { %v2562_v34 = vpop.f32.mrf.mxu3 }
 0xb20   :  { %v2589_v38 = vpop.f32.mrf.mxu0 }
 0xb21   :  { %v2592_v40 = vpack.c.bf16 %v2589_v38, %v2587_v29  ;;  %v7285_v29 = vld [vmem:[#allocation45 + $0x30] sm:$0xff] }
 0xb23   :  { %6225 = vmatmul.msk.bf16.vlgmr.msra.gmra.mxu0 %vm1865_vm4, %v2592_v40 }
 0xb26   :  { %v2564_v41 = vpop.f32.mrf.mxu3 }
 0xb27   :  { %v2567_v42 = vpack.c.bf16 %v2564_v41, %v2562_v34 }
 0xb29   :  { %6208 = vmatmul.msk.bf16.vlgmr.msra.gmra.mxu3 %vm1865_vm4, %v2567_v42  ;;  %v7284_v42 = vld [vmem:[#allocation45 + $0x28] sm:$0xff] }
 0xb2a   :  { %3176 = vmatpush.bf16.msra.mxu3 %v7294_v43  ;;  %v7282_v43 = vld [vmem:[#allocation45 + $0x18] sm:$0xff] }
 0xb2e   :  { %3177 = vmatpush.bf16.msra.mxu3 %v7293_v44  ;;  %v7281_v44 = vld [vmem:[#allocation45 + $0x10] sm:$0xff] }
 0xb32   :  { %3178 = vmatpush.bf16.msra.mxu3 %v7292_v45  ;;  %v7280_v45 = vld [vmem:[#allocation45 + $0x8] sm:$0xff] }
 0xb36   :  { %3179 = vmatpush.bf16.msra.mxu3 %v7291_v46  ;;  %v7279_v46 = vld [vmem:[#allocation45] sm:$0xff] }
 0xb3a   :  { %3180 = vmatpush.bf16.msra.mxu3 %v7290_v37 }
 0xb3e   :  { %3181 = vmatpush.bf16.msra.mxu3 %v7289_v39 }
 0xb42   :  { %3182 = vmatpush.bf16.msra.mxu3 %v7288_v22 }
 0xb46   :  { %3183 = vmatpush.bf16.msra.mxu3 %v7287_v47 }
 0xba0   :  { %v2736_v49 = vpop.f32.mrf.mxu0 }
 0xba8   :  { %v2738_v0 = vpop.f32.mrf.mxu0 }
 0xbac   :  { %v2686_v50 = vpop.f32.mrf.mxu3 }
 0xbad   :  { %v2687_v53 = vadd.f32 %v2686_v50, %v2645_v24  ;;  %v7570_v24 = vld [vmem:[#allocation43] ss:$0 sm:$0xff] }
 0xbaf   :  { %v2741_v55 = vadd.f32 %v2736_v49, %v2687_v53 }
 0xbb1   :  { %v2747_v2 = vadd.f32 %v7569_v52, %v2741_v55 }
 0xbb3   :  { %v2749_v7 = vmax.f32 %v2747_v2, 0.0  ;;  %v7325_v2 = vld [vmem:[#allocation51 + $0xe0] sm:$0xff] }
 0xbb4   :  { %v2688_v58 = vpop.f32.mrf.mxu3 }
 0xbb5   :  { %v2689_v60 = vadd.f32 %v2688_v58, %v2647_v57  ;;  %v7328_v57 = vld [vmem:[#allocation51 + $0xf8] sm:$0xff] }
 0xbb7   :  { %v2742_v3 = vadd.f32 %v2738_v0, %v2689_v60  ;;  %v7327_v60 = vld [vmem:[#allocation51 + $0xf0] sm:$0xff]  ;;  %v7326_v0 = vld [vmem:[#allocation51 + $0xe8] sm:$0xff] }
 0xbb9   :  { %v2748_v4 = vadd.f32 %v7569_v52, %v2742_v3  ;;  %v7324_v3 = vld [vmem:[#allocation51 + $0xd8] sm:$0xff] }
 0xbbb   :  { %v2750_v10 = vmax.f32 %v2748_v4, 0.0  ;;  %v7323_v4 = vld [vmem:[#allocation51 + $0xd0] sm:$0xff] }
 0xbbd   :  { %v2751_v11 = vpack.c.bf16 %v2750_v10, %v2749_v7  ;;  %v7322_v7 = vld [vmem:[#allocation51 + $0xc8] sm:$0xff]  ;;  %v7321_v10 = vld [vmem:[#allocation51 + $0xc0] sm:$0xff] }
 0xbbf   :  { %2874 = vmatmul.bf16.vlgmr.msrb.gmra.mxu3 %v2751_v11  ;;  %v2753_v13 = vsel %vm2549_vm6, %v2751_v11, 0 }
 0xbc0   :  { %3315 = vmatpush.bf16.msrb.mxu3 %v9421_v20  ;;  %2762 = vmatpush.bf16.msra.mxu1 %v2753_v13 }
 0xbc1   :  { %2777 = vmatpush.bf16.msrb.mxu2 %v2753_v13 }
 0xbc3   :  { %6226 = vmatmul.msk.bf16.vlgmr.msra.gmra.mxu1 %vm2545_vm7, %v9433_v8  ;;  %v7272_v8 = vld [vmem:[#allocation42 + $0x88] sm:$0xff] }
 0xbc4   :  { %3007 = vmatpush.bf16.msrb.mxu1 %v7278_v12  ;;  %6227 = vmatmul.msk.bf16.vlgmr.msrb.gmra.mxu2 %vm2545_vm7, %v9435_v9  ;;  %v7271_v9 = vld [vmem:[#allocation42 + $0x80] sm:$0xff] }
 0xbc5   :  { %3316 = vmatpush.bf16.msrb.mxu3 %v9425_v32  ;;  %3096 = vmatpush.bf16.msra.mxu2 %v7286_v28 }
 0xbc8   :  { %3008 = vmatpush.bf16.msrb.mxu1 %v7277_v14 }
 0xbc9   :  { %3097 = vmatpush.bf16.msra.mxu2 %v7285_v29 }
 0xbcc   :  { %3009 = vmatpush.bf16.msrb.mxu1 %v7276_v15 }
 0xbcd   :  { %3098 = vmatpush.bf16.msra.mxu2 %v7284_v42 }
 0xbd0   :  { %3010 = vmatpush.bf16.msrb.mxu1 %v7275_v16 }
 0xbd1   :  { %3099 = vmatpush.bf16.msra.mxu2 %v7283_v36 }
 0xbd4   :  { %3011 = vmatpush.bf16.msrb.mxu1 %v7274_v19 }
 0xbd5   :  { %3100 = vmatpush.bf16.msra.mxu2 %v7282_v43 }
 0xbd8   :  { %3012 = vmatpush.bf16.msrb.mxu1 %v7273_v26  ;;  %v7295_v26 = vld [vmem:[#allocation48] sm:$0xff] }
 0xbd9   :  { %3101 = vmatpush.bf16.msra.mxu2 %v7281_v44 }
 0xbdc   :  { %3013 = vmatpush.bf16.msrb.mxu1 %v7272_v8  ;;  %v3193_v8 = vld [vmem:[#allocation48 + $0x8] sm:$0x3] }
 0xbdd   :  { %3102 = vmatpush.bf16.msra.mxu2 %v7280_v45  ;;  %v3237_v28 = vunpack.c.l.b16 %v3193_v8  ;;  %v7309_v8 = vld [vmem:[#allocation51 + $0x60] sm:$0xff] }
 0xbe0   :  { %3014 = vmatpush.bf16.msrb.mxu1 %v7271_v9  ;;  %v3202_v9 = vunpack.c.l.b16 %v3196_v27  ;;  %v7341_v27 = vld [vmem:[#allocation51 + $0x160] sm:$0xff] }
 0xbe1   :  { %3103 = vmatpush.bf16.msra.mxu2 %v7279_v46 }
 0xc40   :  { %v2764_v33 = vpop.f32.mrf.mxu1 }
 0xc42   :  { %v2875_v39 = vpop.f32.mrf.mxu3 }
 0xc47   :  { %v2779_v34 = vpop.f32.mrf.mxu2 }
 0xc48   :  { %v2766_v35 = vpop.f32.mrf.mxu1 }
 0xc49   :  { %v2769_v38 = vpack.c.bf16 %v2766_v35, %v2764_v33  ;;  %v3204_v33 = vpack.c.b16 %v3202_v9, %v3202_v9  ;;  %v7335_v9 = vld [vmem:[#allocation51 + $0x130] sm:$0xff] }
 0xc4a   :  { %v2877_v25 = vpop.f32.mrf.mxu3 }
 0xc4b   :  { %2936 = vmatmul.bf16.vlgmr.msrb.gmra.mxu0 %v2769_v38 }
 0xc4f   :  { %v2781_v40 = vpop.f32.mrf.mxu2 }
 0xc50   :  { %v2784_v41 = vpack.c.bf16 %v2781_v40, %v2779_v34  ;;  %v3239_v34 = vpack.c.b16 %v3237_v28, %v3237_v28  ;;  %v7301_v28 = vld [vmem:[#allocation51 + $0x20] sm:$0xff] }
 0xc52   :  { %3015 = vmatmul.bf16.vlgmr.msrb.gmra.mxu1 %v2784_v41 }
 0xcc8   :  { %v2937_v37 = vpop.f32.mrf.mxu0 }
 0xcc9   :  { %v2938_v47 = vadd.f32 %v2937_v37, %v2875_v39  ;;  %v7571_v37 = vld [vmem:[#allocation46] ss:$0 sm:$0xff] }
 0xccf   :  { %v3016_v22 = vpop.f32.mrf.mxu1 }
 0xcd0   :  { %v2939_v23 = vpop.f32.mrf.mxu0  ;;  %v3021_v48 = vadd.f32 %v3016_v22, %v2938_v47 }
 0xcd1   :  { %v2940_v49 = vadd.f32 %v2939_v23, %v2877_v25 }
 0xcd2   :  { %v3027_v51 = vadd.f32 %v7570_v24, %v3021_v48 }
 0xcd4   :  { %v3029_v55 = vmax.f32 %v3027_v51, 0.0 }
 0xcd7   :  { %v3018_v50 = vpop.f32.mrf.mxu1 }
 0xcd8   :  { %v3022_v53 = vadd.f32 %v3018_v50, %v2940_v49 }
 0xcda   :  { %v3028_v54 = vadd.f32 %v7570_v24, %v3022_v53 }
 0xcdc   :  { %v3030_v52 = vmax.f32 %v3028_v54, 0.0 }
 0xcde   :  { %v3031_v58 = vpack.c.bf16 %v3030_v52, %v3029_v55 }
 0xce0   :  { %3104 = vmatmul.bf16.vlgmr.msra.gmra.mxu2 %v3031_v58  ;;  %3184 = vmatmul.bf16.vlgmr.msra.gmra.mxu3 %v3031_v58 }
 0xce1   :  { %3550 = vmatpush.bf16.msra.mxu3 %v7328_v57 }
 0xce5   :  { %3551 = vmatpush.bf16.msra.mxu3 %v7327_v60  ;;  %v7320_v60 = vld [vmem:[#allocation51 + $0xb8] sm:$0xff] }
 0xce9   :  { %3552 = vmatpush.bf16.msra.mxu3 %v7326_v0 }
 0xced   :  { %3553 = vmatpush.bf16.msra.mxu3 %v7325_v2  ;;  %v7319_v2 = vld [vmem:[#allocation51 + $0xb0] sm:$0xff] }
 0xcf0   :  { %6402 = vmatmul.msk.bf16.vlgmr.msrb.gmra.mxu3 %vm1757_vm5, %v9387_v61 }
 0xcf1   :  { %3554 = vmatpush.bf16.msra.mxu3 %v7324_v3  ;;  %v7318_v3 = vld [vmem:[#allocation51 + $0xa8] sm:$0xff] }
 0xcf5   :  { %3555 = vmatpush.bf16.msra.mxu3 %v7323_v4  ;;  %v7317_v4 = vld [vmem:[#allocation51 + $0xa0] sm:$0xff] }
 0xcf9   :  { %3556 = vmatpush.bf16.msra.mxu3 %v7322_v7  ;;  %v7316_v7 = vld [vmem:[#allocation51 + $0x98] sm:$0xff] }
 0xcfd   :  { %3557 = vmatpush.bf16.msra.mxu3 %v7321_v10  ;;  %v7315_v10 = vld [vmem:[#allocation51 + $0x90] sm:$0xff] }
 0xd00   :  { %6403 = vmatmul.msk.bf16.gmra.mxu3 %vm1757_vm5, %v9398_v6 }
 0xd10   :  { %3558 = vmatmul.bf16.vlgmr.msra.gmra.mxu3 %v9425_v32 }
 0xd20   :  { %3563 = vmatmul.bf16.gmra.mxu3 %v9417_v18 }
 0xd63   :  { %v3105_v11 = vpop.f32.mrf.mxu2  ;;  %v3185_v12 = vpop.f32.mrf.mxu3 }
 0xd6b   :  { %v3107_v13 = vpop.f32.mrf.mxu2  ;;  %v3187_v14 = vpop.f32.mrf.mxu3 }
 0xd6c   :  { %v3110_v15 = vpack.c.bf16 %v3107_v13, %v3105_v11  ;;  %v3190_v16 = vpack.c.bf16 %v3187_v14, %v3185_v12  ;;  %v7344_v11 = vld [vmem:[#allocation51 + $0x178] sm:$0xff]  ;;  %v7311_v13 = vld [vmem:[#allocation51 + $0x70] sm:$0xff] }
 0xd6d   :  { %v7312_v12 = vld [vmem:[#allocation51 + $0x78] sm:$0xff]  ;;  %3847 = vmatpush.bf16.msrb.mxu3 %v7344_v11 }
 0xd6e   :  { %v3212_v17 = vsel %vm2549_vm6, %v3190_v16, 0  ;;  %v3247_v19 = vsel %vm2549_vm6, %v3110_v15, 0  ;;  %v7304_v14 = vld [vmem:[#allocation51 + $0x38] sm:$0xff]  ;;  %v7303_v15 = vld [vmem:[#allocation51 + $0x30] sm:$0xff]  ;;  %v7313_v16 = vld [vmem:[#allocation51 + $0x80] sm:$0xff] }
 0xd6f   :  { %3221 = vmatpush.bf16.msra.mxu0 %v3212_v17  ;;  %3256 = vmatpush.bf16.msra.mxu1 %v3247_v19  ;;  %v7342_v17 = vld [vmem:[#allocation51 + $0x168] sm:$0xff] }
 0xd70   :  { %v7310_v19 = vld [vmem:[#allocation51 + $0x68] sm:$0xff] }
 0xd72   :  { %6392 = vmatmul.msk.bf16.vlgmr.msra.gmra.mxu0 %vm2545_vm7, %v7296_v21  ;;  %6398 = vmatmul.msk.bf16.vlgmr.msra.gmra.mxu1 %vm2545_vm7, %v7295_v26  ;;  %v7336_v21 = vld [vmem:[#allocation51 + $0x138] sm:$0xff]  ;;  %v7302_v26 = vld [vmem:[#allocation51 + $0x28] sm:$0xff] }
 0xd73   :  { %3355 = vmatpush.bf16.msrb.mxu1 %v9421_v20  ;;  %v9461_v18 = vpop.f32.mrf.mxu3 }
 0xd77   :  { %3356 = vmatpush.bf16.msrb.mxu1 %v9425_v32 }
 0xd7b   :  { %v9464_v29 = vpop.f32.mrf.mxu3  ;;  %3682 = vmatpush.bf16.msra.mxu1 %v7312_v12  ;;  %v7360_v12 = vld [vmem:[#allocation54 + $0x78] sm:$0xff] }
 0xd7f   :  { %3683 = vmatpush.bf16.msra.mxu1 %v7311_v13 }
 0xd82   :  { %6393 = vmatmul.msk.bf16.gmra.mxu0 %vm2545_vm7, %v3204_v33  ;;  %6399 = vmatmul.msk.bf16.gmra.mxu1 %vm2545_vm7, %v3239_v34  ;;  %v7340_v33 = vld [vmem:[#allocation51 + $0x158] sm:$0xff] }
 0xd83   :  { %v9468_v20 = vpop.f32.mrf.mxu3  ;;  %3684 = vmatpush.bf16.msra.mxu1 %v7310_v19  ;;  %v7308_v34 = vld [vmem:[#allocation51 + $0x58] sm:$0xff] }
 0xd87   :  { %3685 = vmatpush.bf16.msra.mxu1 %v7309_v8  ;;  %v7384_v8 = vld [vmem:[#allocation57 + $0x78] sm:$0xff] }
 0xd8b   :  { %v3325_v35 = vpop.f32.mrf.mxu3  ;;  %3686 = vmatpush.bf16.msra.mxu1 %v7308_v34  ;;  %v7382_v34 = vld [vmem:[#allocation57 + $0x68] sm:$0xff] }
 0xd8c   :  { %v7334_v35 = vld [vmem:[#allocation51 + $0x128] sm:$0xff] }
 0xd92   :  { %6406 = vmatmul.msk.bf16.vlgmr.msrb.gmra.mxu1 %vm1757_vm5, %v9389_v62 }
 0xd93   :  { %v9472_v38 = vpop.f32.mrf.mxu3 }
 0xd9b   :  { %v9474_v32 = vpop.f32.mrf.mxu3 }
 0xda2   :  { %6407 = vmatmul.msk.bf16.gmra.mxu1 %vm1757_vm5, %v9396_v5 }
 0xda3   :  { %v9478_v40 = vpop.f32.mrf.mxu3 }
 0xdab   :  { %v3566_v41 = vpop.f32.mrf.mxu3 }
 0xdef   :  { %v3223_v42 = vpop.f32.mrf.mxu0  ;;  %v3258_v36 = vpop.f32.mrf.mxu1 }
 0xdf0   :  { %v3259_v46 = vadd.f32 %v3258_v36, %v3223_v42  ;;  %v7339_v42 = vld [vmem:[#allocation51 + $0x150] sm:$0xff] }
 0xdf1   :  { %v7307_v36 = vld [vmem:[#allocation51 + $0x50] sm:$0xff] }
 0xdf2   :  { %v3271_v24 = vadd.f32 %v7571_v37, %v3259_v46  ;;  %3687 = vmatpush.bf16.msra.mxu1 %v7307_v36  ;;  %v7332_v46 = vld [vmem:[#allocation51 + $0x118] sm:$0xff] }
 0xdf3   :  { %v7380_v36 = vld [vmem:[#allocation57 + $0x58] sm:$0xff] }
 0xdf4   :  { %v3274_v51 = vpack.c.bf16 %v3271_v24, %v3271_v24  ;;  %v7300_v24 = vld [vmem:[#allocation51 + $0x18] sm:$0xff] }
 0xdf6   :  { %v3280_v58 = vunpack.c.l.b16 %v3274_v51  ;;  %v7298_v51 = vld [vmem:[#allocation51 + $0x8] sm:$0xff] }
 0xdf7   :  { %v3225_v43 = vpop.f32.mrf.mxu0  ;;  %v3260_v44 = vpop.f32.mrf.mxu1 }
 0xdf8   :  { %v3261_v45 = vadd.f32 %v3260_v44, %v3225_v43  ;;  %v7333_v43 = vld [vmem:[#allocation51 + $0x120] sm:$0xff]  ;;  %v7338_v44 = vld [vmem:[#allocation51 + $0x148] sm:$0xff] }
 0xdfa   :  { %v3272_v23 = vadd.f32 %v7571_v37, %v3261_v45  ;;  %v7306_v45 = vld [vmem:[#allocation51 + $0x48] sm:$0xff] }
 0xdfb   :  { %3688 = vmatpush.bf16.msra.mxu1 %v7306_v45  ;;  %v7379_v45 = vld [vmem:[#allocation57 + $0x50] sm:$0xff] }
 0xdfc   :  { %v3275_v49 = vpack.c.bf16 %v3272_v23, %v3272_v23  ;;  %v7331_v23 = vld [vmem:[#allocation51 + $0x110] sm:$0xff] }
 0xdfe   :  { %v3281_v52 = vunpack.c.l.b16 %v3275_v49  ;;  %v7299_v49 = vld [vmem:[#allocation51 + $0x10] sm:$0xff] }
 0xdff   :  { %v3228_v39 = vpop.f32.mrf.mxu0  ;;  %v3263_v22 = vpop.f32.mrf.mxu1 }
 0xe00   :  { %v3264_v47 = vadd.f32 %v3263_v22, %v3228_v39  ;;  %v3283_v0 = vpack.c.b16 %v3281_v52, %v3280_v58  ;;  %v7337_v39 = vld [vmem:[#allocation51 + $0x140] sm:$0xff] }
 0xe02   :  { %v3273_v48 = vadd.f32 %v7571_v37, %v3264_v47  ;;  %v7305_v47 = vld [vmem:[#allocation51 + $0x40] sm:$0xff] }
 0xe03   :  { %3689 = vmatpush.bf16.msra.mxu1 %v7305_v47 }
 0xe04   :  { %v3276_v25 = vpack.c.bf16 %v3273_v48, %v3273_v48  ;;  %v3328_v48 = vpack.c.bf16 %v9464_v29, %v9461_v18 }
 0xe06   :  { %v3282_v50 = vunpack.c.l.b16 %v3276_v25  ;;  %v7330_v25 = vld [vmem:[#allocation51 + $0x108] sm:$0xff]  ;;  %3690 = vmatmul.bf16.vlgmr.msra.gmra.mxu1 %v3328_v48 }
 0xe07   :  { %v3230_v53 = vpop.f32.mrf.mxu0  ;;  %v3265_v54 = vpop.f32.mrf.mxu1 }
 0xe08   :  { %v9480_v55 = vpack.c.b16 %v3282_v50, %v3282_v50  ;;  %v7329_v50 = vld [vmem:[#allocation51 + $0x100] sm:$0xff]  ;;  %v3330_v54 = vpack.c.bf16 %v9468_v20, %v9468_v20 }
 0xe09   :  { %v7297_v53 = vld [vmem:[#allocation51] sm:$0xff] }
 0xe0a   :  { %v3289_v57 = vsel %vm915_vm2, %v9480_v55, 0 }
 0xe0b   :  { %3297 = vmatpush.bf16.msrb.mxu2 %v3289_v57  ;;  %3337 = vmatpush.bf16.msrb.mxu0 %v3289_v57 }
 0xe0f   :  { %3298 = vmatpush.bf16.msrb.mxu2 %v3283_v0  ;;  %3338 = vmatpush.bf16.msrb.mxu0 %v3283_v0  ;;  %v3358_v41 = vpop.f32.mrf.mxu1 }
 0xe12   :  { %6400 = vmatmul.msk.bf16.vlgmr.msrb.gmra.mxu2 %vm1757_vm5, %v9387_v61  ;;  %6404 = vmatmul.msk.bf16.vlgmr.msrb.gmra.mxu0 %vm1757_vm5, %v9389_v62  ;;  %v7314_v61 = vld [vmem:[#allocation51 + $0x88] sm:$0xff]  ;;  %v7343_v62 = vld [vmem:[#allocation51 + $0x170] sm:$0xff] }
 0xe13   :  { %3532 = vmatpush.bf16.msra.mxu2 %v7320_v60  ;;  %3664 = vmatpush.bf16.msra.mxu0 %v7304_v14  ;;  %v7357_v14 = vld [vmem:[#allocation54 + $0x60] sm:$0xff] }
 0xe14   :  { %3848 = vmatpush.bf16.msrb.mxu3 %v7343_v62  ;;  %v7358_v62 = vld [vmem:[#allocation54 + $0x68] sm:$0xff] }
 0xe16   :  { %3695 = vmatmul.bf16.gmra.mxu1 %v3330_v54 }
 0xe17   :  { %3533 = vmatpush.bf16.msra.mxu2 %v7319_v2  ;;  %3665 = vmatpush.bf16.msra.mxu0 %v7303_v15  ;;  %v3360_v37 = vpop.f32.mrf.mxu1  ;;  %v7356_v15 = vld [vmem:[#allocation54 + $0x58] sm:$0xff] }
 0xe18   :  { %3849 = vmatpush.bf16.msrb.mxu3 %v7342_v17  ;;  %v3368_v22 = vpack.c.bf16 %v3360_v37, %v3358_v41  ;;  %v7355_v17 = vld [vmem:[#allocation54 + $0x50] sm:$0xff] }
 0xe1b   :  { %3534 = vmatpush.bf16.msra.mxu2 %v7318_v3  ;;  %3666 = vmatpush.bf16.msra.mxu0 %v7302_v26  ;;  %v7354_v26 = vld [vmem:[#allocation54 + $0x48] sm:$0xff] }
 0xe1c   :  { %3850 = vmatpush.bf16.msrb.mxu3 %v7341_v27  ;;  %v7353_v27 = vld [vmem:[#allocation54 + $0x40] sm:$0xff] }
 0xe1f   :  { %3535 = vmatpush.bf16.msra.mxu2 %v7317_v4  ;;  %3667 = vmatpush.bf16.msra.mxu0 %v7301_v28 }
 0xe20   :  { %3851 = vmatpush.bf16.msrb.mxu3 %v7340_v33 }
 0xe22   :  { %6401 = vmatmul.msk.bf16.gmra.mxu2 %vm1757_vm5, %v9398_v6  ;;  %6405 = vmatmul.msk.bf16.gmra.mxu0 %vm1757_vm5, %v9396_v5 }
 0xe23   :  { %3536 = vmatpush.bf16.msra.mxu2 %v7316_v7  ;;  %3668 = vmatpush.bf16.msra.mxu0 %v7300_v24 }
 0xe24   :  { %3852 = vmatpush.bf16.msrb.mxu3 %v7339_v42  ;;  %v7381_v42 = vld [vmem:[#allocation57 + $0x60] sm:$0xff] }
 0xe27   :  { %3537 = vmatpush.bf16.msra.mxu2 %v7315_v10  ;;  %3669 = vmatpush.bf16.msra.mxu0 %v7299_v49 }
 0xe28   :  { %3853 = vmatpush.bf16.msrb.mxu3 %v7338_v44 }
 0xe2b   :  { %3538 = vmatpush.bf16.msra.mxu2 %v7314_v61  ;;  %3670 = vmatpush.bf16.msra.mxu0 %v7298_v51  ;;  %v7359_v61 = vld [vmem:[#allocation54 + $0x70] sm:$0xff] }
 0xe2c   :  { %3854 = vmatpush.bf16.msrb.mxu3 %v7337_v39 }
 0xe2f   :  { %3539 = vmatpush.bf16.msra.mxu2 %v7313_v16  ;;  %3855 = vmatmul.bf16.vlgmr.msrb.gmra.mxu3 %v3368_v22  ;;  %v7377_v22 = vld [vmem:[#allocation57 + $0x40] sm:$0xff] }
 0xe30   :  { %3671 = vmatpush.bf16.msra.mxu0 %v7297_v53 }
 0xe32   :  { %3540 = vmatmul.bf16.vlgmr.msra.gmra.mxu2 %v3283_v0 }
 0xe33   :  { %3829 = vmatpush.bf16.msrb.mxu2 %v7336_v21 }
 0xe37   :  { %3830 = vmatpush.bf16.msrb.mxu2 %v7335_v9  ;;  %v7383_v9 = vld [vmem:[#allocation57 + $0x70] sm:$0xff] }
 0xe3b   :  { %3831 = vmatpush.bf16.msrb.mxu2 %v7334_v35 }
 0xe3f   :  { %3832 = vmatpush.bf16.msrb.mxu2 %v7333_v43 }
 0xe42   :  { %3545 = vmatmul.bf16.gmra.mxu2 %v9480_v55  ;;  %v3363_v55 = vpop.f32.mrf.mxu1 }
 0xe43   :  { %3833 = vmatpush.bf16.msrb.mxu2 %v7332_v46  ;;  %v3370_v18 = vpack.c.bf16 %v3363_v55, %v3363_v55  ;;  %v7378_v46 = vld [vmem:[#allocation57 + $0x48] sm:$0xff]  ;;  %v7572_v55 = vld [vmem:[#allocation52] ss:$0 sm:$0xff] }
 0xe45   :  { %3860 = vmatmul.bf16.gmra.mxu3 %v3370_v18 }
 0xe47   :  { %3834 = vmatpush.bf16.msrb.mxu2 %v7331_v23 }
 0xe4a   :  { %v3365_v29 = vpop.f32.mrf.mxu1 }
 0xe4b   :  { %3835 = vmatpush.bf16.msrb.mxu2 %v7330_v25 }
 0xe4f   :  { %3836 = vmatpush.bf16.msrb.mxu2 %v7329_v50 }
 0xe53   :  { %4004 = vmatpush.bf16.msra.mxu2 %v7360_v12  ;;  %v7352_v12 = vld [vmem:[#allocation54 + $0x38] sm:$0xff] }
 0xe54   :  { %4070 = vmatpush.bf16.msra.mxu3 %v7352_v12 }
 0xe57   :  { %4005 = vmatpush.bf16.msra.mxu2 %v7359_v61 }
 0xe5b   :  { %4006 = vmatpush.bf16.msra.mxu2 %v7358_v62 }
 0xe5f   :  { %4007 = vmatpush.bf16.msra.mxu2 %v7357_v14  ;;  %v7351_v14 = vld [vmem:[#allocation54 + $0x30] sm:$0xff] }
 0xe60   :  { %4071 = vmatpush.bf16.msra.mxu3 %v7351_v14 }
 0xe63   :  { %4008 = vmatpush.bf16.msra.mxu2 %v7356_v15 }
 0xe67   :  { %4009 = vmatpush.bf16.msra.mxu2 %v7355_v17 }
 0xe6b   :  { %4010 = vmatpush.bf16.msra.mxu2 %v7354_v26  ;;  %v7578_v26 = vld [vmem:[#allocation9] sm:$0xff] }
 0xe6f   :  { %4011 = vmatpush.bf16.msra.mxu2 %v7353_v27  ;;  %v7579_v27 = vld [vmem:[#allocation10] sm:$0xff] }
 0xe83   :  { %v3691_v28 = vpop.f32.mrf.mxu1 }
 0xe8b   :  { %v3693_v35 = vpop.f32.mrf.mxu1 }
 0xe8f   :  { %v3340_v52 = vpop.f32.mrf.mxu0 }
 0xe93   :  { %v3696_v43 = vpop.f32.mrf.mxu1 }
 0xe95   :  { %v3300_v57 = vpop.f32.mrf.mxu2 }
 0xe97   :  { %v3342_v58 = vpop.f32.mrf.mxu0 }
 0xe98   :  { %v3367_v60 = vpack.c.bf16 %v3342_v58, %v3340_v52 }
 0xe9a   :  { %3837 = vmatmul.bf16.vlgmr.msrb.gmra.mxu2 %v3367_v60 }
 0xe9b   :  { %4335 = vmatpush.bf16.msrb.mxu2 %v7384_v8  ;;  %v3698_v37 = vpop.f32.mrf.mxu1  ;;  %v7366_v8 = vld [vmem:[#allocation54 + $0xa8] sm:$0xff] }
 0xe9d   :  { %v3302_v0 = vpop.f32.mrf.mxu2 }
 0xe9e   :  { %v3327_v2 = vpack.c.bf16 %v3302_v0, %v3300_v57 }
 0xe9f   :  { %v3345_v3 = vpop.f32.mrf.mxu0  ;;  %4336 = vmatpush.bf16.msrb.mxu2 %v7383_v9  ;;  %v7349_v9 = vld [vmem:[#allocation54 + $0x20] sm:$0xff] }
 0xea0   :  { %3672 = vmatmul.bf16.vlgmr.msra.gmra.mxu0 %v3327_v2  ;;  %v3369_v7 = vpack.c.bf16 %v3345_v3, %v3345_v3 }
 0xea3   :  { %4337 = vmatpush.bf16.msrb.mxu2 %v7382_v34  ;;  %v7364_v34 = vld [vmem:[#allocation54 + $0x98] sm:$0xff] }
 0xea5   :  { %v3305_v4 = vpop.f32.mrf.mxu2 }
 0xea6   :  { %v3329_v11 = vpack.c.bf16 %v3305_v4, %v3305_v4 }
 0xea7   :  { %v3347_v10 = vpop.f32.mrf.mxu0  ;;  %4338 = vmatpush.bf16.msrb.mxu2 %v7381_v42  ;;  %v7346_v42 = vld [vmem:[#allocation54 + $0x8] sm:$0xff] }
 0xeaa   :  { %3842 = vmatmul.bf16.gmra.mxu2 %v3369_v7 }
 0xeab   :  { %4339 = vmatpush.bf16.msrb.mxu2 %v7380_v36  ;;  %v7362_v36 = vld [vmem:[#allocation54 + $0x88] sm:$0xff] }
 0xead   :  { %v3307_v20 = vpop.f32.mrf.mxu2 }
 0xeaf   :  { %4340 = vmatpush.bf16.msrb.mxu2 %v7379_v45 }
 0xeb0   :  { %3677 = vmatmul.bf16.gmra.mxu0 %v3329_v11 }
 0xeb2   :  { %v3856_v33 = vpop.f32.mrf.mxu3 }
 0xeb3   :  { %4341 = vmatpush.bf16.msrb.mxu2 %v7378_v46  ;;  %v7375_v46 = vld [vmem:[#allocation57 + $0x30] sm:$0xff] }
 0xeb5   :  { %v3541_v13 = vpop.f32.mrf.mxu2 }
 0xeb6   :  { %v3560_v47 = vadd.f32 %v9472_v38, %v3541_v13 }
 0xeb7   :  { %4342 = vmatpush.bf16.msrb.mxu2 %v7377_v22 }
 0xeba   :  { %v3858_v41 = vpop.f32.mrf.mxu3 }
 0xebd   :  { %v3543_v16 = vpop.f32.mrf.mxu2 }
 0xebe   :  { %v3562_v49 = vadd.f32 %v9474_v32, %v3543_v16  ;;  %v7350_v16 = vld [vmem:[#allocation54 + $0x28] sm:$0xff] }
 0xebf   :  { %4072 = vmatpush.bf16.msra.mxu3 %v7350_v16 }
 0xec3   :  { %4073 = vmatpush.bf16.msra.mxu3 %v7349_v9  ;;  %v7419_v9 = vld [vmem:[#allocation61 + $0xf0] sm:$0xff] }
 0xec5   :  { %v3546_v19 = vpop.f32.mrf.mxu2 }
 0xec6   :  { %v3565_v60 = vadd.f32 %v9478_v40, %v3546_v19  ;;  %v7368_v19 = vld [vmem:[#allocation54 + $0xb8] sm:$0xff] }
 0xec8   :  { %v3861_v44 = vpop.f32.mrf.mxu3 }
 0xecd   :  { %v3548_v21 = vpop.f32.mrf.mxu2 }
 0xece   :  { %v7367_v21 = vld [vmem:[#allocation54 + $0xb0] sm:$0xff] }
 0xed0   :  { %v3863_v39 = vpop.f32.mrf.mxu3 }
 0xf1d   :  { %v3673_v23 = vpop.f32.mrf.mxu0  ;;  %v3838_v48 = vpop.f32.mrf.mxu2 }
 0xf1e   :  { %v3674_v24 = vadd.f32 %v3673_v23, %v3560_v47  ;;  %v3857_v50 = vadd.f32 %v3856_v33, %v3838_v48  ;;  %v7348_v33 = vld [vmem:[#allocation54 + $0x18] sm:$0xff] }
 0xf1f   :  { %4074 = vmatpush.bf16.msra.mxu3 %v7348_v33  ;;  %v7417_v33 = vld [vmem:[#allocation61 + $0xe0] sm:$0xff] }
 0xf20   :  { %v3692_v25 = vadd.f32 %v3691_v28, %v3674_v24  ;;  %v7365_v28 = vld [vmem:[#allocation54 + $0xa0] sm:$0xff] }
 0xf22   :  { %v3865_v54 = vadd.f32 %v3857_v50, %v3692_v25 }
 0xf24   :  { %v3872_v57 = vadd.f32 %v7572_v55, %v3865_v54 }
 0xf25   :  { %v3675_v51 = vpop.f32.mrf.mxu0  ;;  %v3840_v53 = vpop.f32.mrf.mxu2 }
 0xf26   :  { %v3676_v18 = vadd.f32 %v3675_v51, %v3562_v49  ;;  %v3859_v52 = vadd.f32 %v3858_v41, %v3840_v53  ;;  %v3875_v3 = vmax.f32 %v3872_v57, 0.0  ;;  %v7363_v41 = vld [vmem:[#allocation54 + $0x90] sm:$0xff] }
 0xf27   :  { %v7371_v57 = vld [vmem:[#allocation57 + $0x10] sm:$0xff] }
 0xf28   :  { %v3694_v29 = vadd.f32 %v3693_v35, %v3676_v18  ;;  %v7347_v35 = vld [vmem:[#allocation54 + $0x10] sm:$0xff] }
 0xf29   :  { %4075 = vmatpush.bf16.msra.mxu3 %v7347_v35  ;;  %v7374_v18 = vld [vmem:[#allocation57 + $0x28] sm:$0xff] }
 0xf2a   :  { %v3866_v58 = vadd.f32 %v3859_v52, %v3694_v29  ;;  %v7373_v29 = vld [vmem:[#allocation57 + $0x20] sm:$0xff]  ;;  %v7372_v52 = vld [vmem:[#allocation57 + $0x18] sm:$0xff]  ;;  %v7416_v35 = vld [vmem:[#allocation61 + $0xd8] sm:$0xff] }
 0xf2c   :  { %v3873_v0 = vadd.f32 %v7572_v55, %v3866_v58  ;;  %v7370_v58 = vld [vmem:[#allocation57 + $0x8] sm:$0xff] }
 0xf2d   :  { %v3678_v38 = vpop.f32.mrf.mxu0  ;;  %v3843_v2 = vpop.f32.mrf.mxu2  ;;  %4076 = vmatpush.bf16.msra.mxu3 %v7346_v42  ;;  %v7414_v42 = vld [vmem:[#allocation61 + $0xc8] sm:$0xff] }
 0xf2e   :  { %v3876_v4 = vmax.f32 %v3873_v0, 0.0  ;;  %v3679_v7 = vadd.f32 %v3678_v38, %v3565_v60  ;;  %v3862_v10 = vadd.f32 %v3861_v44, %v3843_v2  ;;  %v7376_v44 = vld [vmem:[#allocation57 + $0x38] sm:$0xff]  ;;  %v7369_v60 = vld [vmem:[#allocation57] sm:$0xff] }
 0xf30   :  { %v3878_v32 = vpack.c.bf16 %v3876_v4, %v3875_v3  ;;  %v3697_v11 = vadd.f32 %v3696_v43, %v3679_v7  ;;  %v7361_v43 = vld [vmem:[#allocation54 + $0x80] sm:$0xff] }
 0xf31   :  { %v7573_v7 = vld [vmem:[#allocation55] ss:$0 sm:$0xff] }
 0xf32   :  { %v3867_v20 = vadd.f32 %v3862_v10, %v3697_v11  ;;  %4012 = vmatmul.bf16.vlgmr.msra.gmra.mxu2 %v3878_v32 }
 0xf33   :  { %4523 = vmatpush.bf16.msra.mxu2 %v9369_v59 }
 0xf34   :  { %v3874_v61 = vadd.f32 %v7572_v55, %v3867_v20 }
 0xf35   :  { %v3680_v62 = vpop.f32.mrf.mxu0  ;;  %v3845_v13 = vpop.f32.mrf.mxu2 }
 0xf36   :  { %v3877_v40 = vmax.f32 %v3874_v61, 0.0 }
 0xf37   :  { %4524 = vmatpush.bf16.msra.mxu2 %v9372_v63 }
 0xf38   :  { %v3879_v15 = vpack.c.bf16 %v3877_v40, %v3877_v40 }
 0xf3a   :  { %v3881_v17 = vsel %vm915_vm2, %v3879_v15, 0 }
 0xf3b   :  { %4525 = vmatpush.bf16.msra.mxu2 %v9375_v1  ;;  %3889 = vmatpush.bf16.msrb.mxu0 %v3881_v17 }
 0xf3c   :  { %3909 = vmatpush.bf16.msrb.mxu1 %v3881_v17 }
 0xf3f   :  { %3890 = vmatpush.bf16.msrb.mxu0 %v3878_v32 }
 0xf40   :  { %3910 = vmatpush.bf16.msrb.mxu1 %v3878_v32 }
 0xf42   :  { %6600 = vmatmul.msk.bf16.vlgmr.msrb.gmra.mxu0 %vm1757_vm5, %v7578_v26  ;;  %4017 = vmatmul.bf16.gmra.mxu2 %v3879_v15 }
 0xf43   :  { %4153 = vmatpush.bf16.msra.mxu0 %v7368_v19  ;;  %6602 = vmatmul.msk.bf16.vlgmr.msrb.gmra.mxu1 %vm1757_vm5, %v7579_v27 }
 0xf44   :  { %4250 = vmatpush.bf16.msra.mxu1 %v7376_v44 }
 0xf47   :  { %4154 = vmatpush.bf16.msra.mxu0 %v7367_v21 }
 0xf48   :  { %4251 = vmatpush.bf16.msra.mxu1 %v7375_v46 }
 0xf4b   :  { %4155 = vmatpush.bf16.msra.mxu0 %v7366_v8  ;;  %v7420_v8 = vld [vmem:[#allocation61 + $0xf8] sm:$0xff] }
 0xf4c   :  { %4252 = vmatpush.bf16.msra.mxu1 %v7374_v18 }
 0xf4f   :  { %4156 = vmatpush.bf16.msra.mxu0 %v7365_v28  ;;  %v7418_v28 = vld [vmem:[#allocation61 + $0xe8] sm:$0xff] }
 0xf50   :  { %4253 = vmatpush.bf16.msra.mxu1 %v7373_v29 }
 0xf52   :  { %6601 = vmatmul.msk.bf16.gmra.mxu0 %vm1757_vm5, %v9398_v6  ;;  %v7345_v6 = vld [vmem:[#allocation54] sm:$0xff] }
 0xf53   :  { %6603 = vmatmul.msk.bf16.gmra.mxu1 %vm1757_vm5, %v9396_v5  ;;  %4157 = vmatpush.bf16.msra.mxu0 %v7364_v34  ;;  %v9510_v34 = vld [vmem:[#allocation6] sm:$0xff] }
 0xf54   :  { %4077 = vmatpush.bf16.msra.mxu3 %v7345_v6  ;;  %4254 = vmatpush.bf16.msra.mxu1 %v7372_v52  ;;  %v9514_v6 = vld [vmem:[#allocation6 + $0x8] sm:$0xff]  ;;  %v4364_v52 = vld [vmem:[%s9719_s13 + $0x10] sm:$0x3] }
 0xf57   :  { %4158 = vmatpush.bf16.msra.mxu0 %v7363_v41  ;;  %v7415_v41 = vld [vmem:[#allocation61 + $0xd0] sm:$0xff] }
 0xf58   :  { %4255 = vmatpush.bf16.msra.mxu1 %v7371_v57 }
 0xf5b   :  { %4159 = vmatpush.bf16.msra.mxu0 %v7362_v36  ;;  %v7413_v36 = vld [vmem:[#allocation61 + $0xc0] sm:$0xff] }
 0xf5c   :  { %4256 = vmatpush.bf16.msra.mxu1 %v7370_v58 }
 0xf5f   :  { %4160 = vmatpush.bf16.msra.mxu0 %v7361_v43 }
 0xf60   :  { %4257 = vmatpush.bf16.msra.mxu1 %v7369_v60 }
 0xfb5   :  { %v4013_v5 = vpop.f32.mrf.mxu2 }
 0xfbd   :  { %v4015_v45 = vpop.f32.mrf.mxu2 }
 0xfbf   :  { %v3892_v37 = vpop.f32.mrf.mxu0 }
 0xfc0   :  { %v3912_v39 = vpop.f32.mrf.mxu1 }
 0xfc5   :  { %v4018_v22 = vpop.f32.mrf.mxu2 }
 0xfc7   :  { %v3894_v47 = vpop.f32.mrf.mxu0 }
 0xfc8   :  { %v3901_v23 = vpack.c.bf16 %v3894_v47, %v3892_v37  ;;  %v3914_v48 = vpop.f32.mrf.mxu1 }
 0xfc9   :  { %v3921_v24 = vpack.c.bf16 %v3914_v48, %v3912_v39  ;;  %v7385_v48 = vld [vmem:[#allocation60] sm:$0xff] }
 0xfca   :  { %4078 = vmatmul.bf16.vlgmr.msra.gmra.mxu3 %v3901_v23 }
 0xfcb   :  { %4161 = vmatmul.bf16.vlgmr.msra.gmra.mxu0 %v3921_v24 }
 0xfcd   :  { %v4020_v25 = vpop.f32.mrf.mxu2 }
 0xfcf   :  { %v3897_v49 = vpop.f32.mrf.mxu0 }
 0xfd0   :  { %v3917_v50 = vpop.f32.mrf.mxu1  ;;  %v3902_v51 = vpack.c.bf16 %v3897_v49, %v3897_v49  ;;  %v7387_v49 = vld [vmem:[%s9719_s13] sm:$0xff] }
 0xfd1   :  { %v3922_v54 = vpack.c.bf16 %v3917_v50, %v3917_v50 }
 0xfd7   :  { %v3899_v53 = vpop.f32.mrf.mxu0 }
 0xfd8   :  { %v3919_v55 = vpop.f32.mrf.mxu1  ;;  %v7386_v53 = vld [vmem:[#allocation60 + $0x8] sm:$0xff] }
 0xfda   :  { %4083 = vmatmul.bf16.gmra.mxu3 %v3902_v51 }
 0xfdb   :  { %4166 = vmatmul.bf16.gmra.mxu0 %v3922_v54 }
0x1048   :  { %v4162_v0 = vpop.f32.mrf.mxu0 }
0x104d   :  { %v4079_v38 = vpop.f32.mrf.mxu3 }
0x104e   :  { %v4080_v2 = vadd.f32 %v4079_v38, %v4013_v5 }
0x1050   :  { %v4164_v3 = vpop.f32.mrf.mxu0  ;;  %v4171_v4 = vadd.f32 %v4162_v0, %v4080_v2  ;;  %v9551_v2 = vld [vmem:[#allocation7] sm:$0xff] }
0x1052   :  { %v4178_v11 = vadd.f32 %v7573_v7, %v4171_v4 }
0x1054   :  { %v4181_v62 = vmax.f32 %v4178_v11, 0.0 }
0x1055   :  { %v4081_v10 = vpop.f32.mrf.mxu3 }
0x1056   :  { %v4082_v32 = vadd.f32 %v4081_v10, %v4015_v45 }
0x1058   :  { %v4172_v20 = vadd.f32 %v4164_v3, %v4082_v32  ;;  %v4167_v12 = vpop.f32.mrf.mxu0 }
0x105a   :  { %v4179_v61 = vadd.f32 %v7573_v7, %v4172_v20 }
0x105c   :  { %v4182_v13 = vmax.f32 %v4179_v61, 0.0 }
0x105d   :  { %v4084_v14 = vpop.f32.mrf.mxu3 }
0x105e   :  { %v4184_v40 = vpack.c.bf16 %v4182_v13, %v4181_v62  ;;  %v4085_v15 = vadd.f32 %v4084_v14, %v4018_v22 }
0x1060   :  { %4258 = vmatmul.bf16.vlgmr.msra.gmra.mxu1 %v4184_v40  ;;  %4343 = vmatmul.bf16.vlgmr.msrb.gmra.mxu2 %v4184_v40  ;;  %v4169_v16 = vpop.f32.mrf.mxu0  ;;  %v4173_v17 = vadd.f32 %v4167_v12, %v4085_v15 }
0x1061   :  { %4783 = vmatpush.bf16.msrb.mxu2 %v7420_v8 }
0x1062   :  { %v4180_v21 = vadd.f32 %v7573_v7, %v4173_v17  ;;  %v9557_v7 = vld [vmem:[#allocation7 + $0x8] sm:$0xff] }
0x1064   :  { %v4183_v26 = vmax.f32 %v4180_v21, 0.0 }
0x1065   :  { %v4086_v19 = vpop.f32.mrf.mxu3  ;;  %4784 = vmatpush.bf16.msrb.mxu2 %v7419_v9 }
0x1066   :  { %v4185_v27 = vpack.c.bf16 %v4183_v26, %v4183_v26 }
0x1069   :  { %4785 = vmatpush.bf16.msrb.mxu2 %v7418_v28 }
0x106d   :  { %4786 = vmatpush.bf16.msrb.mxu2 %v7417_v33 }
0x1070   :  { %4263 = vmatmul.bf16.gmra.mxu1 %v4185_v27  ;;  %4348 = vmatmul.bf16.gmra.mxu2 %v4185_v27  ;;  %v7574_v27 = vld [vmem:[#allocation58] ss:$0 sm:$0xff] }
0x1071   :  { %4787 = vmatpush.bf16.msrb.mxu2 %v7416_v35 }
0x1075   :  { %4788 = vmatpush.bf16.msrb.mxu2 %v7415_v41 }
0x1079   :  { %4789 = vmatpush.bf16.msrb.mxu2 %v7414_v42 }
0x107d   :  { %4790 = vmatpush.bf16.msrb.mxu2 %v7413_v36 }
0x1080   :  { %6789 = vmatmul.msk.bf16.vlgmr.msra.gmra.mxu2 %vm905_vm3, %v9510_v34 }
0x1090   :  { %6790 = vmatmul.msk.bf16.gmra.mxu2 %vm905_vm3, %v9514_v6 }
0x10a0   :  { %6791 = vmatmul.msk.bf16.gmra.mxu2 %vm905_vm3, %v9332_v30 }
0x10b0   :  { %4791 = vmatmul.bf16.vlgmr.msrb.gmra.mxu2 %v9375_v1 }
0x10c0   :  { %4796 = vmatmul.bf16.gmra.mxu2 %v9372_v63 }
0x10d0   :  { %4801 = vmatmul.bf16.gmra.mxu2 %v9365_v56 }
0x10dd   :  { %v4259_v43 = vpop.f32.mrf.mxu1 }
0x10e3   :  { %v4344_v5 = vpop.f32.mrf.mxu2 }
0x10e5   :  { %v4261_v44 = vpop.f32.mrf.mxu1 }
0x10e6   :  { %v4268_v22 = vpack.c.bf16 %v4261_v44, %v4259_v43 }
0x10eb   :  { %v4346_v45 = vpop.f32.mrf.mxu2 }
0x10ec   :  { %v4353_v56 = vpack.c.bf16 %v4346_v45, %v4344_v5 }
0x10ed   :  { %v4264_v46 = vpop.f32.mrf.mxu1 }
0x10ee   :  { %v4269_v37 = vpack.c.bf16 %v4264_v46, %v4264_v46 }
0x10f0   :  { %v4436_v39 = vsel %vm915_vm2, %v4269_v37, 0 }
0x10f1   :  { %4444 = vmatpush.bf16.msrb.mxu0 %v4436_v39 }
0x10f3   :  { %v4349_v47 = vpop.f32.mrf.mxu2 }
0x10f4   :  { %v4354_v23 = vpack.c.bf16 %v4349_v47, %v4349_v47 }
0x10f5   :  { %v4266_v24 = vpop.f32.mrf.mxu1  ;;  %4445 = vmatpush.bf16.msrb.mxu0 %v4268_v22 }
0x10f6   :  { %v4388_v25 = vsel %vm915_vm2, %v4354_v23, 0 }
0x10f7   :  { %4396 = vmatpush.bf16.msrb.mxu3 %v4388_v25 }
0x10f8   :  { %6783 = vmatmul.msk.bf16.vlgmr.msrb.gmra.mxu0 %vm1757_vm5, %v7385_v48 }
0x10f9   :  { %4575 = vmatpush.bf16.msra.mxu0 %v9369_v59  ;;  %v7388_v59 = vld [vmem:[%s9719_s13 + $0x8] sm:$0xff] }
0x10fb   :  { %v4351_v50 = vpop.f32.mrf.mxu2  ;;  %4397 = vmatpush.bf16.msrb.mxu3 %v4353_v56 }
0x10fd   :  { %4576 = vmatpush.bf16.msra.mxu0 %v9372_v63  ;;  %v4359_v63 = vld [vmem:[#allocation60 + $0x10] sm:$0x3] }
0x10fe   :  { %6772 = vmatmul.msk.bf16.vlgmr.msrb.gmra.mxu3 %vm1757_vm5, %v7387_v49  ;;  %v4422_v18 = vunpack.c.l.b16 %v4359_v63  ;;  %v7411_v63 = vld [vmem:[#allocation61 + $0xb0] sm:$0xff] }
0x1100   :  { %v4425_v57 = vpack.c.b16 %v4422_v18, %v4422_v18  ;;  %v7410_v18 = vld [vmem:[#allocation61 + $0xa8] sm:$0xff] }
0x1101   :  { %4577 = vmatpush.bf16.msra.mxu0 %v9375_v1  ;;  %v4374_v1 = vunpack.c.l.b16 %v4364_v52  ;;  %v7409_v52 = vld [vmem:[#allocation61 + $0xa0] sm:$0xff] }
0x1103   :  { %v9531_v51 = vpop.f32.mrf.mxu2  ;;  %v4377_v58 = vpack.c.b16 %v4374_v1, %v4374_v1  ;;  %v7407_v1 = vld [vmem:[#allocation61 + $0x90] sm:$0xff] }
0x1108   :  { %6784 = vmatmul.msk.bf16.gmra.mxu0 %vm1757_vm5, %v7386_v53  ;;  %v7412_v53 = vld [vmem:[#allocation61 + $0xb8] sm:$0xff] }
0x110b   :  { %v9535_v54 = vpop.f32.mrf.mxu2 }
0x110c   :  { %v4542_v55 = vpack.c.bf16 %v9535_v54, %v9531_v51 }
0x110e   :  { %6773 = vmatmul.msk.bf16.gmra.mxu3 %vm1757_vm5, %v7388_v59 }
0x1113   :  { %v9540_v29 = vpop.f32.mrf.mxu2 }
0x1118   :  { %6785 = vmatmul.msk.bf16.gmra.mxu0 %vm1757_vm5, %v4425_v57  ;;  %v7408_v57 = vld [vmem:[#allocation61 + $0x98] sm:$0xff] }
0x111b   :  { %v9544_v60 = vpop.f32.mrf.mxu2 }
0x111c   :  { %v4544_v0 = vpack.c.bf16 %v9544_v60, %v9540_v29 }
0x111e   :  { %6774 = vmatmul.msk.bf16.gmra.mxu3 %vm1757_vm5, %v4377_v58  ;;  %v7406_v58 = vld [vmem:[#allocation61 + $0x88] sm:$0xff] }
0x1123   :  { %v9549_v38 = vpop.f32.mrf.mxu2 }
0x1124   :  { %v4546_v51 = vpack.c.bf16 %v9549_v38, %v9549_v38 }
0x1128   :  { %6795 = vmatmul.msk.bf16.vlgmr.msra.gmra.mxu0 %vm905_vm3, %v9551_v2 }
0x112b   :  { %v4539_v3 = vpop.f32.mrf.mxu2 }
0x112c   :  { %v7405_v3 = vld [vmem:[#allocation61 + $0x80] sm:$0xff] }
0x1133   :  { %v9555_v4 = vpop.f32.mrf.mxu2 }
0x1138   :  { %6796 = vmatmul.msk.bf16.gmra.mxu0 %vm905_vm3, %v9557_v7 }
0x113b   :  { %v9561_v10 = vpop.f32.mrf.mxu2 }
0x1143   :  { %v9563_v32 = vpop.f32.mrf.mxu2 }
0x1148   :  { %6797 = vmatmul.msk.bf16.gmra.mxu0 %vm905_vm3, %v9334_v31 }
0x114b   :  { %v9567_v11 = vpop.f32.mrf.mxu2 }
0x1153   :  { %v9569_v20 = vpop.f32.mrf.mxu2 }
0x115b   :  { %v4804_v12 = vpop.f32.mrf.mxu2 }
0x115c   :  { %v7436_v12 = vld [vmem:[#allocation61 + $0x178] sm:$0xff] }
0x115d   :  { %5100 = vmatpush.bf16.msra.mxu2 %v7436_v12 }
0x1175   :  { %v4447_v61 = vpop.f32.mrf.mxu0 }
0x117d   :  { %v4449_v62 = vpop.f32.mrf.mxu0 }
0x1181   :  { %v4399_v13 = vpop.f32.mrf.mxu3 }
0x1182   :  { %v4448_v42 = vadd.f32 %v4447_v61, %v4399_v13  ;;  %v7404_v61 = vld [vmem:[#allocation61 + $0x78] sm:$0xff]  ;;  %v7403_v13 = vld [vmem:[#allocation61 + $0x70] sm:$0xff] }
0x1183   :  { %4925 = vmatpush.bf16.msrb.mxu0 %v7404_v61 }
0x1184   :  { %v4465_v46 = vadd.f32 %v7574_v27, %v4448_v42  ;;  %v7392_v42 = vld [vmem:[#allocation61 + $0x18] sm:$0xff] }
0x1185   :  { %v4452_v14 = vpop.f32.mrf.mxu0 }
0x1186   :  { %v4470_v24 = vpack.c.bf16 %v4465_v46, %v4465_v46  ;;  %v7429_v46 = vld [vmem:[#allocation61 + $0x140] sm:$0xff] }
0x1187   :  { %4926 = vmatpush.bf16.msrb.mxu0 %v7403_v13 }
0x1188   :  { %v4480_v50 = vunpack.c.l.b16 %v4470_v24  ;;  %v7390_v24 = vld [vmem:[#allocation61 + $0x8] sm:$0xff] }
0x1189   :  { %v4401_v40 = vpop.f32.mrf.mxu3 }
0x118a   :  { %v4450_v33 = vadd.f32 %v4449_v62, %v4401_v40  ;;  %v7435_v62 = vld [vmem:[#allocation61 + $0x170] sm:$0xff]  ;;  %v7428_v40 = vld [vmem:[#allocation61 + $0x138] sm:$0xff] }
0x118b   :  { %5101 = vmatpush.bf16.msra.mxu2 %v7435_v62 }
0x118c   :  { %v4466_v5 = vadd.f32 %v7574_v27, %v4450_v33  ;;  %v7432_v33 = vld [vmem:[#allocation61 + $0x158] sm:$0xff] }
0x118d   :  { %v4454_v15 = vpop.f32.mrf.mxu0 }
0x118e   :  { %v4471_v47 = vpack.c.bf16 %v4466_v5, %v4466_v5  ;;  %v7430_v5 = vld [vmem:[#allocation61 + $0x148] sm:$0xff] }
0x1190   :  { %v4481_v56 = vunpack.c.l.b16 %v4471_v47  ;;  %v7397_v47 = vld [vmem:[#allocation61 + $0x40] sm:$0xff] }
0x1191   :  { %v4404_v16 = vpop.f32.mrf.mxu3 }
0x1192   :  { %v4453_v8 = vadd.f32 %v4452_v14, %v4404_v16  ;;  %v4485_v59 = vpack.c.b16 %v4481_v56, %v4480_v50  ;;  %v7396_v14 = vld [vmem:[#allocation61 + $0x38] sm:$0xff]  ;;  %v7427_v16 = vld [vmem:[#allocation61 + $0x130] sm:$0xff]  ;;  %v7389_v56 = vld [vmem:[#allocation61] sm:$0xff] }
0x1194   :  { %v4467_v36 = vadd.f32 %v7574_v27, %v4453_v8  ;;  %v7401_v8 = vld [vmem:[#allocation61 + $0x60] sm:$0xff] }
0x1195   :  { %v4457_v17 = vpop.f32.mrf.mxu0 }
0x1196   :  { %v4472_v37 = vpack.c.bf16 %v4467_v36, %v4467_v36  ;;  %v7431_v36 = vld [vmem:[#allocation61 + $0x150] sm:$0xff] }
0x1198   :  { %v4482_v25 = vunpack.c.l.b16 %v4472_v37 }
0x1199   :  { %v4406_v19 = vpop.f32.mrf.mxu3 }
0x119a   :  { %v4455_v26 = vadd.f32 %v4454_v15, %v4406_v19  ;;  %v7395_v15 = vld [vmem:[#allocation61 + $0x30] sm:$0xff]  ;;  %v7402_v19 = vld [vmem:[#allocation61 + $0x68] sm:$0xff] }
0x119b   :  { %4927 = vmatpush.bf16.msrb.mxu0 %v7402_v19 }
0x119c   :  { %v4468_v35 = vadd.f32 %v7574_v27, %v4455_v26  ;;  %v7426_v26 = vld [vmem:[#allocation61 + $0x128] sm:$0xff] }
0x119d   :  { %v4459_v21 = vpop.f32.mrf.mxu0 }
0x119e   :  { %v4473_v44 = vpack.c.bf16 %v4468_v35, %v4468_v35  ;;  %v7394_v21 = vld [vmem:[#allocation61 + $0x28] sm:$0xff]  ;;  %v7400_v35 = vld [vmem:[#allocation61 + $0x58] sm:$0xff] }
0x119f   :  { %4928 = vmatpush.bf16.msrb.mxu0 %v7401_v8  ;;  %v7450_v8 = vld [vmem:[#allocation63 + $0x68] sm:$0xff] }
0x11a0   :  { %v4483_v23 = vunpack.c.l.b16 %v4473_v44  ;;  %v7398_v44 = vld [vmem:[#allocation61 + $0x48] sm:$0xff] }
0x11a1   :  { %v4409_v9 = vpop.f32.mrf.mxu3 }
0x11a2   :  { %v4458_v28 = vadd.f32 %v4457_v17, %v4409_v9  ;;  %v4486_v49 = vpack.c.b16 %v4483_v23, %v4482_v25  ;;  %v7434_v17 = vld [vmem:[#allocation61 + $0x168] sm:$0xff]  ;;  %v7393_v9 = vld [vmem:[#allocation61 + $0x20] sm:$0xff]  ;;  %v7423_v25 = vld [vmem:[#allocation61 + $0x110] sm:$0xff] }
0x11a3   :  { %5102 = vmatpush.bf16.msra.mxu2 %v7434_v17  ;;  %4929 = vmatpush.bf16.msrb.mxu0 %v7400_v35 }
0x11a4   :  { %v4469_v41 = vadd.f32 %v7574_v27, %v4458_v28  ;;  %v7433_v27 = vld [vmem:[#allocation61 + $0x160] sm:$0xff] }
0x11a5   :  { %v7425_v28 = vld [vmem:[#allocation61 + $0x120] sm:$0xff] }
0x11a6   :  { %v4474_v43 = vpack.c.bf16 %v4469_v41, %v4469_v41  ;;  %v4579_v41 = vpop.f32.mrf.mxu0 }
0x11a7   :  { %5103 = vmatpush.bf16.msra.mxu2 %v7433_v27  ;;  %v7451_v27 = vld [vmem:[#allocation63 + $0x70] sm:$0xff] }
0x11a8   :  { %v4484_v45 = vunpack.c.l.b16 %v4474_v43  ;;  %v7399_v43 = vld [vmem:[#allocation61 + $0x50] sm:$0xff] }
0x11a9   :  { %v4411_v39 = vpop.f32.mrf.mxu3  ;;  %4930 = vmatpush.bf16.msrb.mxu0 %v7399_v43  ;;  %v7448_v43 = vld [vmem:[#allocation63 + $0x58] sm:$0xff] }
0x11aa   :  { %v9571_v22 = vpack.c.b16 %v4484_v45, %v4484_v45  ;;  %v7391_v39 = vld [vmem:[#allocation61 + $0x10] sm:$0xff] }
0x11ab   :  { %5104 = vmatpush.bf16.msra.mxu2 %v7432_v33 }
0x11ac   :  { %v4493_v48 = vsel %vm915_vm2, %v9571_v22, 0 }
0x11ad   :  { %4500 = vmatpush.bf16.msrb.mxu1 %v4493_v48  ;;  %4552 = vmatpush.bf16.msra.mxu3 %v4493_v48  ;;  %v7424_v48 = vld [vmem:[#allocation61 + $0x118] sm:$0xff] }
0x11ae   :  { %v4581_v45 = vpop.f32.mrf.mxu0  ;;  %4931 = vmatpush.bf16.msrb.mxu0 %v7398_v44 }
0x11af   :  { %5105 = vmatpush.bf16.msra.mxu2 %v7431_v36  ;;  %v4594_v37 = vpack.c.bf16 %v4581_v45, %v4579_v41  ;;  %v7449_v36 = vld [vmem:[#allocation63 + $0x60] sm:$0xff]  ;;  %v7447_v45 = vld [vmem:[#allocation63 + $0x50] sm:$0xff] }
0x11b1   :  { %4501 = vmatpush.bf16.msrb.mxu1 %v4486_v49  ;;  %4553 = vmatpush.bf16.msra.mxu3 %v4486_v49 }
0x11b2   :  { %4932 = vmatpush.bf16.msrb.mxu0 %v7397_v47 }
0x11b3   :  { %5106 = vmatpush.bf16.msra.mxu2 %v7430_v5 }
0x11b5   :  { %4502 = vmatpush.bf16.msrb.mxu1 %v4485_v59  ;;  %4554 = vmatpush.bf16.msra.mxu3 %v4485_v59 }
0x11b6   :  { %v4584_v23 = vpop.f32.mrf.mxu0  ;;  %4933 = vmatmul.bf16.vlgmr.msrb.gmra.mxu0 %v4542_v55 }
0x11b7   :  { %5107 = vmatpush.bf16.msra.mxu2 %v7429_v46  ;;  %v7446_v46 = vld [vmem:[#allocation63 + $0x48] sm:$0xff] }
0x11b8   :  { %6786 = vmatmul.msk.bf16.vlgmr.msrb.gmra.mxu1 %vm905_vm3, %v9510_v34  ;;  %6792 = vmatmul.msk.bf16.vlgmr.msra.gmra.mxu3 %vm905_vm3, %v9551_v2 }
0x11b9   :  { %4760 = vmatpush.bf16.msra.mxu1 %v7412_v53  ;;  %4902 = vmatpush.bf16.msrb.mxu3 %v7396_v14  ;;  %v7421_v53 = vld [vmem:[#allocation61 + $0x100] sm:$0xff] }
0x11ba   :  { %5108 = vmatmul.bf16.vlgmr.msra.gmra.mxu2 %v4594_v37  ;;  %v7445_v37 = vld [vmem:[#allocation63 + $0x40] sm:$0xff] }
0x11bd   :  { %4761 = vmatpush.bf16.msra.mxu1 %v7411_v63  ;;  %4903 = vmatpush.bf16.msrb.mxu3 %v7395_v15 }
0x11c1   :  { %4762 = vmatpush.bf16.msra.mxu1 %v7410_v18  ;;  %4904 = vmatpush.bf16.msrb.mxu3 %v7394_v21  ;;  %v7452_v21 = vld [vmem:[#allocation63 + $0x78] sm:$0xff] }
0x11c5   :  { %4763 = vmatpush.bf16.msra.mxu1 %v7409_v52  ;;  %4905 = vmatpush.bf16.msrb.mxu3 %v7393_v9 }
0x11c6   :  { %4938 = vmatmul.bf16.gmra.mxu0 %v4544_v0 }
0x11c8   :  { %6787 = vmatmul.msk.bf16.gmra.mxu1 %vm905_vm3, %v9514_v6  ;;  %6793 = vmatmul.msk.bf16.gmra.mxu3 %vm905_vm3, %v9557_v7 }
0x11c9   :  { %4764 = vmatpush.bf16.msra.mxu1 %v7408_v57  ;;  %4906 = vmatpush.bf16.msrb.mxu3 %v7392_v42 }
0x11cd   :  { %4765 = vmatpush.bf16.msra.mxu1 %v7407_v1  ;;  %4907 = vmatpush.bf16.msrb.mxu3 %v7391_v39 }
0x11d1   :  { %4766 = vmatpush.bf16.msra.mxu1 %v7406_v58  ;;  %4908 = vmatpush.bf16.msrb.mxu3 %v7390_v24 }
0x11d5   :  { %4767 = vmatpush.bf16.msra.mxu1 %v7405_v3  ;;  %4909 = vmatpush.bf16.msrb.mxu3 %v7389_v56 }
0x11d6   :  { %4943 = vmatmul.bf16.gmra.mxu0 %v4546_v51 }
0x11d8   :  { %6788 = vmatmul.msk.bf16.gmra.mxu1 %vm905_vm3, %v9332_v30  ;;  %6794 = vmatmul.msk.bf16.gmra.mxu3 %vm905_vm3, %v9334_v31 }
0x11d9   :  { %5077 = vmatpush.bf16.msrb.mxu1 %v7428_v40 }
0x11dd   :  { %5078 = vmatpush.bf16.msrb.mxu1 %v7427_v16 }
0x11e1   :  { %5079 = vmatpush.bf16.msrb.mxu1 %v7426_v26 }
0x11e5   :  { %5080 = vmatpush.bf16.msrb.mxu1 %v7425_v28 }
0x11e8   :  { %4768 = vmatmul.bf16.vlgmr.msra.gmra.mxu1 %v4485_v59 }
0x11e9   :  { %5081 = vmatpush.bf16.msrb.mxu1 %v7424_v48 }
0x11ed   :  { %5082 = vmatpush.bf16.msrb.mxu1 %v7423_v25 }
0x11f8   :  { %4773 = vmatmul.bf16.gmra.mxu1 %v4486_v49  ;;  %v4586_v49 = vpop.f32.mrf.mxu0 }
0x11f9   :  { %v4596_v50 = vpack.c.bf16 %v4586_v49, %v4584_v23 }
0x11fb   :  { %5113 = vmatmul.bf16.gmra.mxu2 %v4596_v50 }
0x1200   :  { %v4589_v55 = vpop.f32.mrf.mxu0 }
0x1201   :  { %v4598_v59 = vpack.c.bf16 %v4589_v55, %v4589_v55 }
0x1208   :  { %4778 = vmatmul.bf16.gmra.mxu1 %v9571_v22  ;;  %v7422_v22 = vld [vmem:[#allocation61 + $0x108] sm:$0xff]  ;;  %v4591_v57 = vpop.f32.mrf.mxu0 }
0x1209   :  { %5083 = vmatpush.bf16.msrb.mxu1 %v7422_v22 }
0x120b   :  { %5118 = vmatmul.bf16.gmra.mxu2 %v4598_v59 }
0x120d   :  { %5084 = vmatpush.bf16.msrb.mxu1 %v7421_v53 }
0x1211   :  { %5281 = vmatpush.bf16.msra.mxu1 %v7452_v21 }
0x1215   :  { %5282 = vmatpush.bf16.msra.mxu1 %v7451_v27 }
0x1219   :  { %5283 = vmatpush.bf16.msra.mxu1 %v7450_v8 }
0x121d   :  { %5284 = vmatpush.bf16.msra.mxu1 %v7449_v36 }
0x1221   :  { %5285 = vmatpush.bf16.msra.mxu1 %v7448_v43 }
0x1225   :  { %5286 = vmatpush.bf16.msra.mxu1 %v7447_v45 }
0x1229   :  { %5287 = vmatpush.bf16.msra.mxu1 %v7446_v46 }
0x122d   :  { %5288 = vmatpush.bf16.msra.mxu1 %v7445_v37 }
0x1233   :  { %v4934_v33 = vpop.f32.mrf.mxu0 }
0x1235   :  { %v4504_v54 = vpop.f32.mrf.mxu1 }
0x123b   :  { %v4556_v63 = vpop.f32.mrf.mxu3  ;;  %v4936_v41 = vpop.f32.mrf.mxu0 }
0x123d   :  { %v4506_v18 = vpop.f32.mrf.mxu1  ;;  %v5109_v35 = vpop.f32.mrf.mxu2 }
0x123e   :  { %v4541_v52 = vpack.c.bf16 %v4506_v18, %v4504_v54  ;;  %v7575_v18 = vld [vmem:[%s9720_s7] ss:$0 sm:$0xff] }
0x1240   :  { %4910 = vmatmul.bf16.vlgmr.msrb.gmra.mxu3 %v4541_v52 }
0x1243   :  { %v4558_v1 = vpop.f32.mrf.mxu3  ;;  %v4939_v5 = vpop.f32.mrf.mxu0 }
0x1244   :  { %v4593_v58 = vpack.c.bf16 %v4558_v1, %v4556_v63 }
0x1245   :  { %v4509_v3 = vpop.f32.mrf.mxu1  ;;  %v5111_v42 = vpop.f32.mrf.mxu2 }
0x1246   :  { %5085 = vmatmul.bf16.vlgmr.msrb.gmra.mxu1 %v4593_v58 }
0x124b   :  { %v4561_v12 = vpop.f32.mrf.mxu3  ;;  %v4941_v39 = vpop.f32.mrf.mxu0 }
0x124d   :  { %v4511_v29 = vpop.f32.mrf.mxu1 }
0x124e   :  { %v4543_v60 = vpack.c.bf16 %v4511_v29, %v4509_v3 }
0x1250   :  { %4915 = vmatmul.bf16.gmra.mxu3 %v4543_v60 }
0x1253   :  { %v4563_v0 = vpop.f32.mrf.mxu3  ;;  %v4944_v23 = vpop.f32.mrf.mxu0 }
0x1254   :  { %v4595_v38 = vpack.c.bf16 %v4563_v0, %v4561_v12 }
0x1255   :  { %v4514_v61 = vpop.f32.mrf.mxu1 }
0x1256   :  { %5090 = vmatmul.bf16.gmra.mxu1 %v4595_v38  ;;  %v4545_v13 = vpack.c.bf16 %v4514_v61, %v4514_v61 }
0x125b   :  { %v4566_v62 = vpop.f32.mrf.mxu3  ;;  %v4946_v22 = vpop.f32.mrf.mxu0 }
0x125c   :  { %v4597_v40 = vpack.c.bf16 %v4566_v62, %v4566_v62  ;;  %v7439_v22 = vld [vmem:[#allocation63 + $0x10] sm:$0xff] }
0x125d   :  { %v4516_v14 = vpop.f32.mrf.mxu1 }
0x1260   :  { %4920 = vmatmul.bf16.gmra.mxu3 %v4545_v13 }
0x1263   :  { %v4568_v15 = vpop.f32.mrf.mxu3 }
0x1265   :  { %v4769_v16 = vpop.f32.mrf.mxu1 }
0x1266   :  { %5095 = vmatmul.bf16.gmra.mxu1 %v4597_v40  ;;  %v4793_v24 = vadd.f32 %v9555_v4, %v4769_v16 }
0x126d   :  { %v4771_v17 = vpop.f32.mrf.mxu1 }
0x126e   :  { %v4795_v51 = vadd.f32 %v9561_v10, %v4771_v17 }
0x1275   :  { %v4774_v19 = vpop.f32.mrf.mxu1 }
0x1276   :  { %v4798_v4 = vadd.f32 %v9563_v32, %v4774_v19 }
0x127d   :  { %v4776_v26 = vpop.f32.mrf.mxu1 }
0x127e   :  { %v5114_v44 = vpop.f32.mrf.mxu2  ;;  %v4800_v13 = vadd.f32 %v9567_v11, %v4776_v26 }
0x1285   :  { %v4779_v9 = vpop.f32.mrf.mxu1 }
0x1286   :  { %v5116_v47 = vpop.f32.mrf.mxu2  ;;  %v4803_v19 = vadd.f32 %v9569_v20, %v4779_v9  ;;  %v7460_v20 = vld [vmem:[#allocation63 + $0xb8] sm:$0xff] }
0x1287   :  { %v7444_v9 = vld [vmem:[#allocation63 + $0x38] sm:$0xff] }
0x1288   :  { %5352 = vmatpush.bf16.msrb.mxu2 %v7444_v9 }
0x128d   :  { %v4781_v28 = vpop.f32.mrf.mxu1 }
0x128e   :  { %v5119_v48 = vpop.f32.mrf.mxu2 }
0x1296   :  { %v5121_v50 = vpop.f32.mrf.mxu2 }
0x1297   :  { %v7453_v50 = vld [vmem:[#allocation63 + $0x80] sm:$0xff] }
0x12c3   :  { %v4911_v25 = vpop.f32.mrf.mxu3  ;;  %v5086_v56 = vpop.f32.mrf.mxu1 }
0x12c4   :  { %v4912_v49 = vadd.f32 %v4911_v25, %v4793_v24  ;;  %v5110_v54 = vadd.f32 %v5109_v35, %v5086_v56  ;;  %v7440_v25 = vld [vmem:[#allocation63 + $0x18] sm:$0xff]  ;;  %v7454_v56 = vld [vmem:[#allocation63 + $0x88] sm:$0xff] }
0x12c6   :  { %v4935_v53 = vadd.f32 %v4934_v33, %v4912_v49 }
0x12c8   :  { %v5123_v63 = vadd.f32 %v5110_v54, %v4935_v53  ;;  %v7438_v53 = vld [vmem:[#allocation63 + $0x8] sm:$0xff]  ;;  %v7437_v54 = vld [vmem:[#allocation63] sm:$0xff] }
0x12ca   :  { %v5132_v58 = vadd.f32 %v7575_v18, %v5123_v63 }
0x12cb   :  { %v4913_v55 = vpop.f32.mrf.mxu3  ;;  %v5088_v59 = vpop.f32.mrf.mxu1 }
0x12cc   :  { %v4914_v52 = vadd.f32 %v4913_v55, %v4795_v51  ;;  %v5112_v1 = vadd.f32 %v5111_v42, %v5088_v59  ;;  %v5137_v0 = vmax.f32 %v5132_v58, 0.0 }
0x12ce   :  { %v4937_v57 = vadd.f32 %v4936_v41, %v4914_v52 }
0x12d0   :  { %v5124_v3 = vadd.f32 %v5112_v1, %v4937_v57 }
0x12d2   :  { %v5133_v12 = vadd.f32 %v7575_v18, %v5124_v3 }
0x12d3   :  { %v4916_v29 = vpop.f32.mrf.mxu3  ;;  %v5091_v60 = vpop.f32.mrf.mxu1 }
0x12d4   :  { %v5138_v38 = vmax.f32 %v5133_v12, 0.0  ;;  %v4917_v61 = vadd.f32 %v4916_v29, %v4798_v4  ;;  %v5115_v14 = vadd.f32 %v5114_v44, %v5091_v60 }
0x12d6   :  { %v5142_v62 = vpack.c.bf16 %v5138_v38, %v5137_v0  ;;  %v4940_v10 = vadd.f32 %v4939_v5, %v4917_v61 }
0x12d8   :  { %5289 = vmatmul.bf16.vlgmr.msra.gmra.mxu1 %v5142_v62  ;;  %v5125_v16 = vadd.f32 %v5115_v14, %v4940_v10 }
0x12da   :  { %v5134_v8 = vadd.f32 %v7575_v18, %v5125_v16 }
0x12db   :  { %v4918_v40 = vpop.f32.mrf.mxu3  ;;  %v5093_v15 = vpop.f32.mrf.mxu1 }
0x12dc   :  { %v4919_v17 = vadd.f32 %v4918_v40, %v4800_v13  ;;  %v5117_v27 = vadd.f32 %v5116_v47, %v5093_v15  ;;  %v5139_v41 = vmax.f32 %v5134_v8, 0.0 }
0x12de   :  { %v4942_v21 = vadd.f32 %v4941_v39, %v4919_v17 }
0x12e0   :  { %v5126_v32 = vadd.f32 %v5117_v27, %v4942_v21 }
0x12e2   :  { %v5135_v28 = vadd.f32 %v7575_v18, %v5126_v32 }
0x12e3   :  { %v4921_v33 = vpop.f32.mrf.mxu3  ;;  %v5096_v35 = vpop.f32.mrf.mxu1 }
0x12e4   :  { %v5140_v42 = vmax.f32 %v5135_v28, 0.0  ;;  %v4922_v36 = vadd.f32 %v4921_v33, %v4803_v19  ;;  %v5120_v43 = vadd.f32 %v5119_v48, %v5096_v35  ;;  %v7457_v48 = vld [vmem:[#allocation63 + $0xa0] sm:$0xff] }
0x12e6   :  { %v4945_v5 = vadd.f32 %v4944_v23, %v4922_v36  ;;  %v5143_v11 = vpack.c.bf16 %v5140_v42, %v5139_v41  ;;  %v7459_v23 = vld [vmem:[#allocation63 + $0xb0] sm:$0xff] }
0x12e8   :  { %v5127_v26 = vadd.f32 %v5120_v43, %v4945_v5  ;;  %5294 = vmatmul.bf16.gmra.mxu1 %v5143_v11 }
0x12ea   :  { %v5136_v44 = vadd.f32 %v7575_v18, %v5127_v26 }
0x12eb   :  { %v4923_v45 = vpop.f32.mrf.mxu3  ;;  %v5098_v46 = vpop.f32.mrf.mxu1 }
0x12ec   :  { %v5141_v37 = vmax.f32 %v5136_v44, 0.0 }
0x12ee   :  { %v5144_v39 = vpack.c.bf16 %v5141_v37, %v5141_v37 }
0x12f0   :  { %v5146_v47 = vsel %vm915_vm2, %v5144_v39, 0 }
0x12f1   :  { %5153 = vmatpush.bf16.msra.mxu3 %v5146_v47  ;;  %5179 = vmatpush.bf16.msra.mxu0 %v5146_v47 }
0x12f5   :  { %5154 = vmatpush.bf16.msra.mxu3 %v5143_v11  ;;  %5180 = vmatpush.bf16.msra.mxu0 %v5143_v11  ;;  %v7576_v11 = vld [vmem:[%s9721_s10] ss:$0 sm:$0xff] }
0x12f8   :  { %5299 = vmatmul.bf16.gmra.mxu1 %v5144_v39 }
0x12f9   :  { %5155 = vmatpush.bf16.msra.mxu3 %v5142_v62  ;;  %5181 = vmatpush.bf16.msra.mxu0 %v5142_v62 }
0x12fc   :  { %6990 = vmatmul.msk.bf16.vlgmr.msra.gmra.mxu3 %vm905_vm3, %v9510_v34  ;;  %6993 = vmatmul.msk.bf16.vlgmr.msra.gmra.mxu0 %vm905_vm3, %v9551_v2  ;;  %v7458_v34 = vld [vmem:[#allocation63 + $0xa8] sm:$0xff]  ;;  %v7443_v2 = vld [vmem:[#allocation63 + $0x30] sm:$0xff] }
0x12fd   :  { %5440 = vmatpush.bf16.msrb.mxu3 %v7460_v20  ;;  %5353 = vmatpush.bf16.msrb.mxu2 %v7443_v2  ;;  %v7470_v20 = vld [vmem:[#allocation64 + $0x38] sm:$0xff] }
0x12fe   :  { %5597 = vmatpush.bf16.msrb.mxu1 %v7470_v20 }
0x1301   :  { %5441 = vmatpush.bf16.msrb.mxu3 %v7459_v23 }
0x1305   :  { %5442 = vmatpush.bf16.msrb.mxu3 %v7458_v34 }
0x1309   :  { %5443 = vmatpush.bf16.msrb.mxu3 %v7457_v48  ;;  %v7469_v48 = vld [vmem:[#allocation64 + $0x30] sm:$0xff] }
0x130a   :  { %5598 = vmatpush.bf16.msrb.mxu1 %v7469_v48 }
0x130c   :  { %6991 = vmatmul.msk.bf16.gmra.mxu3 %vm905_vm3, %v9514_v6  ;;  %6994 = vmatmul.msk.bf16.gmra.mxu0 %vm905_vm3, %v9557_v7  ;;  %v7442_v6 = vld [vmem:[#allocation63 + $0x28] sm:$0xff]  ;;  %v7456_v7 = vld [vmem:[#allocation63 + $0x98] sm:$0xff] }
0x130d   :  { %5354 = vmatpush.bf16.msrb.mxu2 %v7442_v6  ;;  %5444 = vmatpush.bf16.msrb.mxu3 %v7456_v7 }
0x131c   :  { %6992 = vmatmul.msk.bf16.gmra.mxu3 %vm905_vm3, %v9332_v30  ;;  %6995 = vmatmul.msk.bf16.gmra.mxu0 %vm905_vm3, %v9334_v31  ;;  %v7441_v30 = vld [vmem:[#allocation63 + $0x20] sm:$0xff]  ;;  %v7455_v31 = vld [vmem:[#allocation63 + $0x90] sm:$0xff] }
0x131d   :  { %5355 = vmatpush.bf16.msrb.mxu2 %v7441_v30  ;;  %5445 = vmatpush.bf16.msrb.mxu3 %v7455_v31 }
0x1321   :  { %5356 = vmatpush.bf16.msrb.mxu2 %v7440_v25  ;;  %5446 = vmatpush.bf16.msrb.mxu3 %v7454_v56 }
0x1325   :  { %5357 = vmatpush.bf16.msrb.mxu2 %v7439_v22  ;;  %5447 = vmatpush.bf16.msrb.mxu3 %v7453_v50  ;;  %v7467_v50 = vld [vmem:[#allocation64 + $0x20] sm:$0xff] }
0x1329   :  { %5358 = vmatpush.bf16.msrb.mxu2 %v7438_v53 }
0x132d   :  { %5359 = vmatpush.bf16.msrb.mxu2 %v7437_v54  ;;  %v7466_v54 = vld [vmem:[#allocation64 + $0x18] sm:$0xff] }
0x1355   :  { %v9615_v24 = vpop.f32.mrf.mxu1 }
0x135d   :  { %v5292_v49 = vpop.f32.mrf.mxu1 }
0x1365   :  { %v5295_v51 = vpop.f32.mrf.mxu1 }
0x136d   :  { %v5297_v55 = vpop.f32.mrf.mxu1 }
0x1375   :  { %v5300_v59 = vpop.f32.mrf.mxu1 }
0x1379   :  { %v5183_v63 = vpop.f32.mrf.mxu0 }
0x137d   :  { %v5302_v18 = vpop.f32.mrf.mxu1 }
0x137e   :  { %v7463_v18 = vld [vmem:[#allocation64] sm:$0xff] }
0x137f   :  { %v5157_v52 = vpop.f32.mrf.mxu3 }
0x1381   :  { %v5185_v57 = vpop.f32.mrf.mxu0 }
0x1382   :  { %v5197_v1 = vpack.c.bf16 %v5185_v57, %v5183_v63  ;;  %v7464_v63 = vld [vmem:[#allocation64 + $0x8] sm:$0xff] }
0x1384   :  { %5448 = vmatmul.bf16.vlgmr.msrb.gmra.mxu3 %v5197_v1 }
0x1387   :  { %v5159_v58 = vpop.f32.mrf.mxu3 }
0x1388   :  { %v5171_v3 = vpack.c.bf16 %v5159_v58, %v5157_v52 }
0x1389   :  { %v5188_v4 = vpop.f32.mrf.mxu0 }
0x138a   :  { %5360 = vmatmul.bf16.vlgmr.msrb.gmra.mxu2 %v5171_v3 }
0x138f   :  { %v5162_v12 = vpop.f32.mrf.mxu3 }
0x1391   :  { %v5190_v29 = vpop.f32.mrf.mxu0 }
0x1392   :  { %v5198_v60 = vpack.c.bf16 %v5190_v29, %v5188_v4 }
0x1394   :  { %5453 = vmatmul.bf16.gmra.mxu3 %v5198_v60 }
0x1397   :  { %v5164_v0 = vpop.f32.mrf.mxu3 }
0x1398   :  { %v5172_v38 = vpack.c.bf16 %v5164_v0, %v5162_v12  ;;  %v7577_v12 = vld [vmem:[%s8967_s12] ss:$0 sm:$0xff] }
0x1399   :  { %v5193_v61 = vpop.f32.mrf.mxu0 }
0x139a   :  { %5365 = vmatmul.bf16.gmra.mxu2 %v5172_v38  ;;  %v5199_v10 = vpack.c.bf16 %v5193_v61, %v5193_v61 }
0x139f   :  { %v5167_v62 = vpop.f32.mrf.mxu3 }
0x13a0   :  { %v5173_v14 = vpack.c.bf16 %v5167_v62, %v5167_v62 }
0x13a1   :  { %v5195_v13 = vpop.f32.mrf.mxu0 }
0x13a4   :  { %5458 = vmatmul.bf16.gmra.mxu3 %v5199_v10 }
0x13a7   :  { %v5169_v40 = vpop.f32.mrf.mxu3 }
0x13aa   :  { %5370 = vmatmul.bf16.gmra.mxu2 %v5173_v14 }
0x1407   :  { %v5449_v15 = vpop.f32.mrf.mxu3 }
0x140d   :  { %v5361_v16 = vpop.f32.mrf.mxu2 }
0x140e   :  { %v5362_v44 = vadd.f32 %v5361_v16, %v9615_v24  ;;  %v7468_v24 = vld [vmem:[#allocation64 + $0x28] sm:$0xff] }
0x140f   :  { %v5451_v17 = vpop.f32.mrf.mxu3  ;;  %5599 = vmatpush.bf16.msrb.mxu1 %v7468_v24 }
0x1410   :  { %v5463_v9 = vadd.f32 %v5449_v15, %v5362_v44 }
0x1412   :  { %v5472_v31 = vadd.f32 %v7576_v11, %v5463_v9 }
0x1413   :  { %5600 = vmatpush.bf16.msrb.mxu1 %v7467_v50 }
0x1414   :  { %v5477_v22 = vmax.f32 %v5472_v31, 0.0 }
0x1415   :  { %v5363_v21 = vpop.f32.mrf.mxu2 }
0x1416   :  { %v5364_v36 = vadd.f32 %v5363_v21, %v5292_v49 }
0x1417   :  { %v5454_v27 = vpop.f32.mrf.mxu3  ;;  %5601 = vmatpush.bf16.msrb.mxu1 %v7466_v54 }
0x1418   :  { %v5464_v37 = vadd.f32 %v5451_v17, %v5364_v36 }
0x141a   :  { %v5473_v6 = vadd.f32 %v7576_v11, %v5464_v37 }
0x141c   :  { %v5478_v56 = vmax.f32 %v5473_v6, 0.0 }
0x141d   :  { %v5366_v8 = vpop.f32.mrf.mxu2 }
0x141e   :  { %v5367_v35 = vadd.f32 %v5366_v8, %v5295_v51  ;;  %v5482_v53 = vpack.c.bf16 %v5478_v56, %v5477_v22  ;;  %v7461_v51 = vld [vmem:[%s8957_s27] sm:$0xff] }
0x141f   :  { %v5456_v32 = vpop.f32.mrf.mxu3 }
0x1420   :  { %v5465_v45 = vadd.f32 %v5454_v27, %v5367_v35 }
0x1422   :  { %v5474_v23 = vadd.f32 %v7576_v11, %v5465_v45 }
0x1424   :  { %v5479_v25 = vmax.f32 %v5474_v23, 0.0 }
0x1425   :  { %v5368_v19 = vpop.f32.mrf.mxu2 }
0x1426   :  { %v5369_v33 = vadd.f32 %v5368_v19, %v5297_v55  ;;  %v7462_v55 = vld [vmem:[%s8957_s27 + $0x8] sm:$0xff] }
0x1427   :  { %v5459_v28 = vpop.f32.mrf.mxu3 }
0x1428   :  { %v5466_v43 = vadd.f32 %v5456_v32, %v5369_v33 }
0x142a   :  { %v5475_v39 = vadd.f32 %v7576_v11, %v5466_v43 }
0x142c   :  { %v5480_v7 = vmax.f32 %v5475_v39, 0.0 }
0x142d   :  { %v5371_v41 = vpop.f32.mrf.mxu2 }
0x142e   :  { %v5372_v42 = vadd.f32 %v5371_v41, %v5300_v59  ;;  %v5483_v49 = vpack.c.bf16 %v5480_v7, %v5479_v25  ;;  %v7465_v59 = vld [vmem:[#allocation64 + $0x10] sm:$0xff] }
0x142f   :  { %v5461_v5 = vpop.f32.mrf.mxu3  ;;  %5602 = vmatpush.bf16.msrb.mxu1 %v7465_v59 }
0x1430   :  { %v5467_v26 = vadd.f32 %v5459_v28, %v5372_v42 }
0x1432   :  { %v5476_v46 = vadd.f32 %v7576_v11, %v5467_v26 }
0x1433   :  { %5603 = vmatpush.bf16.msrb.mxu1 %v7464_v63 }
0x1434   :  { %v5481_v47 = vmax.f32 %v5476_v46, 0.0 }
0x1435   :  { %v5373_v34 = vpop.f32.mrf.mxu2 }
0x1436   :  { %v5484_v2 = vpack.c.bf16 %v5481_v47, %v5481_v47 }
0x1437   :  { %5604 = vmatpush.bf16.msrb.mxu1 %v7463_v18 }
0x1438   :  { %v5506_v30 = vsel %vm915_vm2, %v5484_v2, 0 }
0x1439   :  { %5513 = vmatpush.bf16.msrb.mxu0 %v5506_v30 }
0x143d   :  { %5514 = vmatpush.bf16.msrb.mxu0 %v5483_v49 }
0x1441   :  { %5515 = vmatpush.bf16.msrb.mxu0 %v5482_v53 }
0x1444   :  { %7100 = vmatmul.msk.bf16.vlgmr.msrb.gmra.mxu0 %vm905_vm3, %v7461_v51 }
0x1454   :  { %7101 = vmatmul.msk.bf16.gmra.mxu0 %vm905_vm3, %v7462_v55 }
0x14c1   :  { %v5517_v52 = vpop.f32.mrf.mxu0 }
0x14c9   :  { %v5519_v57 = vpop.f32.mrf.mxu0 }
0x14ca   :  { %v5527_v1 = vpack.c.bf16 %v5519_v57, %v5517_v52 }
0x14cc   :  { %5605 = vmatmul.bf16.vlgmr.msrb.gmra.mxu1 %v5527_v1 }
0x14d1   :  { %v5522_v58 = vpop.f32.mrf.mxu0 }
0x14d9   :  { %v5524_v3 = vpop.f32.mrf.mxu0 }
0x14da   :  { %v5528_v4 = vpack.c.bf16 %v5524_v3, %v5522_v58 }
0x14dc   :  { %5610 = vmatmul.bf16.gmra.mxu1 %v5528_v4 }
0x1549   :  { %v5606_v29 = vpop.f32.mrf.mxu1 }
0x154a   :  { %v5607_v60 = vadd.f32 %v7577_v12, %v5606_v29 }
0x154c   :  { %5616 = vst.msk [vmem:[%s8972_s5] sm:$0xff] %vm851_vm0, %v5607_v60 }
0x1551   :  { %v5608_v0 = vpop.f32.mrf.mxu1 }
0x1552   :  { %v5609_v38 = vadd.f32 %v7577_v12, %v5608_v0 }
0x1554   :  { %5617 = vst.msk [vmem:[%s8972_s5 + $0x8] sm:$0xff] %vm851_vm0, %v5609_v38 }
0x1559   :  { %v5611_v61 = vpop.f32.mrf.mxu1 }
0x155a   :  { %v5612_v62 = vadd.f32 %v7577_v12, %v5611_v61 }
0x155c   :  { %5618 = vst.msk [vmem:[%s8972_s5 + $0x10] sm:$0xff] %vm851_vm0, %v5612_v62 }
0x1561   :  { %v5613_v10 = vpop.f32.mrf.mxu1 }
0x1562   :  { %v5614_v13 = vadd.f32 %v7577_v12, %v5613_v10 }
0x1564   :  { %5619 = vst.msk [vmem:[%s8972_s5 + $0x18] sm:$0xff] %vm851_vm0, %v5614_v13 }
0x1565   :  { %5624 = vsyncpa [#allocation3], 1 }
0x1566   :  { %5625 = vsyncpa [#allocation5], 1 }
0x1567   :  { %5626 = vsyncpa [#allocation8], 1 }
0x1568   :  { %5627 = vsyncpa [#allocation11], 1 }
0x1569   :  { %5628 = vsyncpa [#allocation14], 1 }
0x156a   :  { %5629 = vsyncpa [#allocation17], 1 }
0x156b   :  { %5630 = vsyncpa [#allocation20], 1 }
0x156c   :  { %5631 = vsyncpa [#allocation23], 1 }
0x156d   :  { %5632 = vsyncpa [#allocation26], 1 }
0x156e   :  { %5633 = vsyncpa [#allocation29], 1 }
0x156f   :  { %5634 = vsyncpa [#allocation32], 1 }
0x1570   :  { %5635 = vsyncpa [#allocation35], 1 }
0x1571   :  { %5636 = vsyncpa [#allocation38], 1 }
0x1572   :  { %5637 = vsyncpa [#allocation41], 1 }
0x1573   :  { %5638 = vsyncpa [#allocation44], 1 }
0x1574   :  { %5639 = vsyncpa [#allocation47], 1 }
0x1575   :  { %5640 = vsyncpa [#allocation50], 1 }
0x1576   :  { %5641 = vsyncpa [#allocation53], 1 }
0x1577   :  { %5642 = vsyncpa [#allocation56], 1 }
0x1578   :  { %5643 = vsyncpa [#allocation59], 1 }
0x1579   :  { %5644 = vsyncpa [#allocation62], 1 }
0x157a   :  { %5645 = vsyncpa [#allocation65], 1 }

</bundles_post_ra>
